<compile_context>
chip_gen: v5e
topology: v5e:2x2
jax: 0.10.0
libtpu: 0.0.40
codegen_flags: <defaults>
</compile_context>

<pallas_src>
import functools

import jax
import jax.numpy as jnp
from jax import lax
from jax.experimental import pallas as pl
from jax.experimental.pallas import tpu as pltpu


def _round_up(x, m):
    return (x + m - 1) // m * m


def _physical_vmem_bytes():
    # Clamp any scoped-VMEM request to the chip (v7x has only 64 MiB per TC).
    try:
        return int(pltpu.get_tpu_info().vmem_capacity_bytes)
    except Exception:
        return 64 * (1 << 20)


def bottleneck_kernel(x_ref, w1_ref, w2lr_ref, w2c_ref, w3_ref,
                      b1_ref, b2_ref, b3_ref, o_ref, pad_ref, patch_ref,
                      *, H, W):
    """One image per grid step; everything inside is 2-D [H*W, C]."""
    HW = H * W
    width = w1_ref.shape[1]          # width padded to a multiple of 128
    pad = W                          # halo rows (W is a multiple of 8)

    # Halo zero-fill.  Kept unconditional: gating it on program_id(0)==0 would
    # leave the halo uninitialized on the second TensorCore if the "parallel"
    # batch axis is sharded across cores (scratch is per-core), and the cost is
    # only 2*W rows per step.
    zero_rows = jnp.zeros((pad, width), jnp.float32)
    pad_ref[0:pad, :] = zero_rows                      # top halo
    pad_ref[pad + HW:2 * pad + HW, :] = zero_rows      # bottom halo

    x_bf = x_ref[0]                                    # [HW, cin_p] bf16

    # ---- conv1 (1x1, BN scale folded into w1) + bias + ReLU ----------------
    h1 = jnp.dot(x_bf, w1_ref[...], preferred_element_type=jnp.float32)
    h1 = jnp.maximum(h1 + b1_ref[...], 0.0)            # [HW, width] f32
    pad_ref[pad:pad + HW, :] = h1

    # ---- conv2 (3x3, stride=1, padding=1) -----------------------------------
    # Centered taps (kx=1) are matmul-accumulated straight from aligned slices
    # of the zero-haloed h1 buffer; only the +/-1-column taps are materialized
    # (roll + column mask) into a bf16 im2col buffer.  The single wrapped row
    # of each roll always lands on a masked column, so the wrap is harmless.
    col = lax.broadcasted_iota(jnp.int32, (HW, 1), 0) % W
    mask_l = col > 0             # kx = 0 tap needs src col-1 >= 0
    mask_r = col < (W - 1)       # kx = 2 tap needs src col+1 <= W-1

    for ky in range(3):
        base = pad_ref[ky * W:ky * W + HW, :]                     # aligned slice
        left = pltpu.roll(base, shift=1, axis=0).astype(jnp.bfloat16)
        # shift=HW-1 is the non-negative equivalent of shift=-1 (cyclic roll).
        right = pltpu.roll(base, shift=HW - 1, axis=0).astype(jnp.bfloat16)
        patch_ref[:, (2 * ky + 0) * width:(2 * ky + 1) * width] = (
            jnp.where(mask_l, left, jnp.zeros_like(left)))
        patch_ref[:, (2 * ky + 1) * width:(2 * ky + 2) * width] = (
            jnp.where(mask_r, right, jnp.zeros_like(right)))

    h2 = jnp.dot(patch_ref[...], w2lr_ref[...],
                 preferred_element_type=jnp.float32)              # [HW, width]
    for ky in range(3):
        base = pad_ref[ky * W:ky * W + HW, :].astype(jnp.bfloat16)
        h2 = h2 + jnp.dot(base, w2c_ref[ky * width:(ky + 1) * width, :],
                          preferred_element_type=jnp.float32)
    h2 = jnp.maximum(h2 + b2_ref[...], 0.0)

    # ---- conv3 (1x1) + bias + identity residual + ReLU ---------------------
    h3 = jnp.dot(h2.astype(jnp.bfloat16), w3_ref[...],
                 preferred_element_type=jnp.float32)              # [HW, Cout]
    out = jnp.maximum(h3 + b3_ref[...] + x_bf.astype(jnp.float32), 0.0)
    o_ref[0] = out.astype(o_ref.dtype)


def _const_spec(shape):
    """BlockSpec for a grid-invariant operand, single-buffered when supported."""
    index_map = lambda n: (0,) * len(shape)
    if hasattr(pl, "Buffered"):
        try:
            return pl.BlockSpec(shape, index_map, pipeline_mode=pl.Buffered(1))
        except TypeError:
            pass
    return pl.BlockSpec(shape, index_map)


def bottleneck_forward(x_nchw, params):
    N, Cin, H, W = x_nchw.shape
    HW = H * W
    assert W % 8 == 0, "kernel requires W to be a multiple of 8"

    w1, w2, w3 = params["w1"], params["w2"], params["w3"]
    width, cout = w1.shape[1], w3.shape[1]
    assert cout == Cin, "downsample=None requires in_channel == out_channel*expansion"

    # Lane-dense channel padding (multiples of 128 -- do NOT pad further; 128
    # lanes already fill the MXU output dimension).
    cin_p = _round_up(Cin, 128)
    width_p = _round_up(width, 128)
    cout_p = _round_up(cout, 128)
    assert cin_p == cout_p

    # Fold eval-mode BN scales into the conv weights; biases stay separate.
    w1f = w1 * params["s1"][None, :]
    w2f = w2 * params["s2"][None, None, None, :]
    w3f = w3 * params["s3"][None, :]

    def pad2(a, r, c):
        return jnp.pad(a, ((0, r - a.shape[0]), (0, c - a.shape[1])))

    w1p = pad2(w1f, cin_p, width_p).astype(jnp.bfloat16)
    w2p = jnp.pad(w2f, ((0, 0), (0, 0),
                        (0, width_p - width), (0, width_p - width)))
    # [ky, kx, cin, cout] -> left/right taps (kx=0,2) in im2col order, and
    # centered taps (kx=1) stacked by ky for the direct matmuls.
    w2lr = w2p[:, (0, 2)].reshape(6 * width_p, width_p).astype(jnp.bfloat16)
    w2c = w2p[:, 1].reshape(3 * width_p, width_p).astype(jnp.bfloat16)
    w3p = pad2(w3f, width_p, cout_p).astype(jnp.bfloat16)

    def padvec(v, c):
        return jnp.pad(v, (0, c - v.shape[0]))[None, :].astype(jnp.float32)

    b1 = padvec(params["b1"], width_p)
    b2 = padvec(params["b2"], width_p)
    b3 = padvec(params["b3"], cout_p)

    # Activations streamed to/from HBM in bf16 (halves x/out DMA + VMEM).
    x = jnp.transpose(x_nchw, (0, 2, 3, 1)).reshape(N, HW, Cin)
    x = jnp.pad(x, ((0, 0), (0, 0), (0, cin_p - Cin))).astype(jnp.bfloat16)

    kernel = functools.partial(bottleneck_kernel, H=H, W=W)

    weight_bytes = (w1p.size + w2lr.size + w2c.size + w3p.size) * 2
    bias_bytes = (b1.size + b2.size + b3.size) * 4
    # Conservative VMEM estimate: x/out double-buffered bf16, weights counted
    # double-buffered even though we request Buffered(1), plus scratch.
    vmem_bytes = (2 * HW * cin_p * 2 + 2 * HW * cout_p * 2
                  + 2 * weight_bytes + 2 * bias_bytes
                  + (HW + 2 * W) * width_p * 4
                  + HW * 6 * width_p * 2)
    cp_kwargs = dict(dimension_semantics=("parallel",))
    limit = int(vmem_bytes * 5 // 4)                 # ~25% headroom
    if limit > 12 * (1 << 20):
        cp_kwargs["vmem_limit_bytes"] = min(limit,
                                            int(_physical_vmem_bytes() * 0.85))

    flops = 2 * N * HW * (cin_p * width_p + 9 * width_p * width_p
                          + width_p * cout_p)
    bytes_accessed = (x.size * 2 + N * HW * cout_p * 2
                      + weight_bytes + bias_bytes)
    cost = pl.CostEstimate(flops=flops, transcendentals=0,
                           bytes_accessed=bytes_accessed)

    out = pl.pallas_call(
        kernel,
        out_shape=jax.ShapeDtypeStruct((N, HW, cout_p), jnp.bfloat16),
        grid_spec=pltpu.PrefetchScalarGridSpec(
            num_scalar_prefetch=0,
            grid=(N,),
            in_specs=[
                pl.BlockSpec((1, HW, cin_p), lambda n: (n, 0, 0)),   # x
                _const_spec((cin_p, width_p)),                       # w1 (scaled)
                _const_spec((6 * width_p, width_p)),                 # w2 left/right
                _const_spec((3 * width_p, width_p)),                 # w2 center
                _const_spec((width_p, cout_p)),                      # w3 (scaled)
                _const_spec((1, width_p)),                           # b1
                _const_spec((1, width_p)),                           # b2
                _const_spec((1, cout_p)),                            # b3
            ],
            out_specs=pl.BlockSpec((1, HW, cout_p), lambda n: (n, 0, 0)),
            scratch_shapes=[
                pltpu.VMEM((HW + 2 * W, width_p), jnp.float32),  # zero-haloed h1
                pltpu.VMEM((HW, 6 * width_p), jnp.bfloat16),     # left/right im2col
            ],
        ),
        compiler_params=pltpu.CompilerParams(**cp_kwargs),
        cost_estimate=cost,
    )(x, w1p, w2lr, w2c, w3p, b1, b2, b3)

    out = out[:, :, :cout].astype(x_nchw.dtype)
    return jnp.transpose(out.reshape(N, H, W, cout), (0, 3, 1, 2))


def init_params(key, in_channel, out_channel, groups=1, width_per_group=64):
    width = int(out_channel * (width_per_group / 64.0)) * groups
    cout = out_channel * 4  # expansion = 4
    ks = jax.random.split(key, 15)
    eps = 1e-5

    def bn(kg, kb, km, kv, c):
        gamma = jax.random.uniform(kg, (c,), jnp.float32, 0.5, 1.5)
        beta = 0.1 * jax.random.normal(kb, (c,), jnp.float32)
        mean = 0.1 * jax.random.normal(km, (c,), jnp.float32)
        var = jax.random.uniform(kv, (c,), jnp.float32, 0.5, 1.5)
        scale = gamma / jnp.sqrt(var + eps)
        bias = beta - mean * scale
        return scale, bias

    w1 = 0.1 * jax.random.normal(ks[0], (in_channel, width), jnp.float32)
    w2 = 0.1 * jax.random.normal(ks[1], (3, 3, width, width), jnp.float32)
    w3 = 0.1 * jax.random.normal(ks[2], (width, cout), jnp.float32)
    s1, b1 = bn(ks[3], ks[4], ks[5], ks[6], width)
    s2, b2 = bn(ks[7], ks[8], ks[9], ks[10], width)
    s3, b3 = bn(ks[11], ks[12], ks[13], ks[14], cout)
    return dict(w1=w1, w2=w2, w3=w3, s1=s1, b1=b1, s2=s2, b2=b2, s3=s3, b3=b3)


def ref_forward(x_nchw, p):
    """Pure-JAX reference (XLA convs, f32), same eval-mode BN folding."""
    dn = ("NHWC", "HWIO", "NHWC")
    x = jnp.transpose(x_nchw, (0, 2, 3, 1))
    h = lax.conv_general_dilated(x, p["w1"][None, None], (1, 1), "VALID",
                                 dimension_numbers=dn)
    h = jnp.maximum(h * p["s1"] + p["b1"], 0.0)
    h = lax.conv_general_dilated(h, p["w2"], (1, 1), ((1, 1), (1, 1)),
                                 dimension_numbers=dn)
    h = jnp.maximum(h * p["s2"] + p["b2"], 0.0)
    h = lax.conv_general_dilated(h, p["w3"][None, None], (1, 1), "VALID",
                                 dimension_numbers=dn)
    h = h * p["s3"] + p["b3"]
    out = jnp.maximum(h + x, 0.0)
    return jnp.transpose(out, (0, 3, 1, 2))


if __name__ == "__main__":
    # Bottleneck(in_channel=16, out_channel=4, stride=1, downsample=None)
    #   -> width = 4, output channels = out_channel * 4 = 16 = in_channel.
    N, in_channel, H, W = 2, 16, 16, 16
    out_channel = 4

    key = jax.random.PRNGKey(0)
    kx, kp = jax.random.split(key)
    x = jax.random.normal(kx, (N, in_channel, H, W), jnp.float32)
    params = init_params(kp, in_channel, out_channel)

    y = bottleneck_forward(x, params)
    jax.block_until_ready(y)

    y_ref = ref_forward(x, params)
    assert y.shape == (N, out_channel * 4, H, W)
    assert jnp.allclose(y, y_ref, atol=5e-2, rtol=5e-2), (
        float(jnp.max(jnp.abs(y - y_ref))))

    print("KERNEL_OK")
</pallas_src>

<mosaic_0001>
module attributes {stable_mosaic.version = 11 : i64} {
  func.func @bottleneck_kernel(%arg0: i32, %arg1: memref<1x256x128xbf16, #tpu.memory_space<vmem>>, %arg2: memref<128x128xbf16, #tpu.memory_space<vmem>>, %arg3: memref<768x128xbf16, #tpu.memory_space<vmem>>, %arg4: memref<384x128xbf16, #tpu.memory_space<vmem>>, %arg5: memref<128x128xbf16, #tpu.memory_space<vmem>>, %arg6: memref<1x128xf32, #tpu.memory_space<vmem>>, %arg7: memref<1x128xf32, #tpu.memory_space<vmem>>, %arg8: memref<1x128xf32, #tpu.memory_space<vmem>>, %arg9: memref<1x256x128xbf16, #tpu.memory_space<vmem>>, %arg10: memref<288x128xf32, #tpu.memory_space<vmem>>, %arg11: memref<256x768xbf16, #tpu.memory_space<vmem>>) attributes {dimension_semantics = [#tpu.dimension_semantics<parallel>], iteration_bounds = array<i64: 2>, scalar_prefetch = 0 : i64, scratch_operands = 2 : i64, tpu.core_type = #tpu.core_type<tc>, window_params = [{transform_indices = @transform_0, window_bounds = array<i64: 1, 256, 128>}, {pipeline_mode = #tpu.pipeline_mode<synchronous>, transform_indices = @transform_1, window_bounds = array<i64: 128, 128>}, {pipeline_mode = #tpu.pipeline_mode<synchronous>, transform_indices = @transform_2, window_bounds = array<i64: 768, 128>}, {pipeline_mode = #tpu.pipeline_mode<synchronous>, transform_indices = @transform_3, window_bounds = array<i64: 384, 128>}, {pipeline_mode = #tpu.pipeline_mode<synchronous>, transform_indices = @transform_4, window_bounds = array<i64: 128, 128>}, {pipeline_mode = #tpu.pipeline_mode<synchronous>, transform_indices = @transform_5, window_bounds = array<i64: 1, 128>}, {pipeline_mode = #tpu.pipeline_mode<synchronous>, transform_indices = @transform_6, window_bounds = array<i64: 1, 128>}, {pipeline_mode = #tpu.pipeline_mode<synchronous>, transform_indices = @transform_7, window_bounds = array<i64: 1, 128>}, {transform_indices = @transform_8, window_bounds = array<i64: 1, 256, 128>}]} {
    %cst = arith.constant 0.000000e+00 : f32
    %0 = vector.broadcast %cst : f32 to vector<16x128xf32>
    %c0 = arith.constant 0 : index
    %c0_0 = arith.constant 0 : index
    %1 = vector.load %arg10[%c0, %c0_0] : memref<288x128xf32, #tpu.memory_space<vmem>>, vector<16x128xf32>
    tpu.vector_store %arg10[%c0, %c0_0], %0 {strides = array<i32>} : memref<288x128xf32, #tpu.memory_space<vmem>>, vector<16x128xf32>,
    %c272 = arith.constant 272 : index
    %c0_1 = arith.constant 0 : index
    %2 = vector.load %arg10[%c272, %c0_1] : memref<288x128xf32, #tpu.memory_space<vmem>>, vector<16x128xf32>
    tpu.vector_store %arg10[%c272, %c0_1], %0 {strides = array<i32>} : memref<288x128xf32, #tpu.memory_space<vmem>>, vector<16x128xf32>,
    %c0_2 = arith.constant 0 : index
    %c0_3 = arith.constant 0 : index
    %c0_4 = arith.constant 0 : index
    %3 = vector.load %arg1[%c0_2, %c0_3, %c0_4] : memref<1x256x128xbf16, #tpu.memory_space<vmem>>, vector<1x256x128xbf16>
    %4 = vector.shape_cast %3 : vector<1x256x128xbf16> to vector<256x128xbf16>
    %c0_5 = arith.constant 0 : index
    %c0_6 = arith.constant 0 : index
    %5 = vector.load %arg2[%c0_5, %c0_6] : memref<128x128xbf16, #tpu.memory_space<vmem>>, vector<128x128xbf16>
    %cst_7 = arith.constant dense<0.000000e+00> : vector<256x128xf32>
    %6 = tpu.matmul %4, %5, %cst_7 {dimension_numbers = #tpu.dot_dimension_numbers<[1], [0], [0], [1], [0, 0, 1, 1], [], []>} : vector<256x128xbf16>, vector<128x128xbf16>, vector<256x128xf32> -> vector<256x128xf32>
    %c0_8 = arith.constant 0 : index
    %c0_9 = arith.constant 0 : index
    %7 = vector.load %arg6[%c0_8, %c0_9] : memref<1x128xf32, #tpu.memory_space<vmem>>, vector<1x128xf32>
    %8 = vector.broadcast %7 : vector<1x128xf32> to vector<256x128xf32>
    %9 = arith.addf %6, %8 : vector<256x128xf32>
    %cst_10 = arith.constant 0.000000e+00 : f32
    %10 = vector.broadcast %cst_10 : f32 to vector<256x128xf32>
    %11 = arith.maximumf %9, %10 : vector<256x128xf32>
    %c16 = arith.constant 16 : index
    %c0_11 = arith.constant 0 : index
    %12 = vector.load %arg10[%c16, %c0_11] : memref<288x128xf32, #tpu.memory_space<vmem>>, vector<256x128xf32>
    tpu.vector_store %arg10[%c16, %c0_11], %11 {strides = array<i32>} : memref<288x128xf32, #tpu.memory_space<vmem>>, vector<256x128xf32>,
    %13 = tpu.iota {dimensions = array<i32: 0>} : vector<256x1xi32>
    %c16_i32 = arith.constant 16 : i32
    %c0_i32 = arith.constant 0 : i32
    %14 = arith.cmpi eq, %c16_i32, %c0_i32 : i32
    %c1_i32 = arith.constant 1 : i32
    %15 = arith.select %14, %c1_i32, %c16_i32 : i32
    %16 = vector.broadcast %15 : i32 to vector<256x1xi32>
    %17 = arith.remsi %13, %16 : vector<256x1xi32>
    %c0_i32_12 = arith.constant 0 : i32
    %18 = vector.broadcast %c0_i32_12 : i32 to vector<256x1xi32>
    %19 = arith.cmpi ne, %17, %18 : vector<256x1xi32>
    %c0_i32_13 = arith.constant 0 : i32
    %20 = vector.broadcast %c0_i32_13 : i32 to vector<256x1xi32>
    %21 = arith.cmpi slt, %17, %20 : vector<256x1xi32>
    %c0_i32_14 = arith.constant 0 : i32
    %22 = arith.cmpi slt, %15, %c0_i32_14 : i32
    %23 = vector.broadcast %22 : i1 to vector<256x1xi1>
    %24 = vector.broadcast %23 : vector<256x1xi1> to vector<256x1xi1>
    %25 = arith.xori %21, %24 : vector<256x1xi1>
    %26 = arith.andi %25, %19 : vector<256x1xi1>
    %27 = vector.broadcast %15 : i32 to vector<256x1xi32>
    %28 = arith.addi %17, %27 : vector<256x1xi32>
    %29 = arith.select %26, %28, %17 : vector<256x1xi1>, vector<256x1xi32>
    %c0_i32_15 = arith.constant 0 : i32
    %30 = vector.broadcast %c0_i32_15 : i32 to vector<256x1xi32>
    %31 = arith.cmpi sgt, %29, %30 : vector<256x1xi32>
    %c15_i32 = arith.constant 15 : i32
    %32 = vector.broadcast %c15_i32 : i32 to vector<256x1xi32>
    %33 = arith.cmpi slt, %29, %32 : vector<256x1xi32>
    %c0_16 = arith.constant 0 : index
    %c0_17 = arith.constant 0 : index
    %34 = vector.load %arg10[%c0_16, %c0_17] : memref<288x128xf32, #tpu.memory_space<vmem>>, vector<256x128xf32>
    %c1_i32_18 = arith.constant 1 : i32
    %35 = tpu.dynamic_rotate %34 by %c1_i32_18 dim 0 : vector<256x128xf32>, i32 -> vector<256x128xf32>
    %36 = arith.truncf %35 : vector<256x128xf32> to vector<256x128xbf16>
    %c255_i32 = arith.constant 255 : i32
    %37 = tpu.dynamic_rotate %34 by %c255_i32 dim 0 : vector<256x128xf32>, i32 -> vector<256x128xf32>
    %38 = arith.truncf %37 : vector<256x128xf32> to vector<256x128xbf16>
    %cst_19 = arith.constant 0.000000e+00 : bf16
    %39 = vector.broadcast %cst_19 : bf16 to vector<256x128xbf16>
    %40 = vector.shape_cast %31 : vector<256x1xi1> to vector<256x1xi1>
    %41 = vector.broadcast %40 : vector<256x1xi1> to vector<256x128xi1>
    %42 = arith.select %41, %36, %39 : vector<256x128xi1>, vector<256x128xbf16>
    %c0_20 = arith.constant 0 : index
    %c0_21 = arith.constant 0 : index
    %43 = vector.load %arg11[%c0_20, %c0_21] : memref<256x768xbf16, #tpu.memory_space<vmem>>, vector<256x128xbf16>
    tpu.vector_store %arg11[%c0_20, %c0_21], %42 {strides = array<i32>} : memref<256x768xbf16, #tpu.memory_space<vmem>>, vector<256x128xbf16>,
    %cst_22 = arith.constant 0.000000e+00 : bf16
    %44 = vector.broadcast %cst_22 : bf16 to vector<256x128xbf16>
    %45 = vector.shape_cast %33 : vector<256x1xi1> to vector<256x1xi1>
    %46 = vector.broadcast %45 : vector<256x1xi1> to vector<256x128xi1>
    %47 = arith.select %46, %38, %44 : vector<256x128xi1>, vector<256x128xbf16>
    %c0_23 = arith.constant 0 : index
    %c128 = arith.constant 128 : index
    %48 = vector.load %arg11[%c0_23, %c128] : memref<256x768xbf16, #tpu.memory_space<vmem>>, vector<256x128xbf16>
    tpu.vector_store %arg11[%c0_23, %c128], %47 {strides = array<i32>} : memref<256x768xbf16, #tpu.memory_space<vmem>>, vector<256x128xbf16>,
    %c16_24 = arith.constant 16 : index
    %c0_25 = arith.constant 0 : index
    %49 = vector.load %arg10[%c16_24, %c0_25] : memref<288x128xf32, #tpu.memory_space<vmem>>, vector<256x128xf32>
    %c1_i32_26 = arith.constant 1 : i32
    %50 = tpu.dynamic_rotate %49 by %c1_i32_26 dim 0 : vector<256x128xf32>, i32 -> vector<256x128xf32>
    %51 = arith.truncf %50 : vector<256x128xf32> to vector<256x128xbf16>
    %c255_i32_27 = arith.constant 255 : i32
    %52 = tpu.dynamic_rotate %49 by %c255_i32_27 dim 0 : vector<256x128xf32>, i32 -> vector<256x128xf32>
    %53 = arith.truncf %52 : vector<256x128xf32> to vector<256x128xbf16>
    %cst_28 = arith.constant 0.000000e+00 : bf16
    %54 = vector.broadcast %cst_28 : bf16 to vector<256x128xbf16>
    %55 = vector.shape_cast %31 : vector<256x1xi1> to vector<256x1xi1>
    %56 = vector.broadcast %55 : vector<256x1xi1> to vector<256x128xi1>
    %57 = arith.select %56, %51, %54 : vector<256x128xi1>, vector<256x128xbf16>
    %c0_29 = arith.constant 0 : index
    %c256 = arith.constant 256 : index
    %58 = vector.load %arg11[%c0_29, %c256] : memref<256x768xbf16, #tpu.memory_space<vmem>>, vector<256x128xbf16>
    tpu.vector_store %arg11[%c0_29, %c256], %57 {strides = array<i32>} : memref<256x768xbf16, #tpu.memory_space<vmem>>, vector<256x128xbf16>,
    %cst_30 = arith.constant 0.000000e+00 : bf16
    %59 = vector.broadcast %cst_30 : bf16 to vector<256x128xbf16>
    %60 = vector.shape_cast %33 : vector<256x1xi1> to vector<256x1xi1>
    %61 = vector.broadcast %60 : vector<256x1xi1> to vector<256x128xi1>
    %62 = arith.select %61, %53, %59 : vector<256x128xi1>, vector<256x128xbf16>
    %c0_31 = arith.constant 0 : index
    %c384 = arith.constant 384 : index
    %63 = vector.load %arg11[%c0_31, %c384] : memref<256x768xbf16, #tpu.memory_space<vmem>>, vector<256x128xbf16>
    tpu.vector_store %arg11[%c0_31, %c384], %62 {strides = array<i32>} : memref<256x768xbf16, #tpu.memory_space<vmem>>, vector<256x128xbf16>,
    %c32 = arith.constant 32 : index
    %c0_32 = arith.constant 0 : index
    %64 = vector.load %arg10[%c32, %c0_32] : memref<288x128xf32, #tpu.memory_space<vmem>>, vector<256x128xf32>
    %c1_i32_33 = arith.constant 1 : i32
    %65 = tpu.dynamic_rotate %64 by %c1_i32_33 dim 0 : vector<256x128xf32>, i32 -> vector<256x128xf32>
    %66 = arith.truncf %65 : vector<256x128xf32> to vector<256x128xbf16>
    %c255_i32_34 = arith.constant 255 : i32
    %67 = tpu.dynamic_rotate %64 by %c255_i32_34 dim 0 : vector<256x128xf32>, i32 -> vector<256x128xf32>
    %68 = arith.truncf %67 : vector<256x128xf32> to vector<256x128xbf16>
    %cst_35 = arith.constant 0.000000e+00 : bf16
    %69 = vector.broadcast %cst_35 : bf16 to vector<256x128xbf16>
    %70 = vector.shape_cast %31 : vector<256x1xi1> to vector<256x1xi1>
    %71 = vector.broadcast %70 : vector<256x1xi1> to vector<256x128xi1>
    %72 = arith.select %71, %66, %69 : vector<256x128xi1>, vector<256x128xbf16>
    %c0_36 = arith.constant 0 : index
    %c512 = arith.constant 512 : index
    %73 = vector.load %arg11[%c0_36, %c512] : memref<256x768xbf16, #tpu.memory_space<vmem>>, vector<256x128xbf16>
    tpu.vector_store %arg11[%c0_36, %c512], %72 {strides = array<i32>} : memref<256x768xbf16, #tpu.memory_space<vmem>>, vector<256x128xbf16>,
    %cst_37 = arith.constant 0.000000e+00 : bf16
    %74 = vector.broadcast %cst_37 : bf16 to vector<256x128xbf16>
    %75 = vector.shape_cast %33 : vector<256x1xi1> to vector<256x1xi1>
    %76 = vector.broadcast %75 : vector<256x1xi1> to vector<256x128xi1>
    %77 = arith.select %76, %68, %74 : vector<256x128xi1>, vector<256x128xbf16>
    %c0_38 = arith.constant 0 : index
    %c640 = arith.constant 640 : index
    %78 = vector.load %arg11[%c0_38, %c640] : memref<256x768xbf16, #tpu.memory_space<vmem>>, vector<256x128xbf16>
    tpu.vector_store %arg11[%c0_38, %c640], %77 {strides = array<i32>} : memref<256x768xbf16, #tpu.memory_space<vmem>>, vector<256x128xbf16>,
    %c0_39 = arith.constant 0 : index
    %c0_40 = arith.constant 0 : index
    %79 = vector.load %arg11[%c0_39, %c0_40] : memref<256x768xbf16, #tpu.memory_space<vmem>>, vector<256x768xbf16>
    %c0_41 = arith.constant 0 : index
    %c0_42 = arith.constant 0 : index
    %80 = vector.load %arg3[%c0_41, %c0_42] : memref<768x128xbf16, #tpu.memory_space<vmem>>, vector<768x128xbf16>
    %cst_43 = arith.constant dense<0.000000e+00> : vector<256x128xf32>
    %81 = tpu.matmul %79, %80, %cst_43 {dimension_numbers = #tpu.dot_dimension_numbers<[1], [0], [0], [1], [0, 0, 1, 1], [], []>} : vector<256x768xbf16>, vector<768x128xbf16>, vector<256x128xf32> -> vector<256x128xf32>
    %c0_44 = arith.constant 0 : index
    %c0_45 = arith.constant 0 : index
    %82 = vector.load %arg10[%c0_44, %c0_45] : memref<288x128xf32, #tpu.memory_space<vmem>>, vector<256x128xf32>
    %83 = arith.truncf %82 : vector<256x128xf32> to vector<256x128xbf16>
    %c0_46 = arith.constant 0 : index
    %c0_47 = arith.constant 0 : index
    %84 = vector.load %arg4[%c0_46, %c0_47] : memref<384x128xbf16, #tpu.memory_space<vmem>>, vector<128x128xbf16>
    %cst_48 = arith.constant dense<0.000000e+00> : vector<256x128xf32>
    %85 = tpu.matmul %83, %84, %cst_48 {dimension_numbers = #tpu.dot_dimension_numbers<[1], [0], [0], [1], [0, 0, 1, 1], [], []>} : vector<256x128xbf16>, vector<128x128xbf16>, vector<256x128xf32> -> vector<256x128xf32>
    %86 = arith.addf %81, %85 : vector<256x128xf32>
    %c16_49 = arith.constant 16 : index
    %c0_50 = arith.constant 0 : index
    %87 = vector.load %arg10[%c16_49, %c0_50] : memref<288x128xf32, #tpu.memory_space<vmem>>, vector<256x128xf32>
    %88 = arith.truncf %87 : vector<256x128xf32> to vector<256x128xbf16>
    %c128_51 = arith.constant 128 : index
    %c0_52 = arith.constant 0 : index
    %89 = vector.load %arg4[%c128_51, %c0_52] : memref<384x128xbf16, #tpu.memory_space<vmem>>, vector<128x128xbf16>
    %cst_53 = arith.constant dense<0.000000e+00> : vector<256x128xf32>
    %90 = tpu.matmul %88, %89, %cst_53 {dimension_numbers = #tpu.dot_dimension_numbers<[1], [0], [0], [1], [0, 0, 1, 1], [], []>} : vector<256x128xbf16>, vector<128x128xbf16>, vector<256x128xf32> -> vector<256x128xf32>
    %91 = arith.addf %86, %90 : vector<256x128xf32>
    %c32_54 = arith.constant 32 : index
    %c0_55 = arith.constant 0 : index
    %92 = vector.load %arg10[%c32_54, %c0_55] : memref<288x128xf32, #tpu.memory_space<vmem>>, vector<256x128xf32>
    %93 = arith.truncf %92 : vector<256x128xf32> to vector<256x128xbf16>
    %c256_56 = arith.constant 256 : index
    %c0_57 = arith.constant 0 : index
    %94 = vector.load %arg4[%c256_56, %c0_57] : memref<384x128xbf16, #tpu.memory_space<vmem>>, vector<128x128xbf16>
    %cst_58 = arith.constant dense<0.000000e+00> : vector<256x128xf32>
    %95 = tpu.matmul %93, %94, %cst_58 {dimension_numbers = #tpu.dot_dimension_numbers<[1], [0], [0], [1], [0, 0, 1, 1], [], []>} : vector<256x128xbf16>, vector<128x128xbf16>, vector<256x128xf32> -> vector<256x128xf32>
    %96 = arith.addf %91, %95 : vector<256x128xf32>
    %c0_59 = arith.constant 0 : index
    %c0_60 = arith.constant 0 : index
    %97 = vector.load %arg7[%c0_59, %c0_60] : memref<1x128xf32, #tpu.memory_space<vmem>>, vector<1x128xf32>
    %98 = vector.broadcast %97 : vector<1x128xf32> to vector<256x128xf32>
    %99 = arith.addf %96, %98 : vector<256x128xf32>
    %cst_61 = arith.constant 0.000000e+00 : f32
    %100 = vector.broadcast %cst_61 : f32 to vector<256x128xf32>
    %101 = arith.maximumf %99, %100 : vector<256x128xf32>
    %102 = arith.truncf %101 : vector<256x128xf32> to vector<256x128xbf16>
    %c0_62 = arith.constant 0 : index
    %c0_63 = arith.constant 0 : index
    %103 = vector.load %arg5[%c0_62, %c0_63] : memref<128x128xbf16, #tpu.memory_space<vmem>>, vector<128x128xbf16>
    %cst_64 = arith.constant dense<0.000000e+00> : vector<256x128xf32>
    %104 = tpu.matmul %102, %103, %cst_64 {dimension_numbers = #tpu.dot_dimension_numbers<[1], [0], [0], [1], [0, 0, 1, 1], [], []>} : vector<256x128xbf16>, vector<128x128xbf16>, vector<256x128xf32> -> vector<256x128xf32>
    %c0_65 = arith.constant 0 : index
    %c0_66 = arith.constant 0 : index
    %105 = vector.load %arg8[%c0_65, %c0_66] : memref<1x128xf32, #tpu.memory_space<vmem>>, vector<1x128xf32>
    %106 = vector.broadcast %105 : vector<1x128xf32> to vector<256x128xf32>
    %107 = arith.addf %104, %106 : vector<256x128xf32>
    %108 = arith.extf %4 : vector<256x128xbf16> to vector<256x128xf32>
    %109 = arith.addf %107, %108 : vector<256x128xf32>
    %cst_67 = arith.constant 0.000000e+00 : f32
    %110 = vector.broadcast %cst_67 : f32 to vector<256x128xf32>
    %111 = arith.maximumf %109, %110 : vector<256x128xf32>
    %112 = arith.truncf %111 : vector<256x128xf32> to vector<256x128xbf16>
    %c0_68 = arith.constant 0 : index
    %c0_69 = arith.constant 0 : index
    %c0_70 = arith.constant 0 : index
    %113 = vector.load %arg9[%c0_68, %c0_69, %c0_70] : memref<1x256x128xbf16, #tpu.memory_space<vmem>>, vector<1x256x128xbf16>
    %114 = vector.shape_cast %113 : vector<1x256x128xbf16> to vector<256x128xbf16>
    %115 = vector.shape_cast %112 : vector<256x128xbf16> to vector<1x256x128xbf16>
    tpu.vector_store %arg9[%c0_68, %c0_69, %c0_70], %115 {strides = array<i32>} : memref<1x256x128xbf16, #tpu.memory_space<vmem>>, vector<1x256x128xbf16>,
    return
  }
  func.func @transform_0(%arg0: i32) -> (i32, i32, i32) {
    %c0_i32 = arith.constant 0 : i32
    %c0_i32_0 = arith.constant 0 : i32
    %c0_i32_1 = arith.constant 0 : i32
    return %arg0, %c0_i32, %c0_i32_0 : i32, i32, i32
  }
  func.func @transform_1(%arg0: i32) -> (i32, i32) {
    %c0_i32 = arith.constant 0 : i32
    %c0_i32_0 = arith.constant 0 : i32
    %c0_i32_1 = arith.constant 0 : i32
    return %c0_i32, %c0_i32_0 : i32, i32
  }
  func.func @transform_2(%arg0: i32) -> (i32, i32) {
    %c0_i32 = arith.constant 0 : i32
    %c0_i32_0 = arith.constant 0 : i32
    %c0_i32_1 = arith.constant 0 : i32
    return %c0_i32, %c0_i32_0 : i32, i32
  }
  func.func @transform_3(%arg0: i32) -> (i32, i32) {
    %c0_i32 = arith.constant 0 : i32
    %c0_i32_0 = arith.constant 0 : i32
    %c0_i32_1 = arith.constant 0 : i32
    return %c0_i32, %c0_i32_0 : i32, i32
  }
  func.func @transform_4(%arg0: i32) -> (i32, i32) {
    %c0_i32 = arith.constant 0 : i32
    %c0_i32_0 = arith.constant 0 : i32
    %c0_i32_1 = arith.constant 0 : i32
    return %c0_i32, %c0_i32_0 : i32, i32
  }
  func.func @transform_5(%arg0: i32) -> (i32, i32) {
    %c0_i32 = arith.constant 0 : i32
    %c0_i32_0 = arith.constant 0 : i32
    %c0_i32_1 = arith.constant 0 : i32
    return %c0_i32, %c0_i32_0 : i32, i32
  }
  func.func @transform_6(%arg0: i32) -> (i32, i32) {
    %c0_i32 = arith.constant 0 : i32
    %c0_i32_0 = arith.constant 0 : i32
    %c0_i32_1 = arith.constant 0 : i32
    return %c0_i32, %c0_i32_0 : i32, i32
  }
  func.func @transform_7(%arg0: i32) -> (i32, i32) {
    %c0_i32 = arith.constant 0 : i32
    %c0_i32_0 = arith.constant 0 : i32
    %c0_i32_1 = arith.constant 0 : i32
    return %c0_i32, %c0_i32_0 : i32, i32
  }
  func.func @transform_8(%arg0: i32) -> (i32, i32, i32) {
    %c0_i32 = arith.constant 0 : i32
    %c0_i32_0 = arith.constant 0 : i32
    %c0_i32_1 = arith.constant 0 : i32
    return %arg0, %c0_i32, %c0_i32_0 : i32, i32, i32
  }
}

</mosaic_0001>

<bundles_post_ra>
// kernel: tpu_custom_call.1
= control target key start
LH: loop header
LB: loop body
LE: loop exit
PB: predicated region body
PF: predicated region fallthrough
CT: control target
= control target key end

     0   :  { %s8587_s0 = inlined_call_operand.hbm [shape: bf16[2,256,128], index: 0, kind: input, shape index: {}]   ;;  %s8588_s1 = inlined_call_operand.hbm [shape: bf16[128,128], index: 1, kind: input, shape index: {}]   ;;  %s8589_s2 = inlined_call_operand.hbm [shape: bf16[768,128], index: 2, kind: input, shape index: {}]   ;;  %s8590_s3 = inlined_call_operand.hbm [shape: bf16[384,128], index: 3, kind: input, shape index: {}]   ;;  %s8591_s4 = inlined_call_operand.hbm [shape: bf16[128,128], index: 4, kind: input, shape index: {}]   ;;  %s8592_s5 = inlined_call_operand.vmem [shape: f32[1,128], index: 5, kind: input, shape index: {}]   ;;  %s8593_s6 = inlined_call_operand.vmem [shape: f32[1,128], index: 6, kind: input, shape index: {}]   ;;  %s8594_s7 = inlined_call_operand.vmem [shape: f32[1,128], index: 7, kind: input, shape index: {}]   ;;  %s8595_s8 = inlined_call_operand.hbm [shape: bf16[2,256,128], index: 8, kind: output, shape index: {}]  }
   0x1   :  { %8617 = sst [smem:[#allocation91_spill]] %s8588_s1 }
   0x2   :  { %8618 = sst [smem:[#allocation92_spill]] %s8589_s2 }
   0x3   :  { %13 = vsyncpa [#allocation5], 0 }
   0x4   :  { %15 = vsyncpa [#allocation5 + $0x1], 0 }
   0x5   :  { %16 = vsyncpa [#allocation8], 0 }
   0x6   :  { %17 = vsyncpa [#allocation11], 0 }
   0x7   :  { %18 = vsyncpa [#allocation6], 0 }
   0x8   :  { %20 = vsyncpa [#allocation6 + $0x1], 0  ;;  %s6689_s27 = smov 0   ;;  %s6691_s28 = smov 0  }
   0x9   :  { %s6693_s29 = smov 0   ;;  %s6695_s30 = smov 0  }
   0xa LB: > { %s6710_s9 = sadd.s32 4294967295, %s6631_s30   ;;  %s5166_s10 = sadd.s32 4294967294, %s6631_s30   ;;  %s6631_s30 = sphi %s6695_s30, %s8947_s30   ;;  %s6627_s29 = sphi %s6693_s29, %s8946_s29   ;;  %s6623_s28 = sphi %s6691_s28, %s8945_s28   ;;  %s6619_s27 = sphi %s6689_s27, %s8944_s27  }
   0xb   : > { %p46_p0 = scmp.ne.s32.totalorder %s6623_s28, %s6619_s27  ;;  %p47_p1 = scmp.eq.s32.totalorder %s6710_s9, 0 }
   0xc   : > { %p217_p2 = scmp.eq.s32.totalorder %s6710_s9, 1  ;;  %p223_p3 = scmp.eq.s32.totalorder %s5166_s10, 1 }
   0xd   : > { %p6719_p4 = por %p47_p1, %p46_p0  ;;  %p5167_p5 = scmp.ge.s32.totalorder %s6631_s30, 1 }
   0xe   : > { %p6724_p6 = por %p223_p3, %p46_p0  ;;  %p230_p7 = scmp.lt.s32.totalorder %s6631_s30, 3 }
   0xf   : > { %s8621_s1 = sld [smem:[#allocation91_spill]]  ;;  %s6633_s17 = smov [#allocation7]  }
  0x10   : > { %p6732_p8 = pnand %p5167_p5, %p230_p7  ;;  %s243_s18 = sshll.u32 %s6633_s17, 4  ;;  %s244_s18 = int_to_ptr.vmem [resolvable:$true] %s243_s18 }
  0x11   : > { %s269_s22 = sshll.u32 %s8590_s3, 4  ;;  %s8596_s23 = smov 64   ;;  %s270_s22 = int_to_ptr.hbm [resolvable:$true] %s269_s22 }
  0x12   : > { %p6329_p9 = pneg %p6732_p8  ;;  %s8597_s24 = smov 4  }
  0x13   : > { %s6636_s25 = smov [#allocation10]   ;;  %s8624_s2 = sld [smem:[#allocation92_spill]] }
  0x14   : > { %p6740_p10 = pnand %p6329_p9, %p47_p1  ;;  %s271_s26 = sshll.u32 %s6636_s25, 4  ;;  %s272_s26 = int_to_ptr.vmem [resolvable:$true] %s271_s26 }
  0x15   : > { %s241_s15 = sshll.u32 %s8621_s1, 4  ;;  %s6637_s20 = smov [#allocation9]   ;;  %s242_s15 = int_to_ptr.hbm [resolvable:$true] %s241_s15 }
  0x16   : > { %6332 = dma.hbm_to_vmem [thread:$0]  (!%p6740_p10), %s242_s15, 1024, %s244_s18, [#allocation8], %s8596_s23, %s8596_s23, %s8597_s24  }
  0x17   : > { %6338 = dma.hbm_to_vmem [thread:$0]  (!%p6740_p10), %s270_s22, 3072, %s272_s26, [#allocation11], %s8596_s23, %s8596_s23, %s8597_s24  }
  0x18   : > { %s283_s18 = sshll.u32 %s8591_s4, 4  ;;  %s257_s21 = sshll.u32 %s6637_s20, 4  ;;  %s284_s18 = int_to_ptr.hbm [resolvable:$true] %s283_s18  ;;  %s258_s21 = int_to_ptr.vmem [resolvable:$true] %s257_s21 }
  0x19   : > { %s255_s14 = sshll.u32 %s8624_s2, 4  ;;  %s6638_s25 = smov [#allocation12]   ;;  %s256_s14 = int_to_ptr.hbm [resolvable:$true] %s255_s14 }
  0x1a   : > { %6335 = dma.hbm_to_vmem [thread:$0]  (!%p6740_p10), %s256_s14, 6144, %s258_s21, [#allocation8], %s8596_s23, %s8596_s23, %s8597_s24  }
  0x1b   : > { %s285_s22 = sshll.u32 %s6638_s25, 4  ;;  %s6775_s26 = sadd.s32 1, %s6631_s30   ;;  %s286_s22 = int_to_ptr.vmem [resolvable:$true] %s285_s22 }
  0x1c   : > { %6341 = dma.hbm_to_vmem [thread:$0]  (!%p6740_p10), %s284_s18, 1024, %s286_s22, [#allocation11], %s8596_s23, %s8596_s23, %s8597_s24  }
  0x1d   : > { %s33_s10 = sadd.s32 1, %s6627_s29  ;;  %s30_s13 = ssub.s32 %s6631_s30, %s6775_s26 }
  0x1e   : > { %p40_p12 = scmp.ne.s32.totalorder %s6627_s29, %s6623_s28  ;;  %p31_p13 = scmp.eq.s32.totalorder %s30_s13, 0 }
  0x1f   : > { %p41_p0 = scmp.eq.s32.totalorder %s6631_s30, 0  ;;  %p6354_p5 = scmp.lt.s32.totalorder %s6631_s30, 2 }
  0x20   : > { %p6785_p3 = por %p217_p2, %p40_p12  ;;  %s308_s19 = sand.u32 1, %s6627_s29  }
  0x21   : > { %s6791_s15 = scalar_select %p31_p13, %s6627_s29, %s33_s10  }
  0x22   : > { %p42_p7 = por %p41_p0, %p40_p12  ;;  %s5173_s17 = sshll.u32 %s308_s19, 7 }
  0x23   : > { %s5988_s18 = sshll.u32 %s6631_s30, 7  ;;  %s312_s22 = scalar_lea.vmem [#allocation4], %s5173_s17 }
  0x24   : > { %s317_s25 = scalar_lea.hbm %s8587_s0, %s5988_s18  ;;  %s320_s23 = sshll.u32 %s312_s22, 4  ;;  %s321_s23 = int_to_ptr.vmem [resolvable:$true] %s320_s23 }
  0x25   : > { %s318_s13 = sshll.u32 %s317_s25, 4  ;;  %p6798_p2 = pnand %p6354_p5, %p42_p7  ;;  %s319_s13 = int_to_ptr.hbm [resolvable:$true] %s318_s13 }
  0x26   : > { %s309_s10 = scalar_lea.sflag [#allocation5], %s308_s19  ;;  %s6527_s1 = sshra.s32 %s319_s13, 4  ;;  %s6528_s1 = int_to_ptr.hbm [resolvable:$true] %s6527_s1 }
  0x27   : > { %s6529_s2 = scalar_lea.hbm %s6528_s1, 128  ;;  %p6531_p10 = pneg %p6798_p2 }
  0x28   : > { %p6530_p9 = scmp.ne.s32.totalorder %s6528_s1, %s6529_s2  ;;  %s6534_s20 = scalar_lea.hbm %s8587_s0, 256 }
  0x29   : > { %p6535_p0 = scmp.lt.s32.totalorder %s6528_s1, %s8587_s0  ;;  %p6536_p5 = scmp.lt.s32.totalorder %s6534_s20, %s6529_s2 }
  0x2a   : > { %p6532_p12 = pnand %p6531_p10, %p6530_p9 }
  0x2b   : > { %p6537_p7 = por %p6536_p5, %p6535_p0 }
  0x2c   : > { %p6533_p13 = pneg %p6532_p12 }
  0x2e   : > { %p6538_p11 = pnand %p6537_p7, %p6533_p13 }
  0x30   : > { %6541 = shalt.err (!%p6538_p11)
}
  0x31   : > { %s8627_s19 = smov 4   ;;  %s8628_s22 = smov 64  }
  0x32   : > { %6345 = dma.hbm_to_vmem [thread:$0]  (!%p6798_p2), %s319_s13, 2048, %s321_s23, %s309_s10, %s8628_s22, %s8628_s22, %s8627_s19  }
  0x33   : > { %332 = sbr.rel (%p6732_p8) target bundleno = 1359 (0x54f), region = 52 }
  0x38   : > { %s6818_s18 = sand.u32 1, %s6623_s28  }
  0x39   : > { %s5177_s1 = sshll.u32 %s6818_s18, 7  ;;  %s335_s2 = scalar_lea.sflag [#allocation5], %s6818_s18 }
  0x3a   : > { %s6824_s17 = scalar_lea.vmem [#allocation4], %s5177_s1 }
  0x3b   : > { %6602 = dma.done.wait (%p6719_p4), %s335_s2, 2048  }
  0x3c   : > { %6604 = vsyncadd (%p6719_p4), %s335_s2, 4294965248 }
  0x3d   : > { %6606 = dma.done.wait (%p47_p1), [#allocation8], 7168  }
  0x3e   : > { %6608 = vsyncadd (%p47_p1), [#allocation8], 4294960128 }
  0x3f   : > { %6610 = dma.done.wait (%p47_p1), [#allocation11], 4096  }
  0x40   : > { %6612 = vsyncadd (%p47_p1), [#allocation11], 4294963200  ;;  %v6012_v0 = vld [vmem:[#allocation7 + $0x38] sm:$0xff]  ;;  %v6011_v1 = vld [vmem:[#allocation7 + $0x30] sm:$0xff]  ;;  %v8606_v27 = vmov 0.0|0.0   ;;  %v6640_v28 = vmov 0.0   ;;  %v746_v34 = vlaneseq }
  0x41   : > { %593 = vmatpush.bf16.msra.mxu0 %v6012_v0  ;;  %6285 = vmatpush.bf16.msra.mxu3 %v6012_v0  ;;  %v6010_v2 = vld [vmem:[#allocation7 + $0x28] sm:$0xff]  ;;  %v6009_v3 = vld [vmem:[#allocation7 + $0x20] sm:$0xff]  ;;  %v6008_v4 = vld [vmem:[#allocation7 + $0x18] sm:$0xff]  ;;  %v6850_v29 = vrot.slane %v6640_v28, 1  ;;  %vm6641_vm0 = vmmov 1   ;;  %v6872_v45 = vrot.slane %v6640_v28, 7 }
  0x42   : > { %v6007_v5 = vld [vmem:[#allocation7 + $0x10] sm:$0xff]  ;;  %v6006_v6 = vld [vmem:[#allocation7 + $0x8] sm:$0xff]  ;;  %v6005_v7 = vld [vmem:[#allocation7] sm:$0xff]  ;;  %v6861_v35 = vshrl.u32 %v746_v34, 7  ;;  %s8453_s25 = scalar_lea.vmem [#allocation13], %s5177_s1  ;;  %s6189_s19 = sshll.u32 %s6710_s9, 7 }
  0x43   : > { %v5989_v8 = vld [vmem:[%s6824_s17] sm:$0xff]  ;;  %v5990_v10 = vld [vmem:[%s6824_s17 + $0x8] sm:$0xff]  ;;  %v5991_v12 = vld [vmem:[%s6824_s17 + $0x10] sm:$0xff]  ;;  %v1421_v30 = vpack.c.bf16 %v6850_v29, %v6850_v29  ;;  %s5051_s2 = scalar_lea.hbm %s8595_s8, %s6189_s19  ;;  %s5052_s11 = sshll.u32 %s8453_s25, 4  ;;  %s5053_s11 = int_to_ptr.vmem [resolvable:$true] %s5052_s11 }
  0x44   : > { %v6001_v9 = vld [vmem:[%s6824_s17 + $0x60] sm:$0xff]  ;;  %v6002_v11 = vld [vmem:[%s6824_s17 + $0x68] sm:$0xff]  ;;  %v6003_v13 = vld [vmem:[%s6824_s17 + $0x70] sm:$0xff]  ;;  %v749_v36 = vadd.s32 16, %v6861_v35  ;;  %v748_v37 = vadd.s32 8, %v6861_v35  ;;  %vm8599_vm4 = vcmp.lt.s32.totalorder %v6861_v35, 1 }
  0x45   : > { %594 = vmatpush.bf16.msra.mxu0 %v6011_v1  ;;  %6286 = vmatpush.bf16.msra.mxu3 %v6011_v1  ;;  %v5992_v14 = vld [vmem:[%s6824_s17 + $0x18] sm:$0xff]  ;;  %v5993_v17 = vld [vmem:[%s6824_s17 + $0x20] sm:$0xff]  ;;  %v6163_v18 = vld [vmem:[#allocation10 + $0x30] sm:$0xff]  ;;  %vm8598_vm5 = vcmp.lt.s32.totalorder %v6861_v35, 7  ;;  %v750_v61 = vadd.s32 24, %v6861_v35  ;;  %v751_v62 = vadd.s32 32, %v6861_v35 }
  0x46   : > { %v6004_v15 = vld [vmem:[%s6824_s17 + $0x78] sm:$0xff]  ;;  %v6162_v19 = vld [vmem:[#allocation10 + $0x28] sm:$0xff]  ;;  %v6161_v20 = vld [vmem:[#allocation10 + $0x20] sm:$0xff]  ;;  %v797_v39 = vand.u32 15, %v749_v36  ;;  %v790_v42 = vand.u32 15, %v748_v37  ;;  %s5054_s16 = sshll.u32 %s5051_s2, 4  ;;  %s5055_s16 = int_to_ptr.hbm [resolvable:$true] %s5054_s16 }
  0x47   : > { %v6164_v16 = vld [vmem:[#allocation10 + $0x38] sm:$0xff]  ;;  %v5994_v22 = vld [vmem:[%s6824_s17 + $0x28] sm:$0xff]  ;;  %v6159_v23 = vld [vmem:[#allocation10 + $0x10] sm:$0xff]  ;;  %s5040_s9 = scalar_lea.sflag [#allocation6], %s6818_s18  ;;  %s6577_s10 = scalar_lea.hbm %s8595_s8, 256 }
  0x48   : > { %2781 = vmatpush.bf16.msra.mxu1 %v6164_v16  ;;  %v6160_v21 = vld [vmem:[#allocation10 + $0x18] sm:$0xff]  ;;  %v6158_v24 = vld [vmem:[#allocation10 + $0x8] sm:$0xff]  ;;  %v6157_v25 = vld [vmem:[#allocation10] sm:$0xff]  ;;  %vm1165_vm2 = vcmp.gt.s32.totalorder %v797_v39, 0  ;;  %vm1196_vm3 = vcmp.lt.s32.totalorder %v790_v42, 15  ;;  %v772_v42 = vadd.s32 200, %v6861_v35 }
  0x49   : > { %595 = vmatpush.bf16.msra.mxu0 %v6010_v2  ;;  %6287 = vmatpush.bf16.msra.mxu3 %v6010_v2  ;;  %v5995_v26 = vld [vmem:[%s6824_s17 + $0x30] sm:$0xff]  ;;  %vm6854_vm1 = vmpackc.low %vm6641_vm0, %vm6641_vm0  ;;  %v5996_v33 = vld [vmem:[%s6824_s17 + $0x38] sm:$0xff] }
  0x4a   : > { %v1709_v32 = vsel %vm6854_vm1, %v1421_v30, 0  ;;  %v6868_v38 = vld [vmem:[%s8592_s5] ss:$0 sm:$0xff]  ;;  %vm6880_vm6 = vmpackc.low %vm1165_vm2, %vm1165_vm2  ;;  %v6115_v37 = vld [vmem:[#allocation9 + $0x30] sm:$0xff] }
  0x4b   : > { %1741 = vst [vmem:[#allocation3 + $0x4] sm:$0xf] %v1709_v32  ;;  %v5997_v40 = vld [vmem:[%s6824_s17 + $0x40] sm:$0xff]  ;;  %vm6892_vm7 = vmpackc.low %vm1196_vm3, %vm1196_vm3  ;;  %v6110_v48 = vld [vmem:[#allocation9 + $0x8] sm:$0xff] }
  0x4c   : > { %2782 = vmatpush.bf16.msra.mxu1 %v6163_v18  ;;  %2475 = vst [vmem:[#allocation3 + $0x2e4] sm:$0xf] %v1709_v32 }
  0x4d   : > { %596 = vmatpush.bf16.msra.mxu0 %v6009_v3  ;;  %6288 = vmatpush.bf16.msra.mxu3 %v6009_v3 }
  0x50   : > { %2783 = vmatpush.bf16.msra.mxu1 %v6162_v19 }
  0x51   : > { %597 = vmatpush.bf16.msra.mxu0 %v6008_v4  ;;  %6289 = vmatpush.bf16.msra.mxu3 %v6008_v4 }
  0x54   : > { %2784 = vmatpush.bf16.msra.mxu1 %v6161_v20 }
  0x55   : > { %598 = vmatpush.bf16.msra.mxu0 %v6007_v5  ;;  %6290 = vmatpush.bf16.msra.mxu3 %v6007_v5 }
  0x58   : > { %2785 = vmatpush.bf16.msra.mxu1 %v6160_v21 }
  0x59   : > { %599 = vmatpush.bf16.msra.mxu0 %v6006_v6  ;;  %6291 = vmatpush.bf16.msra.mxu3 %v6006_v6 }
  0x5c   : > { %2786 = vmatpush.bf16.msra.mxu1 %v6159_v23 }
  0x5d   : > { %600 = vmatpush.bf16.msra.mxu0 %v6005_v7  ;;  %6292 = vmatpush.bf16.msra.mxu3 %v6005_v7  ;;  %v778_v7 = vadd.s32 248, %v6861_v35 }
  0x60   : > { %601 = vmatmul.bf16.vlgmr.msra.gmra.mxu0 %v5989_v8  ;;  %661 = vmatmul.bf16.vlgmr.msra.gmra.mxu3 %v6001_v9  ;;  %v5998_v8 = vld [vmem:[%s6824_s17 + $0x48] sm:$0xff] }
  0x61   : > { %6293 = vmatpush.bf16.msrb.mxu3 %v6164_v16  ;;  %2787 = vmatpush.bf16.msra.mxu1 %v6158_v24 }
  0x65   : > { %6294 = vmatpush.bf16.msrb.mxu3 %v6163_v18  ;;  %2788 = vmatpush.bf16.msra.mxu1 %v6157_v25 }
  0x68   : > { %2789 = vmatmul.bf16.vlgmr.msra.gmra.mxu1 %v8606_v27 }
  0x69   : > { %6295 = vmatpush.bf16.msrb.mxu3 %v6162_v19 }
  0x6d   : > { %6296 = vmatpush.bf16.msrb.mxu3 %v6161_v20  ;;  %v771_v20 = vadd.s32 192, %v6861_v35 }
  0x70   : > { %606 = vmatmul.bf16.gmra.mxu0 %v5990_v10  ;;  %666 = vmatmul.bf16.gmra.mxu3 %v6002_v11 }
  0x71   : > { %6297 = vmatpush.bf16.msrb.mxu3 %v6160_v21 }
  0x75   : > { %6298 = vmatpush.bf16.msrb.mxu3 %v6159_v23 }
  0x79   : > { %6299 = vmatpush.bf16.msrb.mxu3 %v6158_v24 }
  0x7d   : > { %6300 = vmatpush.bf16.msrb.mxu3 %v6157_v25  ;;  %v783_v25 = vand.u32 15, %v6861_v35 }
  0x7f   : > { %vm6996_vm12 = vcmp.gt.s32.totalorder %v783_v25, 0 }
  0x80   : > { %611 = vmatmul.bf16.gmra.mxu0 %v5991_v12  ;;  %671 = vmatmul.bf16.gmra.mxu3 %v6003_v13  ;;  %v804_v12 = vand.u32 15, %v750_v61  ;;  %v811_v13 = vand.u32 15, %v751_v62  ;;  %vm7019_vm15 = vmpackc.low %vm6996_vm12, %vm6996_vm12 }
  0x82   : > { %vm6933_vm8 = vcmp.gt.s32.totalorder %v811_v13, 0  ;;  %vm6937_vm9 = vcmp.lt.s32.totalorder %v804_v12, 15 }
  0x83   : > { %vm6975_vm10 = vmpackc.low %vm6933_vm8, %vm6933_vm8 }
  0x84   : > { %vm6982_vm11 = vmpackc.low %vm6937_vm9, %vm6937_vm9 }
  0x90   : > { %616 = vmatmul.bf16.gmra.mxu0 %v5992_v14  ;;  %676 = vmatmul.bf16.gmra.mxu3 %v6004_v15 }
  0xa0   : > { %621 = vmatmul.bf16.gmra.mxu0 %v5993_v17  ;;  %v6116_v17 = vld [vmem:[#allocation9 + $0x38] sm:$0xff] }
  0xa1   : > { %3638 = vmatpush.bf16.msra.mxu2 %v6116_v17  ;;  %6301 = vmatpush.bf16.msra.mxu3 %v6116_v17 }
  0xa5   : > { %3639 = vmatpush.bf16.msra.mxu2 %v6115_v37  ;;  %6302 = vmatpush.bf16.msra.mxu3 %v6115_v37 }
  0xb0   : > { %626 = vmatmul.bf16.gmra.mxu0 %v5994_v22 }
  0xc0   : > { %631 = vmatmul.bf16.gmra.mxu0 %v5995_v26  ;;  %v1000_v26 = vand.u32 15, %v778_v7 }
  0xc2   : > { %vm7000_vm13 = vcmp.lt.s32.totalorder %v1000_v26, 15 }
  0xc3   : > { %vm7030_vm0 = vmpackc.low %vm7000_vm13, %vm7000_vm13 }
  0xd0   : > { %636 = vmatmul.bf16.gmra.mxu0 %v5996_v33 }
  0xdd   : > { %v602_v41 = vpop.f32.mrf.mxu0 }
  0xde   : > { %v603_v43 = vadd.f32 %v6868_v38, %v602_v41 }
  0xe0   : > { %v682_v44 = vmax.f32 %v603_v43, 0.0  ;;  %641 = vmatmul.bf16.gmra.mxu0 %v5997_v40  ;;  %v773_v43 = vadd.s32 208, %v6861_v35 }
  0xe2   : > { %v6876_v46 = vrot.slane %v682_v44, 7  ;;  %v6878_v47 = vrot.slane %v682_v44, 1 }
  0xe3   : > { %v662_v49 = vpop.f32.mrf.mxu3 }
  0xe4   : > { %v1321_v50 = vsel %vm8599_vm4, %v6872_v45, %v6876_v46  ;;  %v1418_v51 = vsel %vm8598_vm5, %v6850_v29, %v6878_v47  ;;  %v663_v56 = vadd.f32 %v6868_v38, %v662_v49 }
  0xe5   : > { %v1326_v53 = vpack.c.bf16 %v1321_v50, %v1321_v50  ;;  %v1422_v54 = vpack.c.bf16 %v1418_v51, %v1418_v51  ;;  %v604_v55 = vpop.f32.mrf.mxu0  ;;  %v770_v50 = vadd.s32 184, %v6861_v35  ;;  %v951_v51 = vand.u32 15, %v771_v20 }
  0xe6   : > { %v605_v57 = vadd.f32 %v6868_v38, %v604_v55  ;;  %v6904_v63 = vmax.f32 %v663_v56, 0.0 }
  0xe7   : > { %v1551_v58 = vsel %vm6880_vm6, %v1326_v53, 0  ;;  %v1710_v59 = vsel %vm6892_vm7, %v1422_v54, 0  ;;  %vm7006_vm14 = vcmp.gt.s32.totalorder %v951_v51, 0  ;;  %v8659_v51 = vmov 0 }
  0xe8   : > { %1583 = vst [vmem:[#allocation3 + $0x30] sm:$0xf] %v1551_v58  ;;  %v683_v60 = vmax.f32 %v605_v57, 0.0  ;;  %v1285_v14 = vrot.slane %v6904_v63, 7  ;;  %v1382_v21 = vrot.slane %v6904_v63, 1  ;;  %vm7105_vm13 = vmpackc.low %vm7006_vm14, %vm7006_vm14 }
  0xe9   : > { %1742 = vst [vmem:[#allocation3 + $0x1c] sm:$0xf] %v1710_v59 }
  0xea   : > { %v1262_v0 = vrot.slane %v683_v60, 7  ;;  %v1359_v1 = vrot.slane %v683_v60, 1  ;;  %v6906_v2 = vpack.c.bf16 %v683_v60, %v682_v44 }
  0xeb   : > { %v664_v3 = vpop.f32.mrf.mxu3 }
  0xec   : > { %v1320_v4 = vsel %vm8599_vm4, %v6876_v46, %v1262_v0  ;;  %v1417_v5 = vsel %vm8598_vm5, %v6878_v47, %v1359_v1  ;;  %v665_v6 = vadd.f32 %v6868_v38, %v664_v3  ;;  %2794 = vmatmul.bf16.gmra.mxu1 %v6906_v2  ;;  %v8665_v3 = vmov 0 }
  0xed   : > { %v1327_v9 = vpack.c.bf16 %v1320_v4, %v1320_v4  ;;  %v1423_v10 = vpack.c.bf16 %v1417_v5, %v1417_v5  ;;  %v607_v11 = vpop.f32.mrf.mxu0  ;;  %v958_v5 = vand.u32 15, %v772_v42  ;;  %v5999_v42 = vld [vmem:[%s6824_s17 + $0x50] sm:$0xff] }
  0xee   : > { %v6919_v15 = vmax.f32 %v665_v6, 0.0  ;;  %v608_v16 = vadd.f32 %v6868_v38, %v607_v11  ;;  %v965_v6 = vand.u32 15, %v773_v43 }
  0xef   : > { %v1552_v18 = vsel %vm6854_vm1, %v1327_v9, 0  ;;  %v1711_v19 = vsel %vm6854_vm1, %v1423_v10, 0  ;;  %vm7040_vm3 = vcmp.lt.s32.totalorder %v958_v5, 15  ;;  %v6113_v5 = vld [vmem:[#allocation9 + $0x20] sm:$0xff] }
  0xf0   : > { %1584 = vst [vmem:[#allocation3 + $0x48] sm:$0xf] %v1552_v18  ;;  %v1286_v22 = vrot.slane %v6919_v15, 7  ;;  %v1383_v23 = vrot.slane %v6919_v15, 1  ;;  %v6930_v24 = vmax.f32 %v608_v16, 0.0  ;;  %646 = vmatmul.bf16.gmra.mxu0 %v5998_v8  ;;  %v944_v8 = vand.u32 15, %v770_v50  ;;  %vm7094_vm12 = vmpackc.low %vm7040_vm3, %vm7040_vm3 }
  0xf1   : > { %1743 = vst [vmem:[#allocation3 + $0x34] sm:$0xf] %v1711_v19  ;;  %vm7036_vm2 = vcmp.gt.s32.totalorder %v965_v6, 0 }
  0xf2   : > { %2030 = vst [vmem:[#allocation3 + $0x20] sm:$0xf] %v1552_v18  ;;  %v1296_v32 = vsel %vm8599_vm4, %v1285_v14, %v1286_v22  ;;  %v1393_v33 = vsel %vm8598_vm5, %v1382_v21, %v1383_v23  ;;  %v6954_v34 = vrot.slane %v6930_v24, 7  ;;  %v6957_v36 = vrot.slane %v6930_v24, 1  ;;  %vm7084_vm9 = vmpackc.low %vm7036_vm2, %vm7036_vm2 }
  0xf3   : > { %2093 = vst [vmem:[#allocation3 + $0xc] sm:$0xf] %v1711_v19  ;;  %v1351_v39 = vpack.c.bf16 %v1296_v32, %v1296_v32  ;;  %v1447_v40 = vpack.c.bf16 %v1393_v33, %v1393_v33  ;;  %v667_v41 = vpop.f32.mrf.mxu3  ;;  %vm7077_vm8 = vcmp.lt.s32.totalorder %v944_v8, 15  ;;  %v8660_v51 = vsel %vm7084_vm9, 4294967295, %v8659_v51 }
  0xf4   : > { %v1319_v44 = vsel %vm8599_vm4, %v1262_v0, %v6954_v34  ;;  %v1416_v49 = vsel %vm8598_vm5, %v1359_v1, %v6957_v36  ;;  %v2220_v60 = vsel %vm8599_vm4, %v6872_v45, %v6954_v34  ;;  %v2316_v61 = vsel %vm8598_vm5, %v6850_v29, %v6957_v36  ;;  %v6114_v1 = vld [vmem:[#allocation9 + $0x28] sm:$0xff]  ;;  %vm7119_vm2 = vmpackc.low %vm7077_vm8, %vm7077_vm8 }
  0xf5   : > { %v1576_v53 = vsel %vm6854_vm1, %v1351_v39, 0  ;;  %v1735_v54 = vsel %vm6854_vm1, %v1447_v40, 0  ;;  %v1328_v55 = vpack.c.bf16 %v1319_v44, %v1319_v44  ;;  %v1424_v56 = vpack.c.bf16 %v1416_v49, %v1416_v49  ;;  %v609_v58 = vpop.f32.mrf.mxu0  ;;  %3640 = vmatpush.bf16.msra.mxu2 %v6114_v1  ;;  %6303 = vmatpush.bf16.msra.mxu3 %v6114_v1 }
  0xf6   : > { %1608 = vst [vmem:[#allocation3 + $0x288] sm:$0xf] %v1576_v53  ;;  %v668_v62 = vadd.f32 %v6868_v38, %v667_v41  ;;  %v610_v0 = vadd.f32 %v6868_v38, %v609_v58  ;;  %v2221_v13 = vpack.c.bf16 %v2220_v60, %v2220_v60  ;;  %v2348_v16 = vpack.c.bf16 %v2316_v61, %v2316_v61 }
  0xf7   : > { %1767 = vst [vmem:[#allocation3 + $0x274] sm:$0xf] %v1735_v54  ;;  %v1553_v11 = vsel %vm6975_vm10, %v1328_v55, 0  ;;  %v1712_v12 = vsel %vm6982_vm11, %v1424_v56, 0  ;;  %v1999_v28 = vsel %vm6880_vm6, %v1328_v55, 0  ;;  %v2062_v39 = vsel %vm6892_vm7, %v1424_v56, 0 }
  0xf8   : > { %2054 = vst [vmem:[#allocation3 + $0x260] sm:$0xf] %v1576_v53  ;;  %v7004_v7 = vmax.f32 %v668_v62, 0.0  ;;  %v7010_v10 = vmax.f32 %v610_v0, 0.0  ;;  %v2349_v43 = vsel %vm7019_vm15, %v2221_v13, 0  ;;  %v753_v58 = vadd.s32 48, %v6861_v35 }
  0xf9   : > { %2117 = vst [vmem:[#allocation3 + $0x24c] sm:$0xf] %v1735_v54  ;;  %v8663_v60 = vmov 0  ;;  %v8666_v3 = vsel %vm7119_vm2, 4294967295, %v8665_v3  ;;  %3641 = vmatpush.bf16.msra.mxu2 %v6113_v5  ;;  %6304 = vmatpush.bf16.msra.mxu3 %v6113_v5 }
  0xfa   : > { %2404 = vst [vmem:[#allocation3 + $0x238] sm:$0xf] %v1576_v53  ;;  %v1287_v18 = vrot.slane %v7004_v7, 7  ;;  %v1384_v19 = vrot.slane %v7004_v7, 1  ;;  %v1264_v20 = vrot.slane %v7010_v10, 7  ;;  %v1361_v25 = vrot.slane %v7010_v10, 1 }
  0xfb   : > { %2467 = vst [vmem:[#allocation3 + $0x224] sm:$0xf] %v1735_v54  ;;  %v669_v33 = vpop.f32.mrf.mxu3  ;;  %v7046_v37 = vpack.c.bf16 %v7010_v10, %v6930_v24  ;;  %v8661_v54 = vmov 0  ;;  %v8664_v60 = vsel %vm7105_vm13, 4294967295, %v8663_v60  ;;  %v825_v13 = vand.u32 15, %v753_v58 }
  0xfc   : > { %1585 = vst [vmem:[#allocation3 + $0x60] sm:$0xf] %v1553_v11  ;;  %v1295_v40 = vsel %vm8599_vm4, %v1286_v22, %v1287_v18  ;;  %v1392_v41 = vsel %vm8598_vm5, %v1383_v23, %v1384_v19  ;;  %v1318_v24 = vsel %vm8599_vm4, %v6954_v34, %v1264_v20  ;;  %v1415_v22 = vsel %vm8598_vm5, %v6957_v36, %v1361_v25 }
  0xfd   : > { %1744 = vst [vmem:[#allocation3 + $0x4c] sm:$0xf] %v1712_v12  ;;  %v7066_v44 = vpack.c.bf16 %v1295_v40, %v1295_v40  ;;  %v7068_v49 = vpack.c.bf16 %v1392_v41, %v1392_v41  ;;  %v612_v23 = vpop.f32.mrf.mxu0  ;;  %v2444_v34 = vsel %vm7030_vm0, %v2348_v16, 0  ;;  %v670_v53 = vadd.f32 %v6868_v38, %v669_v33  ;;  %2799 = vmatmul.bf16.gmra.mxu1 %v7046_v37  ;;  %v6132_v40 = vld [vmem:[#allocation9 + $0xb8] sm:$0xff] }
  0xfe   : > { %2031 = vst [vmem:[#allocation3 + $0x38] sm:$0xf] %v1999_v28  ;;  %v613_v36 = vadd.f32 %v6868_v38, %v612_v23  ;;  %v8662_v54 = vsel %vm7094_vm12, 4294967295, %v8661_v54  ;;  %v1329_v56 = vpack.c.bf16 %v1318_v24, %v1318_v24  ;;  %v1425_v62 = vpack.c.bf16 %v1415_v22, %v1415_v22  ;;  %3816 = vmatpush.bf16.msrb.mxu0 %v6132_v40 }
  0xff   : > { %2094 = vst [vmem:[#allocation3 + $0x24] sm:$0xf] %v2062_v39  ;;  %v2023_v55 = vsel %vm7084_vm9, %v7066_v44, 0  ;;  %v2086_v61 = vsel %vm7094_vm12, %v7068_v49, 0  ;;  %v7112_v0 = vmax.f32 %v670_v53, 0.0  ;;  %v2373_v4 = vsel %vm7105_vm13, %v7066_v44, 0 }
 0x100   : > { %2381 = vst [vmem:[#allocation3 + $0x10] sm:$0xf] %v2349_v43  ;;  %v7114_v1 = vmax.f32 %v613_v36, 0.0  ;;  %651 = vmatmul.bf16.gmra.mxu0 %v5999_v42  ;;  %v2436_v6 = vsel %vm7119_vm2, %v7068_v49, 0  ;;  %v752_v11 = vadd.s32 40, %v6861_v35  ;;  %v1554_v12 = vsel %vm6854_vm1, %v1329_v56, 0 }
 0x101   : > { %2476 = vst [vmem:[#allocation3 + $0x2fc] sm:$0xf] %v2444_v34  ;;  %v1288_v8 = vrot.slane %v7112_v0, 7  ;;  %v1385_v9 = vrot.slane %v7112_v0, 1  ;;  %v1713_v28 = vsel %vm6854_vm1, %v1425_v62, 0  ;;  %v6112_v39 = vld [vmem:[#allocation9 + $0x18] sm:$0xff] }
 0x102   : > { %2055 = vst [vmem:[#allocation3 + $0x278] sm:$0xf] %v2023_v55  ;;  %v1265_v33 = vrot.slane %v7114_v1, 7  ;;  %v1362_v24 = vrot.slane %v7114_v1, 1  ;;  %v818_v22 = vand.u32 15, %v752_v11  ;;  %3642 = vmatpush.bf16.msra.mxu2 %v6112_v39  ;;  %6305 = vmatpush.bf16.msra.mxu3 %v6112_v39  ;;  %vm7144_vm14 = vcmp.gt.s32.totalorder %v825_v13, 0 }
 0x103   : > { %2118 = vst [vmem:[#allocation3 + $0x264] sm:$0xf] %v2086_v61  ;;  %v672_v16 = vpop.f32.mrf.mxu3  ;;  %v1294_v30 = vsel %vm8599_vm4, %v1287_v18, %v1288_v8  ;;  %v1391_v32 = vsel %vm8598_vm5, %v1384_v19, %v1385_v9  ;;  %vm7169_vm8 = vmpackc.low %vm7144_vm14, %vm7144_vm14  ;;  %v6000_v11 = vld [vmem:[%s6824_s17 + $0x58] sm:$0xff]  ;;  %vm8673_vm14 = vcmp.lt.s32.totalorder %v6861_v35, 7  ;;  %vm8688_vm13 = vcmp.lt.s32.totalorder %v6861_v35, 1 }
 0x104   : > { %2405 = vst [vmem:[#allocation3 + $0x250] sm:$0xf] %v2373_v4  ;;  %v1353_v41 = vpack.c.bf16 %v1294_v30, %v1294_v30  ;;  %v1449_v43 = vpack.c.bf16 %v1391_v32, %v1391_v32  ;;  %v673_v23 = vadd.f32 %v6868_v38, %v672_v16  ;;  %v1317_v19 = vsel %vm8599_vm4, %v1264_v20, %v1265_v33 }
 0x105   : > { %2468 = vst [vmem:[#allocation3 + $0x23c] sm:$0xf] %v2436_v6  ;;  %v614_v42 = vpop.f32.mrf.mxu0  ;;  %v1414_v53 = vsel %vm8598_vm5, %v1361_v25, %v1362_v24  ;;  %vm1200_vm3 = vcmp.lt.s32.totalorder %v818_v22, 15  ;;  %v1330_v20 = vpack.c.bf16 %v1317_v19, %v1317_v19  ;;  %v6131_v19 = vld [vmem:[#allocation9 + $0xb0] sm:$0xff] }
 0x106   : > { %1586 = vst [vmem:[#allocation3 + $0x78] sm:$0xf] %v1554_v12  ;;  %v615_v34 = vadd.f32 %v6868_v38, %v614_v42  ;;  %v1578_v50 = vsel %vm6854_vm1, %v1353_v41, 0  ;;  %v7158_v36 = vmax.f32 %v673_v23, 0.0  ;;  %v1737_v56 = vsel %vm6854_vm1, %v1449_v43, 0  ;;  %vm7180_vm5 = vmpackc.low %vm1200_vm3, %vm1200_vm3  ;;  %v6111_v23 = vld [vmem:[#allocation9 + $0x10] sm:$0xff]  ;;  %3817 = vmatpush.bf16.msrb.mxu0 %v6131_v19 }
 0x107   : > { %1745 = vst [vmem:[#allocation3 + $0x64] sm:$0xf] %v1713_v28  ;;  %v1426_v62 = vpack.c.bf16 %v1414_v53, %v1414_v53  ;;  %v2001_v40 = vsel %vm6975_vm10, %v1330_v20, 0  ;;  %vm8674_vm3 = vmmov %vm8673_vm14  ;;  %3643 = vmatpush.bf16.msra.mxu2 %v6111_v23  ;;  %6306 = vmatpush.bf16.msra.mxu3 %v6111_v23 }
 0x108   : > { %2032 = vst [vmem:[#allocation3 + $0x50] sm:$0xf] %v1554_v12  ;;  %v7160_v55 = vmax.f32 %v615_v34, 0.0  ;;  %v1289_v58 = vrot.slane %v7158_v36, 7  ;;  %v1386_v61 = vrot.slane %v7158_v36, 1  ;;  %v2351_v34 = vsel %vm6880_vm6, %v1330_v20, 0  ;;  %vm8675_vm6 = vmmov %vm8674_vm3 }
 0x109   : > { %2095 = vst [vmem:[#allocation3 + $0x3c] sm:$0xf] %v1713_v28  ;;  %v1714_v39 = vsel %vm7180_vm5, %v1426_v62, 0  ;;  %v2064_v42 = vsel %vm6982_vm11, %v1426_v62, 0 }
 0x10a   : > { %2382 = vst [vmem:[#allocation3 + $0x28] sm:$0xf] %v1554_v12  ;;  %v1266_v4 = vrot.slane %v7160_v55, 7  ;;  %v7177_v6 = vpack.c.bf16 %v7160_v55, %v7114_v1  ;;  %v1363_v13 = vrot.slane %v7160_v55, 1  ;;  %v1293_v16 = vsel %vm8599_vm4, %v1288_v8, %v1289_v58 }
 0x10b   : > { %2445 = vst [vmem:[#allocation3 + $0x14] sm:$0xf] %v1713_v28  ;;  %v674_v10 = vpop.f32.mrf.mxu3  ;;  %v1555_v28 = vsel %vm7169_vm8, %v1330_v20, 0  ;;  %v1390_v1 = vsel %vm8673_vm14, %v1385_v9, %v1386_v61  ;;  %v7202_v9 = vpack.c.bf16 %v1293_v16, %v1293_v16  ;;  %v6130_v20 = vld [vmem:[#allocation9 + $0xa8] sm:$0xff]  ;;  %3644 = vmatpush.bf16.msra.mxu2 %v6110_v48  ;;  %6307 = vmatpush.bf16.msra.mxu3 %v6110_v48  ;;  %v777_v48 = vadd.s32 240, %v6861_v35 }
 0x10c   : > { %1610 = vst [vmem:[#allocation3 + $0x2b8] sm:$0xf] %v1578_v50  ;;  %v675_v5 = vadd.f32 %v6868_v38, %v674_v10  ;;  %v1316_v8 = vsel %vm8599_vm4, %v1265_v33, %v1266_v4  ;;  %v1413_v41 = vsel %vm8674_vm3, %v1362_v24, %v1363_v13  ;;  %v7210_v43 = vpack.c.bf16 %v1390_v1, %v1390_v1 }
 0x10d   : > { %1769 = vst [vmem:[#allocation3 + $0x2a4] sm:$0xf] %v1737_v56  ;;  %2804 = vmatmul.bf16.gmra.mxu1 %v7177_v6  ;;  %v617_v32 = vpop.f32.mrf.mxu0  ;;  %v1331_v18 = vpack.c.bf16 %v1316_v8, %v1316_v8  ;;  %v2414_v24 = vsel %vm6892_vm7, %v1426_v62, 0  ;;  %v755_v10 = vadd.s32 64, %v6861_v35  ;;  %vm8676_vm7 = vmmov %vm8674_vm3  ;;  %3818 = vmatpush.bf16.msrb.mxu0 %v6130_v20 }
 0x10e   : > { %2056 = vst [vmem:[#allocation3 + $0x290] sm:$0xf] %v1578_v50  ;;  %v7191_v30 = vmax.f32 %v675_v5, 0.0  ;;  %v618_v22 = vadd.f32 %v6868_v38, %v617_v32  ;;  %v2438_v52 = vsel %vm7094_vm12, %v7210_v43, 0  ;;  %v754_v32 = vadd.s32 56, %v6861_v35 }
 0x10f   : > { %2119 = vst [vmem:[#allocation3 + $0x27c] sm:$0xf] %v1737_v56 }
 0x110   : > { %2406 = vst [vmem:[#allocation3 + $0x268] sm:$0xf] %v1578_v50  ;;  %656 = vmatmul.bf16.gmra.mxu0 %v6000_v11  ;;  %v7213_v33 = vrot.slane %v7191_v30, 7  ;;  %v1427_v50 = vpack.c.bf16 %v1413_v41, %v1413_v41  ;;  %v7221_v53 = vrot.slane %v7191_v30, 1  ;;  %v7234_v5 = vmax.f32 %v618_v22, 0.0 }
 0x111   : > { %2469 = vst [vmem:[#allocation3 + $0x254] sm:$0xf] %v1737_v56  ;;  %v2375_v56 = vsel %vm7084_vm9, %v7202_v9, 0  ;;  %v1556_v11 = vsel %vm6854_vm1, %v1331_v18, 0  ;;  %v832_v18 = vand.u32 15, %v754_v32 }
 0x112   : > { %1587 = vst [vmem:[#allocation3 + $0x90] sm:$0xf] %v1555_v28  ;;  %v1323_v62 = vsel %vm8599_vm4, %v7213_v33, %v6872_v45  ;;  %v1292_v16 = vsel %vm8599_vm4, %v1289_v58, %v7213_v33  ;;  %v1715_v28 = vsel %vm6854_vm1, %v1427_v50, 0  ;;  %v1389_v1 = vsel %vm8675_vm6, %v1386_v61, %v7221_v53 }
 0x113   : > { %1746 = vst [vmem:[#allocation3 + $0x7c] sm:$0xf] %v1714_v39  ;;  %v1324_v39 = vpack.c.bf16 %v1323_v62, %v1323_v62  ;;  %v1420_v8 = vsel %vm8676_vm7, %v7221_v53, %v6850_v29  ;;  %v1355_v58 = vpack.c.bf16 %v1292_v16, %v1292_v16  ;;  %v1267_v41 = vrot.slane %v7234_v5, 7  ;;  %v677_v22 = vpop.f32.mrf.mxu3  ;;  %v6129_v62 = vld [vmem:[#allocation9 + $0xa0] sm:$0xff]  ;;  %v6100_v27 = vld [vmem:[#allocation3 + $0x2b4] sm:$0xf0] }
 0x114   : > { %2033 = vst [vmem:[#allocation3 + $0x68] sm:$0xf] %v2001_v40  ;;  %v839_v40 = vand.u32 15, %v755_v10  ;;  %v1364_v61 = vrot.slane %v7234_v5, 1  ;;  %v775_v50 = vadd.s32 224, %v6861_v35  ;;  %vm1202_vm6 = vcmp.lt.s32.totalorder %v832_v18, 15  ;;  %3819 = vmatpush.bf16.msrb.mxu0 %v6129_v62 }
 0x115   : > { %2096 = vst [vmem:[#allocation3 + $0x54] sm:$0xf] %v2064_v42  ;;  %v1451_v42 = vpack.c.bf16 %v1389_v1, %v1389_v1  ;;  %v619_v23 = vpop.f32.mrf.mxu0  ;;  %v1549_v19 = vsel %vm7019_vm15, %v1324_v39, 0  ;;  %v1315_v10 = vsel %vm8599_vm4, %v1266_v4, %v1267_v41  ;;  %v678_v1 = vadd.f32 %v6868_v38, %v677_v22 }
 0x116   : > { %2383 = vst [vmem:[#allocation3 + $0x40] sm:$0xf] %v2351_v34  ;;  %v1452_v34 = vpack.c.bf16 %v1420_v8, %v1420_v8  ;;  %vm7255_vm14 = vcmp.gt.s32.totalorder %v839_v40, 0  ;;  %v620_v20 = vadd.f32 %v6868_v38, %v619_v23  ;;  %v1412_v16 = vsel %vm8674_vm3, %v1363_v13, %v1364_v61  ;;  %vm7292_vm3 = vmpackc.low %vm1202_vm6, %vm1202_vm6 }
 0x117   : > { %2446 = vst [vmem:[#allocation3 + $0x2c] sm:$0xf] %v2414_v24  ;;  %v774_v4 = vadd.s32 216, %v6861_v35  ;;  %v1332_v55 = vpack.c.bf16 %v1315_v10, %v1315_v10  ;;  %v979_v8 = vand.u32 15, %v775_v50  ;;  %v1428_v13 = vpack.c.bf16 %v1412_v16, %v1412_v16  ;;  %vm7288_vm7 = vmpackc.low %vm7255_vm14, %vm7255_vm14 }
 0x118   : > { %2407 = vst [vmem:[#allocation3 + $0x280] sm:$0xf] %v2375_v56  ;;  %v1580_v56 = vsel %vm6854_vm1, %v1355_v58, 0  ;;  %v1740_v32 = vsel %vm7030_vm0, %v1452_v34, 0  ;;  %v7283_v39 = vmax.f32 %v620_v20, 0.0  ;;  %v993_v58 = vand.u32 15, %v777_v48 }
 0x119   : > { %2470 = vst [vmem:[#allocation3 + $0x26c] sm:$0xf] %v2438_v52  ;;  %v6109_v52 = vld [vmem:[#allocation9] sm:$0xff]  ;;  %v7296_v22 = vmax.f32 %v678_v1, 0.0  ;;  %v972_v23 = vand.u32 15, %v774_v4  ;;  %vm1191_vm14 = vcmp.gt.s32.totalorder %v979_v8, 0 }
 0x11a   : > { %1588 = vst [vmem:[#allocation3 + $0xa8] sm:$0xf] %v1556_v11  ;;  %3645 = vmatpush.bf16.msra.mxu2 %v6109_v52  ;;  %6308 = vmatpush.bf16.msra.mxu3 %v6109_v52  ;;  %v7300_v34 = vpack.c.bf16 %v7283_v39, %v7234_v5  ;;  %v1716_v10 = vsel %vm7292_vm3, %v1428_v13, 0  ;;  %vm1193_vm6 = vcmp.gt.s32.totalorder %v993_v58, 0  ;;  %v2003_v48 = vsel %vm7169_vm8, %v1332_v55, 0  ;;  %vm7312_vm9 = vmpackc.low %vm1191_vm14, %vm1191_vm14 }
 0x11b   : > { %1747 = vst [vmem:[#allocation3 + $0x94] sm:$0xf] %v1715_v28  ;;  %v1835_v24 = vrot.slane %v7296_v22, 7  ;;  %v679_v50 = vpop.f32.mrf.mxu3  ;;  %vm1222_vm4 = vcmp.lt.s32.totalorder %v972_v23, 15  ;;  %v2066_v20 = vsel %vm7180_vm5, %v1428_v13, 0  ;;  %v2353_v62 = vsel %vm6975_vm10, %v1332_v55, 0  ;;  %vm7319_vm2 = vmpackc.low %vm1193_vm6, %vm1193_vm6 }
 0x11c   : > { %2034 = vst [vmem:[#allocation3 + $0x80] sm:$0xf] %v1556_v11  ;;  %v1931_v1 = vrot.slane %v7296_v22, 1  ;;  %v2416_v4 = vsel %vm6982_vm11, %v1428_v13, 0  ;;  %vm7331_vm14 = vmpackc.low %vm1222_vm4, %vm1222_vm4  ;;  %v1268_v57 = vrot.slane %v7283_v39, 7  ;;  %v1579_v8 = vsel %vm7319_vm2, %v7202_v9, 0 }
 0x11d   : > { %2097 = vst [vmem:[#allocation3 + $0x6c] sm:$0xf] %v1715_v28  ;;  %2809 = vmatmul.bf16.gmra.mxu1 %v7300_v34  ;;  %v1838_v16 = vsel %vm8688_vm13, %v7213_v33, %v1835_v24  ;;  %vm8693_vm13 = vcmp.lt.s32.totalorder %v6861_v35, 7  ;;  %v1365_v33 = vrot.slane %v7283_v39, 1  ;;  %v622_v23 = vpop.f32.mrf.mxu0  ;;  %vm8695_vm4 = vcmp.lt.s32.totalorder %v6861_v35, 1 }
 0x11e   : > { %2384 = vst [vmem:[#allocation3 + $0x58] sm:$0xf] %v1556_v11  ;;  %v1739_v11 = vsel %vm6854_vm1, %v1451_v42, 0  ;;  %v1934_v59 = vsel %vm8693_vm13, %v7221_v53, %v1931_v1  ;;  %v1899_v13 = vpack.c.bf16 %v1838_v16, %v1838_v16  ;;  %vm8696_vm11 = vmmov %vm8693_vm13 }
 0x11f   : > { %2447 = vst [vmem:[#allocation3 + $0x44] sm:$0xf] %v1715_v28  ;;  %v776_v28 = vadd.s32 232, %v6861_v35  ;;  %vm8699_vm6 = vmmov %vm8696_vm11 }
 0x120   : > { %1581 = vst [vmem:[#allocation3] sm:$0xf] %v1549_v19  ;;  %v1557_v19 = vsel %vm7288_vm7, %v1332_v55, 0  ;;  %vm8701_vm13 = vmmov %vm8695_vm4  ;;  %v6017_v55 = vld [vmem:[#allocation3 + $0x1c] sm:$0xf0] }
 0x121   : > { %1612 = vst [vmem:[#allocation3 + $0x2e8] sm:$0xf] %v1580_v56  ;;  %v986_v18 = vand.u32 15, %v776_v28  ;;  %v1577_v28 = vsel %vm7312_vm9, %v7066_v44, 0  ;;  %v1736_v44 = vsel %vm7331_vm14, %v7068_v49, 0  ;;  %v1411_v49 = vsel %vm8696_vm11, %v1364_v61, %v1365_v33 }
 0x122   : > { %1771 = vst [vmem:[#allocation3 + $0x2d4] sm:$0xf] %v1739_v11 }
 0x123   : > { %1772 = vst [vmem:[#allocation3 + $0x2ec] sm:$0xf] %v1740_v32  ;;  %vm1224_vm12 = vcmp.lt.s32.totalorder %v986_v18, 15  ;;  %v1994_v18 = vpack.c.bf16 %v1934_v59, %v1934_v59 }
 0x124   : > { %8683 = vst [vmem:[#allocation18_spill] sm:$0xff] %v7296_v22  ;;  %vm7339_vm10 = vmpackc.low %vm1224_vm12, %vm1224_vm12 }
 0x125   : > { %2058 = vst [vmem:[#allocation3 + $0x2c0] sm:$0xf] %v1580_v56  ;;  %v1738_v53 = vsel %vm7339_vm10, %v7210_v43, 0  ;;  %v2090_v5 = vsel %vm7339_vm10, %v1994_v18, 0  ;;  %v2440_v16 = vsel %vm7331_vm14, %v1994_v18, 0  ;;  %vm8697_vm12 = vmmov %vm8695_vm4  ;;  %v6127_v18 = vld [vmem:[#allocation9 + $0x90] sm:$0xff] }
 0x126   : > { %2121 = vst [vmem:[#allocation3 + $0x2ac] sm:$0xf] %v1739_v11 }
 0x127   : > { %2408 = vst [vmem:[#allocation3 + $0x298] sm:$0xf] %v1580_v56  ;;  %v680_v56 = vadd.f32 %v6868_v38, %v679_v50  ;;  %v2025_v50 = vsel %vm7312_vm9, %v7202_v9, 0  ;;  %v2088_v9 = vsel %vm7331_vm14, %v7210_v43, 0  ;;  %vm8700_vm14 = vmmov %vm8699_vm6 }
 0x128   : > { %2471 = vst [vmem:[#allocation3 + $0x284] sm:$0xf] %v1739_v11 }
 0x129   : > { %1589 = vst [vmem:[#allocation3 + $0xc0] sm:$0xf] %v1557_v19  ;;  %v7350_v58 = vmax.f32 %v680_v56, 0.0  ;;  %v1314_v19 = vsel %vm8695_vm4, %v1267_v41, %v1268_v57  ;;  %v623_v41 = vadd.f32 %v6868_v38, %v622_v23  ;;  %v1429_v56 = vpack.c.bf16 %v1411_v49, %v1411_v49  ;;  %v624_v23 = vpop.f32.mrf.mxu0 }
 0x12a   : > { %1748 = vst [vmem:[#allocation3 + $0xac] sm:$0xf] %v1716_v10  ;;  %v2027_v10 = vsel %vm7319_vm2, %v1899_v13, 0 }
 0x12b   : > { %2035 = vst [vmem:[#allocation3 + $0x98] sm:$0xf] %v2003_v48  ;;  %v1836_v48 = vrot.slane %v7350_v58, 7  ;;  %v1932_v61 = vrot.slane %v7350_v58, 1  ;;  %v1717_v32 = vsel %vm6854_vm1, %v1429_v56, 0 }
 0x12c   : > { %2098 = vst [vmem:[#allocation3 + $0x84] sm:$0xf] %v2066_v20  ;;  %v1333_v20 = vpack.c.bf16 %v1314_v19, %v1314_v19 }
 0x12d   : > { %2385 = vst [vmem:[#allocation3 + $0x70] sm:$0xf] %v2353_v62  ;;  %v2377_v62 = vsel %vm7312_vm9, %v1899_v13, 0  ;;  %v1868_v43 = vsel %vm8697_vm12, %v1836_v48, %v6876_v46  ;;  %vm8698_vm9 = vmmov %vm8695_vm4  ;;  %v1933_v46 = vsel %vm8699_vm6, %v1931_v1, %v1932_v61  ;;  %v756_v13 = vadd.s32 72, %v6861_v35 }
 0x12e   : > { %8694 = vst [vmem:[#allocation19_spill] sm:$0xff] %v7350_v58  ;;  %v1558_v59 = vsel %vm6854_vm1, %v1333_v20, 0  ;;  %v1837_v52 = vsel %vm8698_vm9, %v1835_v24, %v1836_v48  ;;  %v625_v24 = vadd.f32 %v6868_v38, %v624_v23  ;;  %v1995_v1 = vpack.c.bf16 %v1933_v46, %v1933_v46  ;;  %vm8702_vm4 = vmmov %vm8699_vm6 }
 0x12f   : > { %2448 = vst [vmem:[#allocation3 + $0x5c] sm:$0xf] %v2416_v4  ;;  %v7390_v4 = vmax.f32 %v623_v41, 0.0  ;;  %v1900_v19 = vpack.c.bf16 %v1837_v52, %v1837_v52  ;;  %v846_v20 = vand.u32 15, %v756_v13  ;;  %v2286_v56 = vsel %vm8702_vm4, %v1932_v61, %v6850_v29  ;;  %vm8703_vm11 = vmmov %vm8698_vm9 }
 0x130   : > { %1609 = vst [vmem:[#allocation3 + $0x2a0] sm:$0xf] %v1577_v28  ;;  %v757_v28 = vadd.s32 80, %v6861_v35  ;;  %v2091_v29 = vsel %vm6854_vm1, %v1995_v1, 0  ;;  %vm8706_vm12 = vmmov %vm8702_vm4  ;;  %v1325_v1 = vpack.c.bf16 %v6872_v45, %v6872_v45 }
 0x131   : > { %1611 = vst [vmem:[#allocation3 + $0x2d0] sm:$0xf] %v1579_v8  ;;  %v6128_v8 = vld [vmem:[#allocation9 + $0x98] sm:$0xff]  ;;  %v1269_v49 = vrot.slane %v7390_v4, 7  ;;  %v1366_v41 = vrot.slane %v7390_v4, 1  ;;  %vm1204_vm9 = vcmp.lt.s32.totalorder %v846_v20, 15 }
 0x132   : > { %1768 = vst [vmem:[#allocation3 + $0x28c] sm:$0xf] %v1736_v44  ;;  %v1869_v44 = vpack.c.bf16 %v1868_v43, %v1868_v43  ;;  %3820 = vmatpush.bf16.msrb.mxu0 %v6128_v8  ;;  %v1550_v25 = vsel %vm6854_vm1, %v1325_v1, 0 }
 0x133   : > { %1770 = vst [vmem:[#allocation3 + $0x2bc] sm:$0xf] %v1738_v53  ;;  %v1964_v53 = vsel %vm8700_vm14, %v1932_v61, %v6878_v47  ;;  %v1313_v17 = vsel %vm8703_vm11, %v1268_v57, %v1269_v49  ;;  %v2346_v57 = vpack.c.bf16 %v2286_v56, %v2286_v56 }
 0x134   : > { %2057 = vst [vmem:[#allocation3 + $0x2a8] sm:$0xf] %v2025_v50  ;;  %v853_v50 = vand.u32 15, %v757_v28  ;;  %v1996_v47 = vpack.c.bf16 %v1964_v53, %v1964_v53  ;;  %v1334_v52 = vpack.c.bf16 %v1313_v17, %v1313_v17 }
 0x135   : > { %2059 = vst [vmem:[#allocation3 + $0x2d8] sm:$0xf] %v2027_v10  ;;  %v2190_v10 = vsel %vm8701_vm13, %v1836_v48, %v6872_v45  ;;  %v2442_v11 = vsel %vm7339_vm10, %v2346_v57, 0  ;;  %vm8712_vm10 = vmmov %vm8702_vm4 }
 0x136   : > { %2120 = vst [vmem:[#allocation3 + $0x294] sm:$0xf] %v2088_v9  ;;  %v7413_v9 = vmax.f32 %v625_v24, 0.0  ;;  %3821 = vmatpush.bf16.msrb.mxu0 %v6127_v18  ;;  %v2251_v43 = vpack.c.bf16 %v2190_v10, %v2190_v10  ;;  %v2092_v28 = vsel %vm7030_vm0, %v1996_v47, 0  ;;  %vm7454_vm0 = vmpackc.low %vm1204_vm9, %vm1204_vm9  ;;  %v759_v24 = vadd.s32 96, %v6861_v35 }
 0x137   : > { %2122 = vst [vmem:[#allocation3 + $0x2c4] sm:$0xf] %v2090_v5  ;;  %v1997_v5 = vsel %vm7019_vm15, %v1869_v44, 0  ;;  %vm7432_vm15 = vcmp.gt.s32.totalorder %v853_v50, 0  ;;  %v758_v50 = vadd.s32 88, %v6861_v35  ;;  %v2005_v10 = vsel %vm7288_vm7, %v1334_v52, 0  ;;  %vm8714_vm13 = vmmov %vm8702_vm4 }
 0x138   : > { %2409 = vst [vmem:[#allocation3 + $0x2b0] sm:$0xf] %v2377_v62  ;;  %v6126_v62 = vld [vmem:[#allocation9 + $0x88] sm:$0xff]  ;;  %v7422_v48 = vpack.c.bf16 %v7413_v9, %v7390_v4  ;;  %v1410_v4 = vsel %vm8706_vm12, %v1365_v33, %v1366_v41  ;;  %v2379_v39 = vsel %vm7319_vm2, %v2251_v43, 0  ;;  %vm7449_vm6 = vmpackc.low %vm7432_vm15, %vm7432_vm15  ;;  %v1270_v46 = vrot.slane %v7413_v9, 7 }
 0x139   : > { %2472 = vst [vmem:[#allocation3 + $0x29c] sm:$0xf] %v2440_v16  ;;  %v2028_v16 = vsel %vm6854_vm1, %v1900_v19, 0  ;;  %v1430_v33 = vpack.c.bf16 %v1410_v4, %v1410_v4  ;;  %v1367_v23 = vrot.slane %v7413_v9, 1  ;;  %v1559_v53 = vsel %vm7449_vm6, %v1334_v52, 0  ;;  %vm8711_vm2 = vmmov %vm8703_vm11 }
 0x13a   : > { %1590 = vst [vmem:[#allocation3 + $0xd8] sm:$0xf] %v1558_v59  ;;  %2814 = vmatmul.bf16.gmra.mxu1 %v7422_v48  ;;  %3822 = vmatpush.bf16.msrb.mxu0 %v6126_v62  ;;  %v1312_v19 = vsel %vm8711_vm2, %v1269_v49, %v1270_v46  ;;  %v2355_v49 = vsel %vm7169_vm8, %v1334_v52, 0  ;;  %v860_v61 = vand.u32 15, %v758_v50  ;;  %vm8713_vm8 = vmmov %vm8711_vm2 }
 0x13b   : > { %1749 = vst [vmem:[#allocation3 + $0xc4] sm:$0xf] %v1717_v32  ;;  %v1718_v18 = vsel %vm7454_vm0, %v1430_v33, 0  ;;  %v1409_v9 = vsel %vm8712_vm10, %v1366_v41, %v1367_v23  ;;  %v2068_v20 = vsel %vm7292_vm3, %v1430_v33, 0  ;;  %v1335_v45 = vpack.c.bf16 %v1312_v19, %v1312_v19  ;;  %vm8719_vm15 = vmmov %vm8711_vm2  ;;  %v5313_v19 = vld [vmem:[#allocation3] sm:$0xf] }
 0x13c   : > { %2036 = vst [vmem:[#allocation3 + $0xb0] sm:$0xf] %v1558_v59  ;;  %v2418_v41 = vsel %vm7180_vm5, %v1430_v33, 0  ;;  %vm1206_vm5 = vcmp.lt.s32.totalorder %v860_v61, 15  ;;  %vm8720_vm12 = vmmov %vm8712_vm10 }
 0x13d   : > { %2099 = vst [vmem:[#allocation3 + $0x9c] sm:$0xf] %v1717_v32  ;;  %v1560_v57 = vsel %vm6854_vm1, %v1335_v45, 0  ;;  %vm7505_vm11 = vmpackc.low %vm1206_vm5, %vm1206_vm5 }
 0x13e   : > { %2386 = vst [vmem:[#allocation3 + $0x88] sm:$0xf] %v1558_v59  ;;  %v627_v59 = vpop.f32.mrf.mxu0  ;;  %vm8721_vm9 = vmmov %vm8711_vm2 }
 0x13f   : > { %2449 = vst [vmem:[#allocation3 + $0x74] sm:$0xf] %v1717_v32  ;;  %v628_v8 = vadd.f32 %v6868_v38, %v627_v59  ;;  %v6125_v32 = vld [vmem:[#allocation9 + $0x80] sm:$0xff] }
 0x140   : > { %2029 = vst [vmem:[#allocation3 + $0x8] sm:$0xf] %v1997_v5  ;;  %3823 = vmatpush.bf16.msrb.mxu0 %v6125_v32 }
 0x141   : > { %2060 = vst [vmem:[#allocation3 + $0x2f0] sm:$0xf] %v2028_v16  ;;  %v7461_v44 = vmax.f32 %v628_v8, 0.0 }
 0x142   : > { %2123 = vst [vmem:[#allocation3 + $0x2dc] sm:$0xf] %v2091_v29 }
 0x143   : > { %2124 = vst [vmem:[#allocation3 + $0x2f4] sm:$0xf] %v2092_v28  ;;  %v1271_v5 = vrot.slane %v7461_v44, 7  ;;  %v1368_v43 = vrot.slane %v7461_v44, 1 }
 0x144   : > { %2410 = vst [vmem:[#allocation3 + $0x2c8] sm:$0xf] %v2028_v16  ;;  %v867_v16 = vand.u32 15, %v759_v24 }
 0x145   : > { %2411 = vst [vmem:[#allocation3 + $0x2e0] sm:$0xf] %v2379_v39  ;;  %v1311_v28 = vsel %vm8713_vm8, %v1270_v46, %v1271_v5  ;;  %v1408_v12 = vsel %vm8714_vm13, %v1367_v23, %v1368_v43  ;;  %vm8727_vm13 = vmmov %vm8712_vm10 }
 0x146   : > { %2473 = vst [vmem:[#allocation3 + $0x2b4] sm:$0xf] %v2091_v29  ;;  %v629_v62 = vpop.f32.mrf.mxu0  ;;  %v1431_v29 = vpack.c.bf16 %v1409_v9, %v1409_v9  ;;  %vm1175_vm14 = vcmp.gt.s32.totalorder %v867_v16, 0  ;;  %v1336_v32 = vpack.c.bf16 %v1311_v28, %v1311_v28  ;;  %v1432_v33 = vpack.c.bf16 %v1408_v12, %v1408_v12 }
 0x147   : > { %2474 = vst [vmem:[#allocation3 + $0x2cc] sm:$0xf] %v2442_v11  ;;  %v5321_v47 = vld [vmem:[#allocation3 + $0x8] sm:$0xf]  ;;  %v630_v17 = vadd.f32 %v6868_v38, %v629_v62  ;;  %vm7500_vm4 = vmpackc.low %vm1175_vm14, %vm1175_vm14  ;;  %v761_v11 = vadd.s32 112, %v6861_v35 }
 0x148   : > { %1591 = vst [vmem:[#allocation3 + $0xf0] sm:$0xf] %v1559_v53  ;;  %v5322_v56 = vor.u32 %v6017_v55, %v5321_v47  ;;  %v1719_v52 = vsel %vm6854_vm1, %v1431_v29, 0  ;;  %v1561_v50 = vsel %vm7500_vm4, %v1336_v32, 0  ;;  %v2007_v9 = vsel %vm7449_vm6, %v1336_v32, 0  ;;  %vm8726_vm14 = vmmov %vm8721_vm9 }
 0x149   : > { %1750 = vst [vmem:[#allocation3 + $0xdc] sm:$0xf] %v1718_v18  ;;  %v693_v4 = vmax.f32 %v630_v17, 0.0  ;;  %v760_v18 = vadd.s32 104, %v6861_v35  ;;  %v881_v47 = vand.u32 15, %v761_v11  ;;  %v2070_v45 = vsel %vm7454_vm0, %v1432_v33, 0 }
 0x14a   : > { %2037 = vst [vmem:[#allocation3 + $0xc8] sm:$0xf] %v2005_v10  ;;  %3824 = vmatmul.bf16.vlgmr.msrb.gmra.mxu0 %v5322_v56  ;;  %v6023_v10 = vld [vmem:[#allocation3 + $0x4c] sm:$0xf0]  ;;  %v2357_v17 = vsel %vm7288_vm7, %v1336_v32, 0  ;;  %v2420_v29 = vsel %vm7292_vm3, %v1432_v33, 0 }
 0x14b   : > { %2100 = vst [vmem:[#allocation3 + $0xb4] sm:$0xf] %v2068_v20  ;;  %v7495_v59 = vpack.c.bf16 %v693_v4, %v7461_v44  ;;  %v1272_v8 = vrot.slane %v693_v4, 7  ;;  %v1369_v39 = vrot.slane %v693_v4, 1  ;;  %vm1177_vm2 = vcmp.gt.s32.totalorder %v881_v47, 0 }
 0x14c   : > { %2387 = vst [vmem:[#allocation3 + $0xa0] sm:$0xf] %v2355_v49  ;;  %vm7541_vm3 = vmpackc.low %vm1177_vm2, %vm1177_vm2  ;;  %v5361_v44 = vld [vmem:[#allocation3 + $0x60] sm:$0xf] }
 0x14d   : > { %2450 = vst [vmem:[#allocation3 + $0x8c] sm:$0xf] %v2418_v41  ;;  %2819 = vmatmul.bf16.gmra.mxu1 %v7495_v59  ;;  %v1310_v24 = vsel %vm8719_vm15, %v1271_v5, %v1272_v8  ;;  %v1407_v55 = vsel %vm8720_vm12, %v1368_v43, %v1369_v39  ;;  %v874_v43 = vand.u32 15, %v760_v18  ;;  %v5345_v41 = vld [vmem:[#allocation3 + $0x38] sm:$0xf]  ;;  %v762_v18 = vadd.s32 120, %v6861_v35 }
 0x14e   : > { %1582 = vst [vmem:[#allocation3 + $0x18] sm:$0xf] %v1550_v25  ;;  %v632_v23 = vpop.f32.mrf.mxu0  ;;  %v1337_v49 = vpack.c.bf16 %v1310_v24, %v1310_v24  ;;  %v1433_v16 = vpack.c.bf16 %v1407_v55, %v1407_v55  ;;  %v763_v24 = vadd.s32 128, %v6861_v35 }
 0x14f   : > { %2412 = vst [vmem:[#allocation3 + $0x2f8] sm:$0xf] %v1550_v25  ;;  %v633_v53 = vadd.f32 %v6868_v38, %v632_v23  ;;  %v1720_v38 = vsel %vm7505_vm11, %v1432_v33, 0  ;;  %v5346_v25 = vor.u32 %v6023_v10, %v5345_v41  ;;  %vm1208_vm7 = vcmp.lt.s32.totalorder %v874_v43, 15  ;;  %v6029_v41 = vld [vmem:[#allocation3 + $0x7c] sm:$0xf0] }
 0x150   : > { %1592 = vst [vmem:[#allocation3 + $0x108] sm:$0xf] %v1560_v57  ;;  %v1562_v28 = vsel %vm6854_vm1, %v1337_v49, 0  ;;  %v1721_v12 = vsel %vm6854_vm1, %v1433_v16, 0  ;;  %vm7545_vm8 = vmpackc.low %vm1208_vm7, %vm1208_vm7 }
 0x151   : > { %1751 = vst [vmem:[#allocation3 + $0xf4] sm:$0xf] %v1719_v52  ;;  %v694_v1 = vmax.f32 %v633_v53, 0.0 }
 0x152   : > { %2038 = vst [vmem:[#allocation3 + $0xe0] sm:$0xf] %v1560_v57 }
 0x153   : > { %2101 = vst [vmem:[#allocation3 + $0xcc] sm:$0xf] %v1719_v52  ;;  %v1273_v5 = vrot.slane %v694_v1, 7  ;;  %v1370_v56 = vrot.slane %v694_v1, 1 }
 0x154   : > { %2388 = vst [vmem:[#allocation3 + $0xb8] sm:$0xf] %v1560_v57  ;;  %v7536_v57 = vld [vmem:[%s8592_s5] ss:$0 sm:$0xff] }
 0x155   : > { %v6016_v20 = vld [vmem:[#allocation3 + $0x14] sm:$0xf0]  ;;  %2451 = vst [vmem:[#allocation3 + $0xa4] sm:$0xf] %v1719_v52  ;;  %v1309_v61 = vsel %vm8721_vm9, %v1272_v8, %v1273_v5  ;;  %v1406_v40 = vsel %vm8712_vm10, %v1369_v39, %v1370_v56 }
 0x156   : > { %v5314_v62 = vor.u32 %v6016_v20, %v5313_v19  ;;  %1593 = vst [vmem:[#allocation3 + $0x120] sm:$0xf] %v1561_v50  ;;  %v634_v4 = vpop.f32.mrf.mxu0  ;;  %v1338_v52 = vpack.c.bf16 %v1309_v61, %v1309_v61  ;;  %v1434_v32 = vpack.c.bf16 %v1406_v40, %v1406_v40  ;;  %v895_v20 = vand.u32 15, %v763_v24  ;;  %v5369_v40 = vld [vmem:[#allocation3 + $0x68] sm:$0xf] }
 0x157   : > { %1752 = vst [vmem:[#allocation3 + $0x10c] sm:$0xf] %v1720_v38  ;;  %v635_v42 = vadd.f32 %v7536_v57, %v634_v4 }
 0x158   : > { %3646 = vmatmul.bf16.vlgmr.msra.gmra.mxu2 %v5314_v62  ;;  %2039 = vst [vmem:[#allocation3 + $0xf8] sm:$0xf] %v2007_v9  ;;  %v1563_v19 = vsel %vm7541_vm3, %v1338_v52, 0  ;;  %v2009_v38 = vsel %vm7500_vm4, %v1338_v52, 0  ;;  %v2072_v49 = vsel %vm7505_vm11, %v1434_v32, 0  ;;  %v2359_v16 = vsel %vm7449_vm6, %v1338_v52, 0  ;;  %vm8728_vm6 = vmmov %vm8721_vm9 }
 0x159   : > { %2102 = vst [vmem:[#allocation3 + $0xe4] sm:$0xf] %v2070_v45  ;;  %v695_v8 = vmax.f32 %v635_v42, 0.0  ;;  %v5337_v62 = vld [vmem:[#allocation3 + $0x30] sm:$0xf]  ;;  %vm1179_vm5 = vcmp.gt.s32.totalorder %v895_v20, 0  ;;  %v7600_v20 = vpop.f32.mrf.mxu1  ;;  %vm8734_vm2 = vmmov %vm8728_vm6 }
 0x15a   : > { %2389 = vst [vmem:[#allocation3 + $0xd0] sm:$0xf] %v2357_v17  ;;  %3829 = vmatmul.bf16.gmra.mxu0 %v5346_v25  ;;  %v6022_v45 = vld [vmem:[#allocation3 + $0x44] sm:$0xf0]  ;;  %v2422_v17 = vsel %vm7454_vm0, %v1434_v32, 0  ;;  %vm8729_vm0 = vmmov %vm8712_vm10 }
 0x15b   : > { %2452 = vst [vmem:[#allocation3 + $0xbc] sm:$0xf] %v2420_v29  ;;  %v1274_v23 = vrot.slane %v695_v8, 7  ;;  %v1371_v11 = vrot.slane %v695_v8, 1  ;;  %v7549_v53 = vpack.c.bf16 %v695_v8, %v694_v1  ;;  %v1722_v1 = vsel %vm7545_vm8, %v1434_v32, 0  ;;  %vm7579_vm12 = vmpackc.low %vm1179_vm5, %vm1179_vm5 }
 0x15c   : > { %1594 = vst [vmem:[#allocation3 + $0x138] sm:$0xf] %v1562_v28  ;;  %v5338_v4 = vor.u32 %v6022_v45, %v5337_v62  ;;  %v5370_v8 = vor.u32 %v6029_v41, %v5369_v40  ;;  %vm8735_vm10 = vmmov %vm8729_vm0 }
 0x15d   : > { %1753 = vst [vmem:[#allocation3 + $0x124] sm:$0xf] %v1721_v12  ;;  %v1308_v50 = vsel %vm8726_vm14, %v1273_v5, %v1274_v23  ;;  %v1405_v55 = vsel %vm8727_vm13, %v1370_v56, %v1371_v11  ;;  %2824 = vmatmul.bf16.gmra.mxu1 %v7549_v53  ;;  %v888_v56 = vand.u32 15, %v762_v18  ;;  %vm8738_vm14 = vmmov %vm8734_vm2 }
 0x15e   : > { %2040 = vst [vmem:[#allocation3 + $0x110] sm:$0xf] %v1562_v28  ;;  %v637_v10 = vpop.f32.mrf.mxu0  ;;  %v1339_v9 = vpack.c.bf16 %v1308_v50, %v1308_v50  ;;  %v1435_v5 = vpack.c.bf16 %v1405_v55, %v1405_v55  ;;  %v765_v55 = vadd.s32 144, %v6861_v35  ;;  %vm8739_vm13 = vmmov %vm8729_vm0 }
 0x15f   : > { %2103 = vst [vmem:[#allocation3 + $0xfc] sm:$0xf] %v1721_v12  ;;  %v638_v47 = vadd.f32 %v7536_v57, %v637_v10  ;;  %vm1210_vm15 = vcmp.lt.s32.totalorder %v888_v56, 15 }
 0x160   : > { %2390 = vst [vmem:[#allocation3 + $0xe8] sm:$0xf] %v1562_v28  ;;  %v1564_v29 = vsel %vm6854_vm1, %v1339_v9, 0  ;;  %v1723_v28 = vsel %vm6854_vm1, %v1435_v5, 0  ;;  %vm7583_vm9 = vmpackc.low %vm1210_vm15, %vm1210_vm15  ;;  %v909_v41 = vand.u32 15, %v765_v55 }
 0x161   : > { %2453 = vst [vmem:[#allocation3 + $0xd4] sm:$0xf] %v1721_v12  ;;  %v696_v43 = vmax.f32 %v638_v47, 0.0  ;;  %vm8742_vm15 = vmmov %vm8734_vm2 }
 0x162   : > { %1595 = vst [vmem:[#allocation3 + $0x150] sm:$0xf] %v1563_v19  ;;  %v764_v19 = vadd.s32 136, %v6861_v35 }
 0x163   : > { %1754 = vst [vmem:[#allocation3 + $0x13c] sm:$0xf] %v1722_v1  ;;  %v1275_v61 = vrot.slane %v696_v43, 7  ;;  %v1372_v25 = vrot.slane %v696_v43, 1 }
 0x164   : > { %2041 = vst [vmem:[#allocation3 + $0x128] sm:$0xf] %v2009_v38  ;;  %v902_v62 = vand.u32 15, %v764_v19 }
 0x165   : > { %2104 = vst [vmem:[#allocation3 + $0x114] sm:$0xf] %v2072_v49  ;;  %v1307_v26 = vsel %vm8728_vm6, %v1274_v23, %v1275_v61  ;;  %v1404_v13 = vsel %vm8729_vm0, %v1371_v11, %v1372_v25  ;;  %vm8743_vm6 = vmmov %vm8729_vm0 }
 0x166   : > { %2391 = vst [vmem:[#allocation3 + $0x100] sm:$0xf] %v2359_v16  ;;  %v1340_v42 = vpack.c.bf16 %v1307_v26, %v1307_v26  ;;  %v1436_v12 = vpack.c.bf16 %v1404_v13, %v1404_v13  ;;  %v639_v32 = vpop.f32.mrf.mxu0  ;;  %v6035_v13 = vld [vmem:[#allocation3 + $0xac] sm:$0xf0] }
 0x167   : > { %2454 = vst [vmem:[#allocation3 + $0xec] sm:$0xf] %v2422_v17  ;;  %v640_v23 = vadd.f32 %v7536_v57, %v639_v32 }
 0x168   : > { %3651 = vmatmul.bf16.gmra.mxu2 %v5338_v4  ;;  %1596 = vst [vmem:[#allocation3 + $0x168] sm:$0xf] %v1564_v29  ;;  %v1565_v11 = vsel %vm7579_vm12, %v1340_v42, 0  ;;  %v1724_v50 = vsel %vm7583_vm9, %v1436_v12, 0  ;;  %v2011_v1 = vsel %vm7541_vm3, %v1340_v42, 0  ;;  %v2074_v47 = vsel %vm7545_vm8, %v1436_v12, 0 }
 0x169   : > { %1755 = vst [vmem:[#allocation3 + $0x154] sm:$0xf] %v1723_v28  ;;  %v697_v18 = vmax.f32 %v640_v23, 0.0  ;;  %v2361_v49 = vsel %vm7500_vm4, %v1340_v42, 0  ;;  %v2424_v45 = vsel %vm7505_vm11, %v1436_v12, 0  ;;  %vm1212_vm4 = vcmp.lt.s32.totalorder %v902_v62, 15 }
 0x16a   : > { %2042 = vst [vmem:[#allocation3 + $0x140] sm:$0xf] %v1564_v29  ;;  %3834 = vmatmul.bf16.gmra.mxu0 %v5370_v8  ;;  %vm1181_vm11 = vcmp.gt.s32.totalorder %v909_v41, 0  ;;  %vm7616_vm7 = vmpackc.low %vm1212_vm4, %vm1212_vm4  ;;  %v5393_v23 = vld [vmem:[#allocation3 + $0x98] sm:$0xf]  ;;  %v766_v62 = vadd.s32 152, %v6861_v35 }
 0x16b   : > { %2105 = vst [vmem:[#allocation3 + $0x12c] sm:$0xf] %v1723_v28  ;;  %v1276_v10 = vrot.slane %v697_v18, 7  ;;  %v1373_v38 = vrot.slane %v697_v18, 1  ;;  %v7596_v9 = vpack.c.bf16 %v697_v18, %v696_v43  ;;  %vm7624_vm5 = vmpackc.low %vm1181_vm11, %vm1181_vm11  ;;  %v5394_v19 = vor.u32 %v6035_v13, %v5393_v23  ;;  %v5385_v23 = vld [vmem:[#allocation3 + $0x90] sm:$0xf] }
 0x16c   : > { %2392 = vst [vmem:[#allocation3 + $0x118] sm:$0xf] %v1564_v29  ;;  %v916_v39 = vand.u32 15, %v766_v62  ;;  %vm8749_vm11 = vmmov %vm8734_vm2 }
 0x16d   : > { %2455 = vst [vmem:[#allocation3 + $0x104] sm:$0xf] %v1723_v28  ;;  %v1306_v5 = vsel %vm8734_vm2, %v1275_v61, %v1276_v10  ;;  %v1403_v56 = vsel %vm8735_vm10, %v1372_v25, %v1373_v38  ;;  %2829 = vmatmul.bf16.gmra.mxu1 %v7596_v9  ;;  %v6028_v25 = vld [vmem:[#allocation3 + $0x74] sm:$0xf0]  ;;  %vm8746_vm10 = vmmov %vm8743_vm6 }
 0x16e   : > { %1597 = vst [vmem:[#allocation3 + $0x180] sm:$0xf] %v1565_v11  ;;  %v1341_v16 = vpack.c.bf16 %v1306_v5, %v1306_v5  ;;  %v1437_v43 = vpack.c.bf16 %v1403_v56, %v1403_v56  ;;  %v642_v17 = vpop.f32.mrf.mxu0  ;;  %v5362_v40 = vor.u32 %v6028_v25, %v5361_v44 }
 0x16f   : > { %1756 = vst [vmem:[#allocation3 + $0x16c] sm:$0xf] %v1724_v50  ;;  %v643_v46 = vadd.f32 %v7536_v57, %v642_v17  ;;  %v7628_v50 = vpop.f32.mrf.mxu1 }
 0x170   : > { %2043 = vst [vmem:[#allocation3 + $0x158] sm:$0xf] %v2011_v1  ;;  %v1566_v29 = vsel %vm6854_vm1, %v1341_v16, 0  ;;  %v1725_v61 = vsel %vm6854_vm1, %v1437_v43, 0  ;;  %v6140_v1 = vld [vmem:[#allocation9 + $0xf8] sm:$0xff]  ;;  %v767_v16 = vadd.s32 160, %v6861_v35 }
 0x171   : > { %2106 = vst [vmem:[#allocation3 + $0x144] sm:$0xf] %v2074_v47  ;;  %v698_v4 = vmax.f32 %v643_v46, 0.0  ;;  %3905 = vmatpush.bf16.msrb.mxu1 %v6140_v1 }
 0x172   : > { %2393 = vst [vmem:[#allocation3 + $0x130] sm:$0xf] %v2361_v49 }
 0x173   : > { %2456 = vst [vmem:[#allocation3 + $0x11c] sm:$0xf] %v2424_v45  ;;  %v1277_v28 = vrot.slane %v698_v4, 7  ;;  %v1374_v26 = vrot.slane %v698_v4, 1 }
 0x174   : > { %1598 = vst [vmem:[#allocation3 + $0x198] sm:$0xf] %v1566_v29 }
 0x175   : > { %1757 = vst [vmem:[#allocation3 + $0x184] sm:$0xf] %v1725_v61  ;;  %v1305_v12 = vsel %vm8738_vm14, %v1276_v10, %v1277_v28  ;;  %v1402_v8 = vsel %vm8739_vm13, %v1373_v38, %v1374_v26  ;;  %vm8750_vm14 = vmmov %vm8743_vm6 }
 0x176   : > { %2044 = vst [vmem:[#allocation3 + $0x170] sm:$0xf] %v1566_v29  ;;  %v1342_v11 = vpack.c.bf16 %v1305_v12, %v1305_v12  ;;  %v1438_v18 = vpack.c.bf16 %v1402_v8, %v1402_v8  ;;  %v644_v55 = vpop.f32.mrf.mxu0  ;;  %v6034_v8 = vld [vmem:[#allocation3 + $0xa4] sm:$0xf0] }
 0x177   : > { %2107 = vst [vmem:[#allocation3 + $0x15c] sm:$0xf] %v1725_v61  ;;  %v645_v10 = vadd.f32 %v7536_v57, %v644_v55  ;;  %v7652_v33 = vpop.f32.mrf.mxu1  ;;  %v5386_v55 = vor.u32 %v6034_v8, %v5385_v23 }
 0x178   : > { %3656 = vmatmul.bf16.gmra.mxu2 %v5362_v40  ;;  %2394 = vst [vmem:[#allocation3 + $0x148] sm:$0xf] %v1566_v29  ;;  %v1567_v38 = vsel %vm7624_vm5, %v1342_v11, 0  ;;  %v1726_v47 = vsel %vm7616_vm7, %v1438_v18, 0  ;;  %v2013_v49 = vsel %vm7579_vm12, %v1342_v11, 0  ;;  %v2076_v5 = vsel %vm7583_vm9, %v1438_v18, 0 }
 0x179   : > { %2457 = vst [vmem:[#allocation3 + $0x134] sm:$0xf] %v1725_v61  ;;  %v699_v56 = vmax.f32 %v645_v10, 0.0  ;;  %v2363_v45 = vsel %vm7541_vm3, %v1342_v11, 0  ;;  %v2426_v43 = vsel %vm7545_vm8, %v1438_v18, 0  ;;  %v923_v40 = vand.u32 15, %v767_v16 }
 0x17a   : > { %3839 = vmatmul.bf16.gmra.mxu0 %v5394_v19  ;;  %1599 = vst [vmem:[#allocation3 + $0x1b0] sm:$0xf] %v1567_v38  ;;  %vm1214_vm3 = vcmp.lt.s32.totalorder %v916_v39, 15  ;;  %v6041_v19 = vld [vmem:[#allocation3 + $0xdc] sm:$0xf0] }
 0x17b   : > { %1758 = vst [vmem:[#allocation3 + $0x19c] sm:$0xf] %v1726_v47  ;;  %v1278_v17 = vrot.slane %v699_v56, 7  ;;  %v1375_v41 = vrot.slane %v699_v56, 1  ;;  %v7645_v46 = vpack.c.bf16 %v699_v56, %v698_v4  ;;  %vm1183_vm8 = vcmp.gt.s32.totalorder %v923_v40, 0  ;;  %vm7659_vm0 = vmpackc.low %vm1214_vm3, %vm1214_vm3 }
 0x17c   : > { %2045 = vst [vmem:[#allocation3 + $0x188] sm:$0xf] %v2013_v49  ;;  %vm7667_vm4 = vmpackc.low %vm1183_vm8, %vm1183_vm8  ;;  %v5417_v49 = vld [vmem:[#allocation3 + $0xc8] sm:$0xf]  ;;  %v769_v40 = vadd.s32 176, %v6861_v35 }
 0x17d   : > { %2108 = vst [vmem:[#allocation3 + $0x174] sm:$0xf] %v2076_v5  ;;  %v1304_v29 = vsel %vm8742_vm15, %v1277_v28, %v1278_v17  ;;  %v1401_v61 = vsel %vm8743_vm6, %v1374_v26, %v1375_v41  ;;  %2834 = vmatmul.bf16.gmra.mxu1 %v7645_v46  ;;  %v5418_v62 = vor.u32 %v6041_v19, %v5417_v49  ;;  %vm8753_vm15 = vmmov %vm8734_vm2 }
 0x17e   : > { %2395 = vst [vmem:[#allocation3 + $0x160] sm:$0xf] %v2363_v45  ;;  %v1343_v25 = vpack.c.bf16 %v1304_v29, %v1304_v29  ;;  %v1439_v44 = vpack.c.bf16 %v1401_v61, %v1401_v61  ;;  %v647_v13 = vpop.f32.mrf.mxu0  ;;  %v937_v49 = vand.u32 15, %v769_v40  ;;  %vm8756_vm8 = vmmov %vm8734_vm2 }
 0x17f   : > { %2458 = vst [vmem:[#allocation3 + $0x14c] sm:$0xf] %v2426_v43  ;;  %v648_v4 = vadd.f32 %v7536_v57, %v647_v13  ;;  %v7671_v45 = vpop.f32.mrf.mxu1  ;;  %v6139_v43 = vld [vmem:[#allocation9 + $0xf0] sm:$0xff] }
 0x180   : > { %v1568_v12 = vsel %vm6854_vm1, %v1343_v25, 0  ;;  %v1727_v28 = vsel %vm6854_vm1, %v1439_v44, 0  ;;  %3906 = vmatpush.bf16.msrb.mxu1 %v6139_v43  ;;  %v768_v44 = vadd.s32 168, %v6861_v35 }
 0x181   : > { %1600 = vst [vmem:[#allocation3 + $0x1c8] sm:$0xf] %v1568_v12  ;;  %v700_v26 = vmax.f32 %v648_v4, 0.0 }
 0x182   : > { %1759 = vst [vmem:[#allocation3 + $0x1b4] sm:$0xf] %v1727_v28  ;;  %v930_v52 = vand.u32 15, %v768_v44  ;;  %v5441_v44 = vld [vmem:[#allocation3 + $0xf8] sm:$0xf] }
 0x183   : > { %2046 = vst [vmem:[#allocation3 + $0x1a0] sm:$0xf] %v1568_v12  ;;  %v1279_v11 = vrot.slane %v700_v26, 7  ;;  %v1376_v18 = vrot.slane %v700_v26, 1 }
 0x184   : > { %2109 = vst [vmem:[#allocation3 + $0x18c] sm:$0xf] %v1727_v28 }
 0x185   : > { %2396 = vst [vmem:[#allocation3 + $0x178] sm:$0xf] %v1568_v12  ;;  %v1303_v10 = vsel %vm8734_vm2, %v1278_v17, %v1279_v11  ;;  %v1400_v38 = vsel %vm8746_vm10, %v1375_v41, %v1376_v18  ;;  %vm8757_vm2 = vmmov %vm8743_vm6  ;;  %vm8760_vm10 = vnez %v8664_v60 }
 0x186   : > { %2459 = vst [vmem:[#allocation3 + $0x164] sm:$0xf] %v1727_v28  ;;  %v1344_v5 = vpack.c.bf16 %v1303_v10, %v1303_v10  ;;  %v1440_v56 = vpack.c.bf16 %v1400_v38, %v1400_v38  ;;  %v649_v16 = vpop.f32.mrf.mxu0 }
 0x187   : > { %v650_v29 = vadd.f32 %v7536_v57, %v649_v16  ;;  %v7695_v24 = vpop.f32.mrf.mxu1 }
 0x188   : > { %3661 = vmatmul.bf16.gmra.mxu2 %v5386_v55  ;;  %v1569_v17 = vsel %vm7667_vm4, %v1344_v5, 0  ;;  %v1728_v41 = vsel %vm7659_vm0, %v1440_v56, 0  ;;  %v2015_v61 = vsel %vm7624_vm5, %v1344_v5, 0  ;;  %v2078_v39 = vsel %vm7616_vm7, %v1440_v56, 0 }
 0x189   : > { %1601 = vst [vmem:[#allocation3 + $0x1e0] sm:$0xf] %v1569_v17  ;;  %v701_v25 = vmax.f32 %v650_v29, 0.0  ;;  %v2365_v13 = vsel %vm7579_vm12, %v1344_v5, 0  ;;  %v2428_v4 = vsel %vm7583_vm9, %v1440_v56, 0  ;;  %vm1216_vm12 = vcmp.lt.s32.totalorder %v930_v52, 15 }
 0x18a   : > { %3844 = vmatmul.bf16.gmra.mxu0 %v5418_v62  ;;  %1760 = vst [vmem:[#allocation3 + $0x1cc] sm:$0xf] %v1728_v41  ;;  %v6040_v56 = vld [vmem:[#allocation3 + $0xd4] sm:$0xf0]  ;;  %v5409_v62 = vld [vmem:[#allocation3 + $0xc0] sm:$0xf]  ;;  %vm7702_vm13 = vmpackc.low %vm1216_vm12, %vm1216_vm12 }
 0x18b   : > { %2047 = vst [vmem:[#allocation3 + $0x1b8] sm:$0xf] %v2015_v61  ;;  %v1280_v12 = vrot.slane %v701_v25, 7  ;;  %v1377_v28 = vrot.slane %v701_v25, 1  ;;  %v7688_v8 = vpack.c.bf16 %v701_v25, %v700_v26  ;;  %vm1185_vm9 = vcmp.gt.s32.totalorder %v937_v49, 0  ;;  %v6138_v52 = vld [vmem:[#allocation9 + $0xe8] sm:$0xff] }
 0x18c   : > { %2110 = vst [vmem:[#allocation3 + $0x1a4] sm:$0xf] %v2078_v39  ;;  %v6047_v29 = vld [vmem:[#allocation3 + $0x10c] sm:$0xf0]  ;;  %v5410_v17 = vor.u32 %v6040_v56, %v5409_v62  ;;  %vm7710_vm3 = vmpackc.low %vm1185_vm9, %vm1185_vm9  ;;  %3907 = vmatpush.bf16.msrb.mxu1 %v6138_v52  ;;  %vm8768_vm9 = vnez %v8660_v51  ;;  %v5489_v51 = vld [vmem:[#allocation3 + $0x158] sm:$0xf] }
 0x18d   : > { %2397 = vst [vmem:[#allocation3 + $0x190] sm:$0xf] %v2365_v13  ;;  %v1302_v23 = vsel %vm8749_vm11, %v1279_v11, %v1280_v12  ;;  %v1399_v19 = vsel %vm8750_vm14, %v1376_v18, %v1377_v28  ;;  %2839 = vmatmul.bf16.gmra.mxu1 %v7688_v8  ;;  %vm8761_vm11 = vnez %v8666_v3  ;;  %v7799_v3 = vpack.c.bf16 %v6919_v15, %v6904_v63  ;;  %v6020_v25 = vld [vmem:[#allocation3 + $0x3c] sm:$0xf] }
 0x18e   : > { %2460 = vst [vmem:[#allocation3 + $0x17c] sm:$0xf] %v2428_v4  ;;  %v1345_v55 = vpack.c.bf16 %v1302_v23, %v1302_v23  ;;  %v1441_v10 = vpack.c.bf16 %v1399_v19, %v1399_v19  ;;  %v652_v38 = vpop.f32.mrf.mxu0  ;;  %v5442_v4 = vor.u32 %v6047_v29, %v5441_v44  ;;  %v7812_v15 = vpack.c.bf16 %v7112_v0, %v7004_v7 }
 0x18f   : > { %v653_v26 = vadd.f32 %v7536_v57, %v652_v38  ;;  %v7714_v23 = vpop.f32.mrf.mxu1  ;;  %v6137_v38 = vld [vmem:[#allocation9 + $0xe0] sm:$0xff]  ;;  %8771 = vst [vmem:[#allocation23_spill] sm:$0xff] %v7799_v3 }
 0x190   : > { %v1570_v5 = vsel %vm6854_vm1, %v1345_v55, 0  ;;  %v1729_v11 = vsel %vm6854_vm1, %v1441_v10, 0  ;;  %3908 = vmatpush.bf16.msrb.mxu1 %v6137_v38  ;;  %8774 = vst [vmem:[#allocation26_spill] sm:$0xff] %v7812_v15 }
 0x191   : > { %1602 = vst [vmem:[#allocation3 + $0x1f8] sm:$0xf] %v1570_v5  ;;  %v702_v18 = vmax.f32 %v653_v26, 0.0 }
 0x192   : > { %1761 = vst [vmem:[#allocation3 + $0x1e4] sm:$0xf] %v1729_v11 }
 0x193   : > { %2048 = vst [vmem:[#allocation3 + $0x1d0] sm:$0xf] %v1570_v5  ;;  %v1281_v16 = vrot.slane %v702_v18, 7  ;;  %v1378_v43 = vrot.slane %v702_v18, 1 }
 0x194   : > { %2111 = vst [vmem:[#allocation3 + $0x1bc] sm:$0xf] %v1729_v11 }
 0x195   : > { %2398 = vst [vmem:[#allocation3 + $0x1a8] sm:$0xf] %v1570_v5  ;;  %v1301_v61 = vsel %vm8753_vm15, %v1280_v12, %v1281_v16  ;;  %v1398_v39 = vsel %vm8743_vm6, %v1377_v28, %v1378_v43  ;;  %vm8769_vm15 = vnez %v8662_v54 }
 0x196   : > { %2461 = vst [vmem:[#allocation3 + $0x194] sm:$0xf] %v1729_v11  ;;  %v1346_v13 = vpack.c.bf16 %v1301_v61, %v1301_v61  ;;  %v1442_v40 = vpack.c.bf16 %v1398_v39, %v1398_v39  ;;  %v654_v19 = vpop.f32.mrf.mxu0 }
 0x197   : > { %v655_v55 = vadd.f32 %v7536_v57, %v654_v19  ;;  %v7736_v44 = vpop.f32.mrf.mxu1  ;;  %v5433_v19 = vld [vmem:[#allocation3 + $0xf0] sm:$0xf] }
 0x198   : > { %3666 = vmatmul.bf16.gmra.mxu2 %v5410_v17  ;;  %v1571_v12 = vsel %vm7710_vm3, %v1346_v13, 0  ;;  %v1730_v28 = vsel %vm7702_vm13, %v1442_v40, 0  ;;  %v2017_v10 = vsel %vm7667_vm4, %v1346_v13, 0  ;;  %v2080_v49 = vsel %vm7659_vm0, %v1442_v40, 0  ;;  %v6136_v17 = vld [vmem:[#allocation9 + $0xd8] sm:$0xff] }
 0x199   : > { %1603 = vst [vmem:[#allocation3 + $0x210] sm:$0xf] %v1571_v12  ;;  %v703_v26 = vmax.f32 %v655_v55, 0.0  ;;  %v2367_v5 = vsel %vm7624_vm5, %v1346_v13, 0  ;;  %v2430_v11 = vsel %vm7616_vm7, %v1442_v40, 0  ;;  %3909 = vmatpush.bf16.msrb.mxu1 %v6136_v17  ;;  %vm8758_vm7 = vmmov %vm8756_vm8 }
 0x19a   : > { %3849 = vmatmul.bf16.gmra.mxu0 %v5442_v4  ;;  %1762 = vst [vmem:[#allocation3 + $0x1fc] sm:$0xf] %v1730_v28  ;;  %v6053_v12 = vld [vmem:[#allocation3 + $0x13c] sm:$0xf0]  ;;  %vm8759_vm5 = vmmov %vm8757_vm2 }
 0x19b   : > { %2049 = vst [vmem:[#allocation3 + $0x1e8] sm:$0xf] %v2017_v10  ;;  %v1282_v56 = vrot.slane %v703_v26, 7  ;;  %v1379_v62 = vrot.slane %v703_v26, 1  ;;  %v7729_v29 = vpack.c.bf16 %v703_v26, %v702_v18  ;;  %v6135_v26 = vld [vmem:[#allocation9 + $0xd0] sm:$0xff]  ;;  %vm8763_vm14 = vmmov %vm8758_vm7 }
 0x19c   : > { %2112 = vst [vmem:[#allocation3 + $0x1d4] sm:$0xf] %v2080_v49  ;;  %v5465_v49 = vld [vmem:[#allocation3 + $0x128] sm:$0xf]  ;;  %vm8764_vm12 = vmmov %vm8758_vm7 }
 0x19d   : > { %2399 = vst [vmem:[#allocation3 + $0x1c0] sm:$0xf] %v2367_v5  ;;  %v1300_v61 = vsel %vm8756_vm8, %v1281_v16, %v1282_v56  ;;  %v1397_v39 = vsel %vm8757_vm2, %v1378_v43, %v1379_v62  ;;  %2844 = vmatmul.bf16.gmra.mxu1 %v7729_v29  ;;  %v6046_v16 = vld [vmem:[#allocation3 + $0x104] sm:$0xf0]  ;;  %v5466_v17 = vor.u32 %v6053_v12, %v5465_v49  ;;  %v6133_v12 = vld [vmem:[#allocation9 + $0xc0] sm:$0xff] }
 0x19e   : > { %2462 = vst [vmem:[#allocation3 + $0x1ac] sm:$0xf] %v2430_v11  ;;  %v1347_v32 = vpack.c.bf16 %v1300_v61, %v1300_v61  ;;  %v1443_v42 = vpack.c.bf16 %v1397_v39, %v1397_v39  ;;  %v657_v13 = vpop.f32.mrf.mxu0  ;;  %v5434_v28 = vor.u32 %v6046_v16, %v5433_v19  ;;  %3910 = vmatpush.bf16.msrb.mxu1 %v6135_v26 }
 0x19f   : > { %v658_v18 = vadd.f32 %v7536_v57, %v657_v13  ;;  %v7747_v61 = vpop.f32.mrf.mxu1 }
 0x1a0   : > { %v1572_v40 = vsel %vm6854_vm1, %v1347_v32, 0  ;;  %v1731_v4 = vsel %vm6854_vm1, %v1443_v42, 0  ;;  %v6134_v42 = vld [vmem:[#allocation9 + $0xc8] sm:$0xff] }
 0x1a1   : > { %1604 = vst [vmem:[#allocation3 + $0x228] sm:$0xf] %v1572_v40  ;;  %v704_v43 = vmax.f32 %v658_v18, 0.0 }
 0x1a2   : > { %1763 = vst [vmem:[#allocation3 + $0x214] sm:$0xf] %v1731_v4  ;;  %3911 = vmatpush.bf16.msrb.mxu1 %v6134_v42  ;;  %v5457_v42 = vld [vmem:[#allocation3 + $0x120] sm:$0xf] }
 0x1a3   : > { %2050 = vst [vmem:[#allocation3 + $0x200] sm:$0xf] %v1572_v40  ;;  %v1283_v52 = vrot.slane %v704_v43, 7  ;;  %v1380_v55 = vrot.slane %v704_v43, 1 }
 0x1a4   : > { %2113 = vst [vmem:[#allocation3 + $0x1ec] sm:$0xf] %v1731_v4 }
 0x1a5   : > { %2400 = vst [vmem:[#allocation3 + $0x1d8] sm:$0xf] %v1572_v40  ;;  %v1299_v10 = vsel %vm8758_vm7, %v1282_v56, %v1283_v52  ;;  %v1396_v38 = vsel %vm8759_vm5, %v1379_v62, %v1380_v55 }
 0x1a6   : > { %2463 = vst [vmem:[#allocation3 + $0x1c4] sm:$0xf] %v1731_v4  ;;  %v1348_v5 = vpack.c.bf16 %v1299_v10, %v1299_v10  ;;  %v1444_v11 = vpack.c.bf16 %v1396_v38, %v1396_v38  ;;  %v659_v39 = vpop.f32.mrf.mxu0  ;;  %3912 = vmatpush.bf16.msrb.mxu1 %v6133_v12  ;;  %v5481_v12 = vld [vmem:[#allocation3 + $0x150] sm:$0xf] }
 0x1a7   : > { %v660_v32 = vadd.f32 %v7536_v57, %v659_v39  ;;  %v6052_v39 = vld [vmem:[#allocation3 + $0x134] sm:$0xf0] }
 0x1a8   : > { %3671 = vmatmul.bf16.gmra.mxu2 %v5434_v28  ;;  %v1573_v56 = vsel %vm8760_vm10, %v1348_v5, 0  ;;  %v1732_v62 = vsel %vm8761_vm11, %v1444_v11, 0  ;;  %v2019_v13 = vsel %vm7710_vm3, %v1348_v5, 0  ;;  %v2082_v18 = vsel %vm7702_vm13, %v1444_v11, 0 }
 0x1a9   : > { %1605 = vst [vmem:[#allocation3 + $0x240] sm:$0xf] %v1573_v56  ;;  %v705_v40 = vmax.f32 %v660_v32, 0.0  ;;  %v2369_v57 = vsel %vm7667_vm4, %v1348_v5, 0  ;;  %v2432_v4 = vsel %vm7659_vm0, %v1444_v11, 0  ;;  %vm8765_vm0 = vmmov %vm8757_vm2 }
 0x1aa   : > { %3854 = vmatmul.bf16.gmra.mxu0 %v5466_v17  ;;  %1764 = vst [vmem:[#allocation3 + $0x22c] sm:$0xf] %v1732_v62  ;;  %vm8766_vm4 = vmmov %vm8765_vm0  ;;  %v7776_v17 = vpop.f32.mrf.mxu1  ;;  %v6059_v62 = vld [vmem:[#allocation3 + $0x16c] sm:$0xf0] }
 0x1ab   : > { %2051 = vst [vmem:[#allocation3 + $0x218] sm:$0xf] %v2019_v13  ;;  %v1284_v16 = vrot.slane %v705_v40, 7  ;;  %v1381_v19 = vrot.slane %v705_v40, 1  ;;  %v7762_v28 = vpack.c.bf16 %v705_v40, %v704_v43  ;;  %v5323_v43 = vld [vmem:[#allocation3 + $0x20] sm:$0xf0]  ;;  %v5458_v13 = vor.u32 %v6052_v39, %v5457_v42 }
 0x1ac   : > { %2114 = vst [vmem:[#allocation3 + $0x204] sm:$0xf] %v2082_v18  ;;  %v5490_v18 = vor.u32 %v6059_v62, %v5489_v51  ;;  %v5537_v39 = vld [vmem:[#allocation3 + $0x1b8] sm:$0xf]  ;;  %v6146_v62 = vld [vmem:[#allocation9 + $0x128] sm:$0xff] }
 0x1ad   : > { %8762 = vst [vmem:[#allocation20_spill] sm:$0xff] %v7762_v28  ;;  %v1297_v10 = vsel %vm8763_vm14, %v1284_v16, %v1285_v14  ;;  %v1298_v47 = vsel %vm8764_vm12, %v1283_v52, %v1284_v16  ;;  %v1394_v1 = vsel %vm8765_vm0, %v1381_v19, %v1382_v21  ;;  %v1395_v38 = vsel %vm8766_vm4, %v1380_v55, %v1381_v19  ;;  %v6014_v14 = vld [vmem:[#allocation3 + $0xc] sm:$0xf]  ;;  %v6058_v19 = vld [vmem:[#allocation3 + $0x164] sm:$0xf0] }
 0x1ae   : > { %2401 = vst [vmem:[#allocation3 + $0x1f0] sm:$0xf] %v2369_v57  ;;  %v1349_v49 = vpack.c.bf16 %v1298_v47, %v1298_v47  ;;  %v1350_v26 = vpack.c.bf16 %v1297_v10, %v1297_v10  ;;  %v1445_v5 = vpack.c.bf16 %v1395_v38, %v1395_v38  ;;  %v1446_v11 = vpack.c.bf16 %v1394_v1, %v1394_v1  ;;  %v5347_v57 = vld [vmem:[#allocation3 + $0x50] sm:$0xf0]  ;;  %v6065_v10 = vld [vmem:[#allocation3 + $0x19c] sm:$0xf0] }
 0x1af   : > { %2464 = vst [vmem:[#allocation3 + $0x1dc] sm:$0xf] %v2432_v4  ;;  %2849 = vmatmul.bf16.vlgmr.msrb.gmra.mxu3 %v7762_v28  ;;  %v5326_v55 = vor.u32 %v6014_v14, %v5323_v43  ;;  %v5350_v16 = vor.u32 %v6020_v25, %v5347_v57  ;;  %v5482_v41 = vor.u32 %v6058_v19, %v5481_v12  ;;  %v5513_v1 = vld [vmem:[#allocation3 + $0x188] sm:$0xf]  ;;  %v6064_v14 = vld [vmem:[#allocation3 + $0x194] sm:$0xf0] }
 0x1b0   : > { %8767 = vst [vmem:[#allocation21_spill] sm:$0xff] %v7776_v17  ;;  %v1574_v52 = vsel %vm6854_vm1, %v1349_v49, 0  ;;  %v1575_v21 = vsel %vm8768_vm9, %v1350_v26, 0  ;;  %v1733_v35 = vsel %vm6854_vm1, %v1445_v5, 0  ;;  %v1734_v32 = vsel %vm8769_vm15, %v1446_v11, 0 }
 0x1b1   : > { %1606 = vst [vmem:[#allocation3 + $0x258] sm:$0xf] %v1574_v52  ;;  %3913 = vmatmul.bf16.vlgmr.msrb.gmra.mxu1 %v5326_v55  ;;  %v2021_v56 = vsel %vm8760_vm10, %v1350_v26, 0  ;;  %v2084_v31 = vsel %vm8761_vm11, %v1446_v11, 0  ;;  %v2371_v40 = vsel %vm7710_vm3, %v1350_v26, 0  ;;  %v2434_v60 = vsel %vm7702_vm13, %v1446_v11, 0 }
 0x1b2   : > { %1607 = vst [vmem:[#allocation3 + $0x270] sm:$0xf] %v1575_v21  ;;  %v7791_v54 = vpop.f32.mrf.mxu1  ;;  %v5514_v38 = vor.u32 %v6065_v10, %v5513_v1  ;;  %v5371_v49 = vld [vmem:[#allocation3 + $0x80] sm:$0xf0]  ;;  %v6026_v5 = vld [vmem:[#allocation3 + $0x6c] sm:$0xf] }
 0x1b3   : > { %1765 = vst [vmem:[#allocation3 + $0x244] sm:$0xf] %v1733_v35  ;;  %v5374_v11 = vor.u32 %v6026_v5, %v5371_v49  ;;  %v6071_v21 = vld [vmem:[#allocation3 + $0x1cc] sm:$0xf0]  ;;  %v5395_v51 = vld [vmem:[#allocation3 + $0xb0] sm:$0xf0] }
 0x1b4   : > { %1766 = vst [vmem:[#allocation3 + $0x25c] sm:$0xf] %v1734_v32  ;;  %v6148_v32 = vld [vmem:[#allocation9 + $0x138] sm:$0xff]  ;;  %v5538_v42 = vor.u32 %v6071_v21, %v5537_v39  ;;  %v6070_v25 = vld [vmem:[#allocation3 + $0x1c4] sm:$0xf0]  ;;  %v6143_v5 = vld [vmem:[#allocation9 + $0x110] sm:$0xff] }
 0x1b5   : > { %2052 = vst [vmem:[#allocation3 + $0x230] sm:$0xf] %v1574_v52  ;;  %3994 = vmatpush.bf16.msrb.mxu2 %v6148_v32  ;;  %v5529_v19 = vld [vmem:[#allocation3 + $0x1b0] sm:$0xf]  ;;  %v6077_v12 = vld [vmem:[#allocation3 + $0x1fc] sm:$0xf0] }
 0x1b6   : > { %2053 = vst [vmem:[#allocation3 + $0x248] sm:$0xf] %v2021_v56  ;;  %v6147_v56 = vld [vmem:[#allocation9 + $0x130] sm:$0xff]  ;;  %v5530_v10 = vor.u32 %v6070_v25, %v5529_v19  ;;  %v5419_v39 = vld [vmem:[#allocation3 + $0xe0] sm:$0xf0] }
 0x1b7   : > { %8770 = vst [vmem:[#allocation22_spill] sm:$0xff] %v7791_v54  ;;  %v5553_v25 = vld [vmem:[#allocation3 + $0x1e0] sm:$0xf] }
 0x1b8   : > { %3676 = vmatmul.bf16.gmra.mxu2 %v5458_v13  ;;  %2115 = vst [vmem:[#allocation3 + $0x21c] sm:$0xf] %v1733_v35 }
 0x1b9   : > { %2116 = vst [vmem:[#allocation3 + $0x234] sm:$0xf] %v2084_v31  ;;  %3995 = vmatpush.bf16.msrb.mxu2 %v6147_v56  ;;  %v7827_v31 = vpack.c.bf16 %v7191_v30, %v7158_v36  ;;  %v5561_v36 = vld [vmem:[#allocation3 + $0x1e8] sm:$0xf]  ;;  %v6144_v30 = vld [vmem:[#allocation9 + $0x118] sm:$0xff] }
 0x1ba   : > { %3859 = vmatmul.bf16.gmra.mxu0 %v5490_v18  ;;  %2402 = vst [vmem:[#allocation3 + $0x208] sm:$0xf] %v1574_v52  ;;  %v7801_v4 = vpop.f32.mrf.mxu1  ;;  %v5505_v52 = vld [vmem:[#allocation3 + $0x180] sm:$0xf]  ;;  %v5562_v1 = vor.u32 %v6077_v12, %v5561_v36 }
 0x1bb   : > { %2403 = vst [vmem:[#allocation3 + $0x220] sm:$0xf] %v2371_v40  ;;  %v6032_v40 = vld [vmem:[#allocation3 + $0x9c] sm:$0xf] }
 0x1bc   : > { %2465 = vst [vmem:[#allocation3 + $0x1f4] sm:$0xf] %v1733_v35  ;;  %v5506_v35 = vor.u32 %v6064_v14, %v5505_v52  ;;  %v6142_v14 = vld [vmem:[#allocation9 + $0x108] sm:$0xff]  ;;  %v5601_v52 = vld [vmem:[#allocation3 + $0x240] sm:$0xf] }
 0x1bd   : > { %2466 = vst [vmem:[#allocation3 + $0x20c] sm:$0xf] %v2434_v60  ;;  %3996 = vmatpush.bf16.msrb.mxu2 %v6146_v62  ;;  %v5398_v60 = vor.u32 %v6032_v40, %v5395_v51  ;;  %v6076_v51 = vld [vmem:[#allocation3 + $0x1f4] sm:$0xf0]  ;;  %v6141_v40 = vld [vmem:[#allocation9 + $0x100] sm:$0xff] }
 0x1be   : > { %8772 = vst [vmem:[#allocation24_spill] sm:$0xff] %v7801_v4  ;;  %v5554_v19 = vor.u32 %v6076_v51, %v5553_v25  ;;  %v6122_v25 = vld [vmem:[#allocation9 + $0x68] sm:$0xff] }
 0x1bf   : > { %2854 = vmatmul.bf16.gmra.mxu3 %v7799_v3  ;;  %8777 = vst [vmem:[#allocation29_spill] sm:$0xff] %v7827_v31 }
 0x1c0   : > { %v5587_v4 = vld [vmem:[#allocation3 + $0x230] sm:$0xf0] }
 0x1c1   : > { %3918 = vmatmul.bf16.gmra.mxu1 %v5350_v16  ;;  %v6145_v16 = vld [vmem:[#allocation9 + $0x120] sm:$0xff] }
 0x1c2   : > { %v7806_v43 = vpop.f32.mrf.mxu1  ;;  %3997 = vmatpush.bf16.msrb.mxu2 %v6145_v16  ;;  %v6083_v16 = vld [vmem:[#allocation3 + $0x22c] sm:$0xf0] }
 0x1c3   : > { %8773 = vst [vmem:[#allocation25_spill] sm:$0xff] %v7806_v43 }
 0x1c6   : > { %3998 = vmatpush.bf16.msrb.mxu2 %v6144_v30 }
 0x1c7   : > { %v7804_v47 = vpop.f32.mrf.mxu0 }
 0x1c8   : > { %3681 = vmatmul.bf16.gmra.mxu2 %v5482_v41 }
 0x1ca   : > { %3864 = vmatmul.bf16.gmra.mxu0 %v5514_v38  ;;  %v7814_v26 = vpop.f32.mrf.mxu1  ;;  %3999 = vmatpush.bf16.msrb.mxu2 %v6143_v5  ;;  %v6123_v5 = vld [vmem:[#allocation9 + $0x70] sm:$0xff] }
 0x1cb   : > { %8775 = vst [vmem:[#allocation27_spill] sm:$0xff] %v7814_v26 }
 0x1ce   : > { %4000 = vmatpush.bf16.msrb.mxu2 %v6142_v14  ;;  %v6094_v14 = vld [vmem:[#allocation3 + $0x284] sm:$0xf0] }
 0x1cf   : > { %v7808_v63 = vpop.f32.mrf.mxu0  ;;  %2859 = vmatmul.bf16.gmra.mxu3 %v7812_v15  ;;  %v5377_v15 = vld [vmem:[#allocation3 + $0x70] sm:$0xf] }
 0x1d1   : > { %3923 = vmatmul.bf16.gmra.mxu1 %v5374_v11  ;;  %v6088_v11 = vld [vmem:[#allocation3 + $0x254] sm:$0xf0] }
 0x1d2   : > { %v7819_v7 = vpop.f32.mrf.mxu1  ;;  %4001 = vmatpush.bf16.msrb.mxu2 %v6141_v40 }
 0x1d3   : > { %8776 = vst [vmem:[#allocation28_spill] sm:$0xff] %v7819_v7 }
 0x1d7   : > { %v7817_v55 = vpop.f32.mrf.mxu0 }
 0x1d8   : > { %3686 = vmatmul.bf16.gmra.mxu2 %v5506_v35  ;;  %v5602_v35 = vor.u32 %v6088_v11, %v5601_v52  ;;  %v5625_v11 = vld [vmem:[#allocation3 + $0x270] sm:$0xf] }
 0x1da   : > { %3869 = vmatmul.bf16.gmra.mxu0 %v5538_v42  ;;  %v7829_v18 = vpop.f32.mrf.mxu1  ;;  %v6038_v42 = vld [vmem:[#allocation3 + $0xcc] sm:$0xf] }
 0x1db   : > { %v7821_v0 = vpop.f32.mrf.mxu2  ;;  %8778 = vst [vmem:[#allocation30_spill] sm:$0xff] %v7829_v18  ;;  %v5422_v56 = vor.u32 %v6038_v42, %v5419_v39  ;;  %v5443_v39 = vld [vmem:[#allocation3 + $0x110] sm:$0xf0]  ;;  %v6170_v18 = vld [vmem:[#allocation10 + $0x68] sm:$0xff] }
 0x1df   : > { %v7823_v13 = vpop.f32.mrf.mxu0  ;;  %2864 = vmatmul.bf16.gmra.mxu3 %v7827_v31 }
 0x1e1   : > { %3928 = vmatmul.bf16.gmra.mxu1 %v5398_v60  ;;  %v6124_v60 = vld [vmem:[#allocation9 + $0x78] sm:$0xff] }
 0x1e2   : > { %v7836_v38 = vpop.f32.mrf.mxu1  ;;  %3727 = vmatpush.bf16.msrb.mxu3 %v6124_v60  ;;  %v6082_v60 = vld [vmem:[#allocation3 + $0x224] sm:$0xf0] }
 0x1e3   : > { %v7832_v57 = vpop.f32.mrf.mxu2  ;;  %8779 = vst [vmem:[#allocation31_spill] sm:$0xff] %v7836_v38  ;;  %v6101_v38 = vld [vmem:[#allocation3 + $0x2bc] sm:$0xf0] }
 0x1e6   : > { %3728 = vmatpush.bf16.msrb.mxu3 %v6123_v5 }
 0x1e7   : > { %v7834_v41 = vpop.f32.mrf.mxu0 }
 0x1e8   : > { %3691 = vmatmul.bf16.gmra.mxu2 %v5530_v10  ;;  %v5585_v10 = vld [vmem:[#allocation3 + $0x218] sm:$0xf] }
 0x1e9   : > { %v5586_v36 = vor.u32 %v6083_v16, %v5585_v10  ;;  %v5577_v16 = vld [vmem:[#allocation3 + $0x210] sm:$0xf]  ;;  %v6089_v10 = vld [vmem:[#allocation3 + $0x25c] sm:$0xf0] }
 0x1ea   : > { %3874 = vmatmul.bf16.gmra.mxu0 %v5562_v1  ;;  %v7842_v32 = vpop.f32.mrf.mxu1  ;;  %3729 = vmatpush.bf16.msrb.mxu3 %v6122_v25 }
 0x1eb   : > { %v7838_v49 = vpop.f32.mrf.mxu2  ;;  %8780 = vst [vmem:[#allocation32_spill] sm:$0xff] %v7842_v32 }
 0x1ef   : > { %v7840_v21 = vpop.f32.mrf.mxu0  ;;  %3706 = vmatmul.bf16.vlgmr.msra.gmra.mxu3 %v5602_v35  ;;  %v5626_v35 = vor.u32 %v6094_v14, %v5625_v11 }
 0x1f1   : > { %3933 = vmatmul.bf16.gmra.mxu1 %v5422_v56  ;;  %v6044_v56 = vld [vmem:[#allocation3 + $0xfc] sm:$0xf] }
 0x1f2   : > { %v7848_v30 = vpop.f32.mrf.mxu1  ;;  %v5446_v51 = vor.u32 %v6044_v56, %v5443_v39  ;;  %v6121_v39 = vld [vmem:[#allocation9 + $0x60] sm:$0xff] }
 0x1f3   : > { %v7844_v62 = vpop.f32.mrf.mxu2  ;;  %8781 = vst [vmem:[#allocation33_spill] sm:$0xff] %v7848_v30  ;;  %v5649_v56 = vld [vmem:[#allocation3 + $0x2a0] sm:$0xf]  ;;  %3730 = vmatpush.bf16.msrb.mxu3 %v6121_v39  ;;  %v5467_v30 = vld [vmem:[#allocation3 + $0x140] sm:$0xf0] }
 0x1f7   : > { %v7846_v12 = vpop.f32.mrf.mxu0 }
 0x1f8   : > { %3696 = vmatmul.bf16.gmra.mxu2 %v5554_v19  ;;  %v5609_v19 = vld [vmem:[#allocation3 + $0x248] sm:$0xf] }
 0x1f9   : > { %v5610_v11 = vor.u32 %v6089_v10, %v5609_v19  ;;  %v6018_v19 = vld [vmem:[#allocation3 + $0x24] sm:$0xf0]  ;;  %v6120_v10 = vld [vmem:[#allocation9 + $0x58] sm:$0xff] }
 0x1fa   : > { %3879 = vmatmul.bf16.gmra.mxu0 %v5586_v36  ;;  %v7854_v42 = vpop.f32.mrf.mxu1  ;;  %v5578_v36 = vor.u32 %v6082_v60, %v5577_v16  ;;  %v6050_v60 = vld [vmem:[#allocation3 + $0x12c] sm:$0xf]  ;;  %3731 = vmatpush.bf16.msrb.mxu3 %v6120_v10 }
 0x1fb   : > { %v7850_v1 = vpop.f32.mrf.mxu2  ;;  %8782 = vst [vmem:[#allocation34_spill] sm:$0xff] %v7854_v42  ;;  %v5470_v25 = vor.u32 %v6050_v60, %v5467_v30  ;;  %v6119_v30 = vld [vmem:[#allocation9 + $0x50] sm:$0xff] }
 0x1fc   : > { %v5673_v60 = vld [vmem:[#allocation3 + $0x2d0] sm:$0xf] }
 0x1fe   : > { %3732 = vmatpush.bf16.msrb.mxu3 %v6119_v30  ;;  %v6172_v30 = vld [vmem:[#allocation10 + $0x78] sm:$0xff] }
 0x1ff   : > { %v7852_v52 = vpop.f32.mrf.mxu0  ;;  %3711 = vmatmul.bf16.gmra.mxu3 %v5626_v35  ;;  %4284 = vmatpush.bf16.msra.mxu0 %v6172_v30  ;;  %v6030_v30 = vld [vmem:[#allocation3 + $0x84] sm:$0xf0] }
 0x201   : > { %3938 = vmatmul.bf16.gmra.mxu1 %v5446_v51  ;;  %v5650_v51 = vor.u32 %v6100_v27, %v5649_v56 }
 0x202   : > { %v7860_v14 = vpop.f32.mrf.mxu1 }
 0x203   : > { %v7856_v40 = vpop.f32.mrf.mxu2  ;;  %8784 = vst [vmem:[#allocation36_spill] sm:$0xff] %v7860_v14  ;;  %v6095_v14 = vld [vmem:[#allocation3 + $0x28c] sm:$0xf0] }
 0x207   : > { %v7858_v5 = vpop.f32.mrf.mxu0 }
 0x208   : > { %8783 = vst [vmem:[#allocation35_spill] sm:$0xff] %v7858_v5  ;;  %3701 = vmatmul.bf16.gmra.mxu2 %v5578_v36  ;;  %v5329_v36 = vld [vmem:[#allocation3 + $0x10] sm:$0xf]  ;;  %v6154_v5 = vld [vmem:[#allocation9 + $0x168] sm:$0xff] }
 0x209   : > { %v5330_v22 = vor.u32 %v6018_v19, %v5329_v36  ;;  %v6056_v19 = vld [vmem:[#allocation3 + $0x15c] sm:$0xf] }
 0x20a   : > { %3884 = vmatmul.bf16.gmra.mxu0 %v5610_v11  ;;  %v7866_v58 = vpop.f32.mrf.mxu1  ;;  %v5633_v11 = vld [vmem:[#allocation3 + $0x278] sm:$0xf] }
 0x20b   : > { %v7862_v35 = vpop.f32.mrf.mxu2  ;;  %8786 = vst [vmem:[#allocation38_spill] sm:$0xff] %v7866_v58  ;;  %v5634_v27 = vor.u32 %v6095_v14, %v5633_v11  ;;  %v6024_v14 = vld [vmem:[#allocation3 + $0x54] sm:$0xf0]  ;;  %v6118_v11 = vld [vmem:[#allocation9 + $0x48] sm:$0xff] }
 0x20c   : > { %3733 = vmatpush.bf16.msrb.mxu3 %v6118_v11  ;;  %v5515_v11 = vld [vmem:[#allocation3 + $0x1a0] sm:$0xf0] }
 0x20f   : > { %v7864_v42 = vpop.f32.mrf.mxu0  ;;  %3716 = vmatmul.bf16.gmra.mxu3 %v5650_v51 }
 0x210   : > { %8785 = vst [vmem:[#allocation37_spill] sm:$0xff] %v7864_v42  ;;  %v6106_v42 = vld [vmem:[#allocation3 + $0x2e4] sm:$0xf0] }
 0x211   : > { %3943 = vmatmul.bf16.gmra.mxu1 %v5470_v25  ;;  %v5674_v58 = vor.u32 %v6106_v42, %v5673_v60  ;;  %v5491_v25 = vld [vmem:[#allocation3 + $0x170] sm:$0xf0] }
 0x212   : > { %v7872_v56 = vpop.f32.mrf.mxu1 }
 0x213   : > { %v7868_v16 = vpop.f32.mrf.mxu2  ;;  %8788 = vst [vmem:[#allocation40_spill] sm:$0xff] %v7872_v56  ;;  %v5657_v56 = vld [vmem:[#allocation3 + $0x2a8] sm:$0xf] }
 0x214   : > { %v5658_v42 = vor.u32 %v6101_v38, %v5657_v56 }
 0x217   : > { %v7870_v39 = vpop.f32.mrf.mxu0 }
 0x218   : > { %4002 = vmatmul.bf16.vlgmr.msrb.gmra.mxu2 %v5330_v22  ;;  %8787 = vst [vmem:[#allocation39_spill] sm:$0xff] %v7870_v39  ;;  %v5494_v22 = vor.u32 %v6056_v19, %v5491_v25  ;;  %v6171_v25 = vld [vmem:[#allocation10 + $0x70] sm:$0xff] }
 0x219   : > { %4285 = vmatpush.bf16.msra.mxu0 %v6171_v25  ;;  %v5681_v25 = vld [vmem:[#allocation3 + $0x2d8] sm:$0xf] }
 0x21a   : > { %3889 = vmatmul.bf16.gmra.mxu0 %v5634_v27  ;;  %v7876_v32 = vpop.f32.mrf.mxu1  ;;  %v5353_v27 = vld [vmem:[#allocation3 + $0x40] sm:$0xf] }
 0x21b   : > { %v7874_v51 = vpop.f32.mrf.mxu2  ;;  %8790 = vst [vmem:[#allocation42_spill] sm:$0xff] %v7876_v32  ;;  %v5354_v31 = vor.u32 %v6024_v14, %v5353_v27  ;;  %v6013_v32 = vld [vmem:[#allocation3 + $0x4] sm:$0xf] }
 0x21c   : > { %8789 = vst [vmem:[#allocation41_spill] sm:$0xff] %v7874_v51 }
 0x21d   : > { %4286 = vmatpush.bf16.msra.mxu0 %v6170_v18  ;;  %v6168_v18 = vld [vmem:[#allocation10 + $0x58] sm:$0xff] }
 0x21f   : > { %3721 = vmatmul.bf16.gmra.mxu3 %v5674_v58  ;;  %v7878_v10 = vpop.f32.mrf.mxu0 }
 0x220   : > { %8791 = vst [vmem:[#allocation43_spill] sm:$0xff] %v7878_v10  ;;  %v6117_v10 = vld [vmem:[#allocation9 + $0x40] sm:$0xff] }
 0x221   : > { %3948 = vmatmul.bf16.gmra.mxu1 %v5494_v22  ;;  %v5315_v22 = vld [vmem:[#allocation3 + $0x18] sm:$0xf0]  ;;  %3734 = vmatpush.bf16.msrb.mxu3 %v6117_v10  ;;  %v6107_v10 = vld [vmem:[#allocation3 + $0x2ec] sm:$0xf0] }
 0x222   : > { %v7882_v60 = vpop.f32.mrf.mxu1  ;;  %v5318_v14 = vor.u32 %v6013_v32, %v5315_v22  ;;  %v5378_v32 = vor.u32 %v6030_v30, %v5377_v15  ;;  %v6019_v15 = vld [vmem:[#allocation3 + $0x34] sm:$0xf] }
 0x223   : > { %v7880_v36 = vpop.f32.mrf.mxu2  ;;  %8793 = vst [vmem:[#allocation45_spill] sm:$0xff] %v7882_v60  ;;  %v6156_v60 = vld [vmem:[#allocation9 + $0x178] sm:$0xff] }
 0x224   : > { %8792 = vst [vmem:[#allocation44_spill] sm:$0xff] %v7880_v36  ;;  %v5449_v36 = vld [vmem:[#allocation3 + $0x100] sm:$0xf] }
 0x225   : > { %4083 = vmatpush.bf16.msra.mxu3 %v6156_v60  ;;  %v5539_v60 = vld [vmem:[#allocation3 + $0x1d0] sm:$0xf0] }
 0x227   : > { %v7886_v19 = vpop.f32.mrf.mxu0 }
 0x228   : > { %4007 = vmatmul.bf16.gmra.mxu2 %v5354_v31  ;;  %8795 = vst [vmem:[#allocation47_spill] sm:$0xff] %v7886_v19  ;;  %v6062_v31 = vld [vmem:[#allocation3 + $0x18c] sm:$0xf]  ;;  %v6180_v19 = vld [vmem:[#allocation10 + $0xb8] sm:$0xff] }
 0x229   : > { %v5518_v38 = vor.u32 %v6062_v31, %v5515_v11  ;;  %4517 = vmatpush.bf16.msra.mxu1 %v6180_v19 }
 0x22a   : > { %3894 = vmatmul.bf16.gmra.mxu0 %v5658_v42  ;;  %v6169_v42 = vld [vmem:[#allocation10 + $0x60] sm:$0xff] }
 0x22b   : > { %v7884_v58 = vpop.f32.mrf.mxu2  ;;  %4287 = vmatpush.bf16.msra.mxu0 %v6169_v42  ;;  %v5339_v42 = vld [vmem:[#allocation3 + $0x48] sm:$0xf0] }
 0x22c   : > { %8794 = vst [vmem:[#allocation46_spill] sm:$0xff] %v7884_v58  ;;  %v5342_v30 = vor.u32 %v6019_v15, %v5339_v42  ;;  %v6080_v58 = vld [vmem:[#allocation3 + $0x21c] sm:$0xf] }
 0x22e   : > { %v7888_v27 = vpop.f32.mrf.mxu1 }
 0x22f   : > { %3735 = vmatmul.bf16.vlgmr.msrb.gmra.mxu3 %v5318_v14  ;;  %v7894_v22 = vpop.f32.mrf.mxu0  ;;  %v5682_v14 = vor.u32 %v6107_v10, %v5681_v25  ;;  %4288 = vmatpush.bf16.msra.mxu0 %v6168_v18  ;;  %v6068_v10 = vld [vmem:[#allocation3 + $0x1bc] sm:$0xf] }
 0x230   : > { %8797 = vst [vmem:[#allocation49_spill] sm:$0xff] %v7894_v22 }
 0x231   : > { %3953 = vmatmul.bf16.gmra.mxu1 %v5518_v38  ;;  %v6167_v38 = vld [vmem:[#allocation10 + $0x50] sm:$0xff] }
 0x232   : > { %v7892_v7 = vpop.f32.mrf.mxu3 }
 0x233   : > { %v7890_v56 = vpop.f32.mrf.mxu2  ;;  %4289 = vmatpush.bf16.msra.mxu0 %v6167_v38  ;;  %v5401_v38 = vld [vmem:[#allocation3 + $0xa0] sm:$0xf] }
 0x234   : > { %8796 = vst [vmem:[#allocation48_spill] sm:$0xff] %v7890_v56  ;;  %v6166_v56 = vld [vmem:[#allocation10 + $0x48] sm:$0xff] }
 0x236   : > { %v7896_v11 = vpop.f32.mrf.mxu1 }
 0x237   : > { %v7902_v22 = vpop.f32.mrf.mxu0  ;;  %4290 = vmatpush.bf16.msra.mxu0 %v6166_v56 }
 0x238   : > { %4012 = vmatmul.bf16.gmra.mxu2 %v5378_v32  ;;  %8799 = vst [vmem:[#allocation51_spill] sm:$0xff] %v7902_v22  ;;  %v5542_v32 = vor.u32 %v6068_v10, %v5539_v60  ;;  %v5363_v60 = vld [vmem:[#allocation3 + $0x78] sm:$0xf0]  ;;  %v6025_v10 = vld [vmem:[#allocation3 + $0x64] sm:$0xf] }
 0x239   : > { %v5366_v22 = vor.u32 %v6025_v10, %v5363_v60  ;;  %v6179_v10 = vld [vmem:[#allocation10 + $0xb0] sm:$0xff] }
 0x23a   : > { %3899 = vmatmul.bf16.gmra.mxu0 %v5682_v14  ;;  %v7900_v26 = vpop.f32.mrf.mxu3  ;;  %v6036_v14 = vld [vmem:[#allocation3 + $0xb4] sm:$0xf0]  ;;  %4518 = vmatpush.bf16.msra.mxu1 %v6179_v10 }
 0x23b   : > { %v7898_v31 = vpop.f32.mrf.mxu2  ;;  %v5402_v19 = vor.u32 %v6036_v14, %v5401_v38 }
 0x23c   : > { %8798 = vst [vmem:[#allocation50_spill] sm:$0xff] %v7898_v31  ;;  %v6165_v31 = vld [vmem:[#allocation10 + $0x40] sm:$0xff] }
 0x23d   : > { %4291 = vmatpush.bf16.msra.mxu0 %v6165_v31  ;;  %v6074_v31 = vld [vmem:[#allocation3 + $0x1ec] sm:$0xf] }
 0x23e   : > { %v7904_v25 = vpop.f32.mrf.mxu1 }
 0x23f   : > { %3740 = vmatmul.bf16.gmra.mxu3 %v5342_v30  ;;  %v7912_v15 = vpop.f32.mrf.mxu0 }
 0x240   : > { %8801 = vst [vmem:[#allocation53_spill] sm:$0xff] %v7912_v15 }
 0x241   : > { %3958 = vmatmul.bf16.gmra.mxu1 %v5542_v32  ;;  %v5563_v32 = vld [vmem:[#allocation3 + $0x200] sm:$0xf0] }
 0x242   : > { %v7908_v43 = vpop.f32.mrf.mxu3  ;;  %v5566_v14 = vor.u32 %v6074_v31, %v5563_v32  ;;  %v5387_v31 = vld [vmem:[#allocation3 + $0xa8] sm:$0xf0] }
 0x243   : > { %v7906_v18 = vpop.f32.mrf.mxu2 }
 0x244   : > { %8800 = vst [vmem:[#allocation52_spill] sm:$0xff] %v7906_v18 }
 0x246   : > { %v7910_v42 = vpop.f32.mrf.mxu1 }
 0x247   : > { %v7923_v3 = vpop.f32.mrf.mxu0 }
 0x248   : > { %4017 = vmatmul.bf16.gmra.mxu2 %v5402_v19  ;;  %v6042_v19 = vld [vmem:[#allocation3 + $0xe4] sm:$0xf0]  ;;  %8804 = vst [vmem:[#allocation56_spill] sm:$0xff] %v7923_v3 }
 0x24a   : > { %4292 = vmatmul.bf16.vlgmr.msra.gmra.mxu0 %v6906_v2  ;;  %v7917_v30 = vpop.f32.mrf.mxu3  ;;  %v6155_v2 = vld [vmem:[#allocation9 + $0x170] sm:$0xff] }
 0x24b   : > { %v7915_v56 = vpop.f32.mrf.mxu2  ;;  %4084 = vmatpush.bf16.msra.mxu3 %v6155_v2  ;;  %v6048_v2 = vld [vmem:[#allocation3 + $0x114] sm:$0xf0] }
 0x24c   : > { %8802 = vst [vmem:[#allocation54_spill] sm:$0xff] %v7915_v56  ;;  %v5425_v56 = vld [vmem:[#allocation3 + $0xd0] sm:$0xf]  ;;  %v5450_v54 = vor.u32 %v6048_v2, %v5449_v36 }
 0x24d   : > { %v5426_v39 = vor.u32 %v6042_v19, %v5425_v56 }
 0x24e   : > { %v7919_v18 = vpop.f32.mrf.mxu1 }
 0x24f   : > { %3745 = vmatmul.bf16.gmra.mxu3 %v5366_v22 }
 0x250   : > { %4085 = vmatpush.bf16.msra.mxu3 %v6154_v5  ;;  %v5635_v5 = vld [vmem:[#allocation3 + $0x290] sm:$0xf0] }
 0x251   : > { %3963 = vmatmul.bf16.gmra.mxu1 %v5566_v14  ;;  %v6031_v14 = vld [vmem:[#allocation3 + $0x94] sm:$0xf] }
 0x252   : > { %v7925_v15 = vpop.f32.mrf.mxu3  ;;  %v5390_v3 = vor.u32 %v6031_v14, %v5387_v31 }
 0x253   : > { %v7921_v38 = vpop.f32.mrf.mxu2 }
 0x254   : > { %8803 = vst [vmem:[#allocation55_spill] sm:$0xff] %v7921_v38  ;;  %v7934_v38 = vpop.f32.mrf.mxu0 }
 0x255   : > { %8806 = vst [vmem:[#allocation58_spill] sm:$0xff] %v7934_v38  ;;  %v6086_v38 = vld [vmem:[#allocation3 + $0x24c] sm:$0xf] }
 0x256   : > { %v7927_v60 = vpop.f32.mrf.mxu1 }
 0x258   : > { %4022 = vmatmul.bf16.gmra.mxu2 %v5426_v39  ;;  %v5590_v39 = vor.u32 %v6080_v58, %v5587_v4  ;;  %v6037_v4 = vld [vmem:[#allocation3 + $0xc4] sm:$0xf] }
 0x25a   : > { %4297 = vmatmul.bf16.gmra.mxu0 %v7046_v37  ;;  %v7932_v32 = vpop.f32.mrf.mxu3 }
 0x25b   : > { %v7930_v22 = vpop.f32.mrf.mxu2 }
 0x25c   : > { %8805 = vst [vmem:[#allocation57_spill] sm:$0xff] %v7930_v22  ;;  %v7942_v28 = vpop.f32.mrf.mxu0 }
 0x25d   : > { %8808 = vst [vmem:[#allocation60_spill] sm:$0xff] %v7942_v28  ;;  %v6054_v28 = vld [vmem:[#allocation3 + $0x144] sm:$0xf0] }
 0x25e   : > { %v7936_v56 = vpop.f32.mrf.mxu1 }
 0x25f   : > { %3750 = vmatmul.bf16.gmra.mxu3 %v5390_v3  ;;  %v5411_v3 = vld [vmem:[#allocation3 + $0xd8] sm:$0xf0] }
 0x260   : > { %v5414_v58 = vor.u32 %v6037_v4, %v5411_v3 }
 0x261   : > { %3968 = vmatmul.bf16.gmra.mxu1 %v5590_v39  ;;  %v5611_v39 = vld [vmem:[#allocation3 + $0x260] sm:$0xf0] }
 0x262   : > { %v7940_v22 = vpop.f32.mrf.mxu3 }
 0x263   : > { %v7938_v19 = vpop.f32.mrf.mxu2 }
 0x264   : > { %8807 = vst [vmem:[#allocation59_spill] sm:$0xff] %v7938_v19  ;;  %v7953_v36 = vpop.f32.mrf.mxu0 }
 0x265   : > { %8811 = vst [vmem:[#allocation63_spill] sm:$0xff] %v7953_v36 }
 0x266   : > { %v7944_v10 = vpop.f32.mrf.mxu1 }
 0x267   : > { %8809 = vst [vmem:[#allocation61_spill] sm:$0xff] %v7944_v10 }
 0x268   : > { %4027 = vmatmul.bf16.gmra.mxu2 %v5450_v54  ;;  %v5614_v54 = vor.u32 %v6086_v38, %v5611_v39  ;;  %v6178_v38 = vld [vmem:[#allocation10 + $0xa8] sm:$0xff] }
 0x269   : > { %4519 = vmatpush.bf16.msra.mxu1 %v6178_v38 }
 0x26a   : > { %4302 = vmatmul.bf16.gmra.mxu0 %v7177_v6  ;;  %v7949_v14 = vpop.f32.mrf.mxu3 }
 0x26b   : > { %v7947_v31 = vpop.f32.mrf.mxu2 }
 0x26c   : > { %8810 = vst [vmem:[#allocation62_spill] sm:$0xff] %v7947_v31  ;;  %v5473_v31 = vld [vmem:[#allocation3 + $0x130] sm:$0xf] }
 0x26d   : > { %v5474_v17 = vor.u32 %v6054_v28, %v5473_v31  ;;  %v6092_v28 = vld [vmem:[#allocation3 + $0x27c] sm:$0xf] }
 0x26e   : > { %v7951_v19 = vpop.f32.mrf.mxu1  ;;  %v5638_v31 = vor.u32 %v6092_v28, %v5635_v5  ;;  %v6049_v5 = vld [vmem:[#allocation3 + $0x124] sm:$0xf] }
 0x26f   : > { %3755 = vmatmul.bf16.gmra.mxu3 %v5414_v58  ;;  %v7965_v58 = vpop.f32.mrf.mxu0 }
 0x270   : > { %8816 = vst [vmem:[#allocation68_spill] sm:$0xff] %v7965_v58  ;;  %v5497_v58 = vld [vmem:[#allocation3 + $0x160] sm:$0xf] }
 0x271   : > { %3973 = vmatmul.bf16.gmra.mxu1 %v5614_v54  ;;  %v5435_v54 = vld [vmem:[#allocation3 + $0x108] sm:$0xf0] }
 0x272   : > { %v3707_v10 = vpop.f32.mrf.mxu3 }
 0x273   : > { %v7955_v2 = vpop.f32.mrf.mxu2  ;;  %v7958_v51 = vadd.f32 %v3707_v10, %v7892_v7  ;;  %v6043_v7 = vld [vmem:[#allocation3 + $0xf4] sm:$0xf] }
 0x274   : > { %8812 = vst [vmem:[#allocation64_spill] sm:$0xff] %v7955_v2  ;;  %v5438_v10 = vor.u32 %v6043_v7, %v5435_v54 }
 0x275   : > { %8813 = vst [vmem:[#allocation65_spill] sm:$0xff] %v7958_v51  ;;  %v6060_v51 = vld [vmem:[#allocation3 + $0x174] sm:$0xf0] }
 0x276   : > { %v7960_v3 = vpop.f32.mrf.mxu1  ;;  %v5498_v38 = vor.u32 %v6060_v51, %v5497_v58 }
 0x277   : > { %8814 = vst [vmem:[#allocation66_spill] sm:$0xff] %v7960_v3 }
 0x278   : > { %4032 = vmatmul.bf16.gmra.mxu2 %v5474_v17 }
 0x27a   : > { %4307 = vmatmul.bf16.gmra.mxu0 %v7300_v34  ;;  %v3709_v39 = vpop.f32.mrf.mxu3 }
 0x27b   : > { %v7963_v4 = vpop.f32.mrf.mxu2  ;;  %v7968_v36 = vadd.f32 %v3709_v39, %v7900_v26  ;;  %v7977_v26 = vpop.f32.mrf.mxu0 }
 0x27c   : > { %8815 = vst [vmem:[#allocation67_spill] sm:$0xff] %v7963_v4 }
 0x27d   : > { %8817 = vst [vmem:[#allocation69_spill] sm:$0xff] %v7968_v36  ;;  %v6098_v36 = vld [vmem:[#allocation3 + $0x2ac] sm:$0xf] }
 0x27e   : > { %v7970_v17 = vpop.f32.mrf.mxu1  ;;  %8819 = vst [vmem:[#allocation71_spill] sm:$0xff] %v7977_v26  ;;  %v6153_v26 = vld [vmem:[#allocation9 + $0x160] sm:$0xff] }
 0x27f   : > { %3760 = vmatmul.bf16.gmra.mxu3 %v5438_v10  ;;  %v5459_v10 = vld [vmem:[#allocation3 + $0x138] sm:$0xf0] }
 0x280   : > { %4086 = vmatpush.bf16.msra.mxu3 %v6153_v26  ;;  %v6055_v26 = vld [vmem:[#allocation3 + $0x154] sm:$0xf] }
 0x281   : > { %3978 = vmatmul.bf16.gmra.mxu1 %v5638_v31  ;;  %v5462_v31 = vor.u32 %v6049_v5, %v5459_v10  ;;  %v6177_v5 = vld [vmem:[#allocation10 + $0xa0] sm:$0xff] }
 0x282   : > { %v3712_v4 = vpop.f32.mrf.mxu3  ;;  %4520 = vmatpush.bf16.msra.mxu1 %v6177_v5  ;;  %v5545_v5 = vld [vmem:[#allocation3 + $0x1c0] sm:$0xf] }
 0x283   : > { %v7972_v3 = vpop.f32.mrf.mxu2  ;;  %v7975_v2 = vadd.f32 %v3712_v4, %v7908_v43  ;;  %v5659_v43 = vld [vmem:[#allocation3 + $0x2c0] sm:$0xf0]  ;;  %v7987_v4 = vpop.f32.mrf.mxu0 }
 0x284   : > { %8823 = vst [vmem:[#allocation75_spill] sm:$0xff] %v7987_v4  ;;  %v5662_v51 = vor.u32 %v6098_v36, %v5659_v43  ;;  %v5483_v43 = vld [vmem:[#allocation3 + $0x168] sm:$0xf0] }
 0x285   : > { %8818 = vst [vmem:[#allocation70_spill] sm:$0xff] %v7975_v2 }
 0x286   : > { %v7982_v54 = vpop.f32.mrf.mxu1 }
 0x287   : > { %8821 = vst [vmem:[#allocation73_spill] sm:$0xff] %v7982_v54  ;;  %v5521_v54 = vld [vmem:[#allocation3 + $0x190] sm:$0xf] }
 0x288   : > { %4037 = vmatmul.bf16.gmra.mxu2 %v5498_v38  ;;  %v6066_v38 = vld [vmem:[#allocation3 + $0x1a4] sm:$0xf0] }
 0x28a   : > { %4312 = vmatmul.bf16.gmra.mxu0 %v7422_v48  ;;  %v3714_v7 = vpop.f32.mrf.mxu3 }
 0x28b   : > { %v7980_v39 = vpop.f32.mrf.mxu2  ;;  %v7985_v28 = vadd.f32 %v3714_v7, %v7917_v30  ;;  %v5522_v30 = vor.u32 %v6066_v38, %v5521_v54  ;;  %v7996_v10 = vpop.f32.mrf.mxu0  ;;  %v5683_v54 = vld [vmem:[#allocation3 + $0x2f0] sm:$0xf0] }
 0x28c   : > { %8820 = vst [vmem:[#allocation72_spill] sm:$0xff] %v7980_v39 }
 0x28d   : > { %8822 = vst [vmem:[#allocation74_spill] sm:$0xff] %v7985_v28  ;;  %v6176_v28 = vld [vmem:[#allocation10 + $0x98] sm:$0xff] }
 0x28e   : > { %v7994_v7 = vpop.f32.mrf.mxu1  ;;  %8826 = vst [vmem:[#allocation78_spill] sm:$0xff] %v7996_v10  ;;  %4521 = vmatpush.bf16.msra.mxu1 %v6176_v28  ;;  %v6173_v28 = vld [vmem:[#allocation10 + $0x80] sm:$0xff] }
 0x28f   : > { %3765 = vmatmul.bf16.gmra.mxu3 %v5462_v31 }
 0x291   : > { %3983 = vmatmul.bf16.gmra.mxu1 %v5662_v51 }
 0x292   : > { %v3717_v2 = vpop.f32.mrf.mxu3 }
 0x293   : > { %v7989_v58 = vpop.f32.mrf.mxu2  ;;  %v7992_v39 = vadd.f32 %v3717_v2, %v7925_v15  ;;  %v5486_v15 = vor.u32 %v6055_v26, %v5483_v43  ;;  %v6104_v2 = vld [vmem:[#allocation3 + $0x2dc] sm:$0xf]  ;;  %v6175_v43 = vld [vmem:[#allocation10 + $0x90] sm:$0xff] }
 0x294   : > { %8824 = vst [vmem:[#allocation76_spill] sm:$0xff] %v7989_v58  ;;  %v8008_v58 = vpop.f32.mrf.mxu0  ;;  %4522 = vmatpush.bf16.msra.mxu1 %v6175_v43  ;;  %v6078_v43 = vld [vmem:[#allocation3 + $0x204] sm:$0xf0] }
 0x295   : > { %8825 = vst [vmem:[#allocation77_spill] sm:$0xff] %v7992_v39  ;;  %v6072_v39 = vld [vmem:[#allocation3 + $0x1d4] sm:$0xf0] }
 0x296   : > { %v8004_v38 = vpop.f32.mrf.mxu1 }
 0x297   : > { %8828 = vst [vmem:[#allocation80_spill] sm:$0xff] %v8004_v38  ;;  %v5507_v38 = vld [vmem:[#allocation3 + $0x198] sm:$0xf0] }
 0x298   : > { %4042 = vmatmul.bf16.gmra.mxu2 %v5522_v30  ;;  %v5686_v30 = vor.u32 %v6104_v2, %v5683_v54  ;;  %v6174_v2 = vld [vmem:[#allocation10 + $0x88] sm:$0xff] }
 0x299   : > { %4523 = vmatpush.bf16.msra.mxu1 %v6174_v2  ;;  %v5569_v2 = vld [vmem:[#allocation3 + $0x1f0] sm:$0xf] }
 0x29a   : > { %4317 = vmatmul.bf16.gmra.mxu0 %v7495_v59  ;;  %v3719_v31 = vpop.f32.mrf.mxu3 }
 0x29b   : > { %v7999_v36 = vpop.f32.mrf.mxu2  ;;  %v8002_v51 = vadd.f32 %v3719_v31, %v7932_v32  ;;  %v5546_v31 = vor.u32 %v6072_v39, %v5545_v5  ;;  %v6061_v39 = vld [vmem:[#allocation3 + $0x184] sm:$0xf]  ;;  %v3648_v5 = vadd.f32 %v7821_v0, %v7600_v20  ;;  %v3650_v20 = vadd.f32 %v7832_v57, %v7628_v50 }
 0x29c   : > { %v3653_v50 = vadd.f32 %v7838_v49, %v7652_v33  ;;  %v3655_v33 = vadd.f32 %v7844_v62, %v7671_v45  ;;  %v3658_v62 = vadd.f32 %v7850_v1, %v7695_v24  ;;  %v3660_v1 = vadd.f32 %v7856_v40, %v7714_v23 }
 0x29d   : > { %8827 = vst [vmem:[#allocation79_spill] sm:$0xff] %v8002_v51  ;;  %4524 = vmatpush.bf16.msra.mxu1 %v6173_v28  ;;  %v3663_v23 = vadd.f32 %v7862_v35, %v7736_v44 }
 0x29e   : > { %v8013_v26 = vpop.f32.mrf.mxu1 }
 0x29f   : > { %3770 = vmatmul.bf16.gmra.mxu3 %v5486_v15 }
 0x2a1   : > { %3988 = vmatmul.bf16.gmra.mxu1 %v5686_v30 }
 0x2a2   : > { %v3722_v4 = vpop.f32.mrf.mxu3 }
 0x2a3   : > { %v8006_v10 = vpop.f32.mrf.mxu2  ;;  %v8011_v32 = vadd.f32 %v3722_v4, %v7940_v22  ;;  %v8021_v22 = vpop.f32.mrf.mxu0  ;;  %v5510_v4 = vor.u32 %v6061_v39, %v5507_v38  ;;  %v5531_v39 = vld [vmem:[#allocation3 + $0x1c8] sm:$0xf0] }
 0x2a4   : > { %8831 = vst [vmem:[#allocation83_spill] sm:$0xff] %v8021_v22  ;;  %v5570_v22 = vor.u32 %v6078_v43, %v5569_v2  ;;  %v5593_v2 = vld [vmem:[#allocation3 + $0x220] sm:$0xf] }
 0x2a5   : > { %8829 = vst [vmem:[#allocation81_spill] sm:$0xff] %v8011_v32  ;;  %v6152_v32 = vld [vmem:[#allocation9 + $0x158] sm:$0xff] }
 0x2a6   : > { %v8027_v51 = vpop.f32.mrf.mxu1  ;;  %4087 = vmatpush.bf16.msra.mxu3 %v6152_v32 }
 0x2a7   : > { %8832 = vst [vmem:[#allocation84_spill] sm:$0xff] %v8027_v51  ;;  %v8881_v51 = vld [vmem:[#allocation60_spill] sm:$0xff] }
 0x2a8   : > { %4047 = vmatmul.bf16.gmra.mxu2 %v5546_v31 }
 0x2aa   : > { %4322 = vmatmul.bf16.gmra.mxu0 %v7549_v53  ;;  %v3724_v54 = vpop.f32.mrf.mxu3 }
 0x2ab   : > { %v8016_v15 = vpop.f32.mrf.mxu2  ;;  %v8019_v30 = vadd.f32 %v3724_v54, %v7949_v14 }
 0x2ad   : > { %8830 = vst [vmem:[#allocation82_spill] sm:$0xff] %v8019_v30  ;;  %v8030_v30 = vpop.f32.mrf.mxu0 }
 0x2ae   : > { %v8039_v32 = vpop.f32.mrf.mxu1 }
 0x2af   : > { %3775 = vmatmul.bf16.gmra.mxu3 %v5510_v4 }
 0x2b1   : > { %4525 = vmatmul.bf16.vlgmr.msra.gmra.mxu1 %v7046_v37 }
 0x2b2   : > { %v3736_v14 = vpop.f32.mrf.mxu3 }
 0x2b3   : > { %v8025_v31 = vpop.f32.mrf.mxu2  ;;  %v3737_v54 = vadd.f32 %v3736_v14, %v3648_v5  ;;  %v6067_v5 = vld [vmem:[#allocation3 + $0x1b4] sm:$0xf] }
 0x2b5   : > { %v3826_v38 = vadd.f32 %v7804_v47, %v3737_v54  ;;  %v8045_v14 = vpop.f32.mrf.mxu0 }
 0x2b6   : > { %8833 = vst [vmem:[#allocation85_spill] sm:$0xff] %v8045_v14 }
 0x2b7   : > { %v3915_v37 = vadd.f32 %v7888_v27, %v3826_v38  ;;  %v6084_v27 = vld [vmem:[#allocation3 + $0x234] sm:$0xf0] }
 0x2b8   : > { %4052 = vmatmul.bf16.gmra.mxu2 %v5570_v22  ;;  %v5534_v22 = vor.u32 %v6067_v5, %v5531_v39 }
 0x2b9   : > { %v8042_v43 = vadd.f32 %v7999_v36, %v3915_v37 }
 0x2ba   : > { %4327 = vmatmul.bf16.gmra.mxu0 %v7596_v9  ;;  %v3738_v28 = vpop.f32.mrf.mxu3 }
 0x2bb   : > { %v8036_v0 = vpop.f32.mrf.mxu2  ;;  %v3739_v4 = vadd.f32 %v3738_v28, %v3650_v20  ;;  %v5594_v20 = vor.u32 %v6084_v27, %v5593_v2  ;;  %v5617_v27 = vld [vmem:[#allocation3 + $0x250] sm:$0xf] }
 0x2bd   : > { %v3828_v47 = vadd.f32 %v7808_v63, %v3739_v4  ;;  %v8056_v63 = vpop.f32.mrf.mxu1  ;;  %v8064_v37 = vpop.f32.mrf.mxu0  ;;  %v5555_v4 = vld [vmem:[#allocation3 + $0x1f8] sm:$0xf0] }
 0x2be   : > { %8834 = vst [vmem:[#allocation86_spill] sm:$0xff] %v8056_v63  ;;  %v8880_v63 = vld [vmem:[#allocation62_spill] sm:$0xff] }
 0x2bf   : > { %3780 = vmatmul.bf16.gmra.mxu3 %v5534_v22  ;;  %v3917_v38 = vadd.f32 %v7896_v11, %v3828_v47  ;;  %v6073_v22 = vld [vmem:[#allocation3 + $0x1e4] sm:$0xf] }
 0x2c1   : > { %4530 = vmatmul.bf16.gmra.mxu1 %v7177_v6  ;;  %v8054_v28 = vadd.f32 %v8006_v10, %v3917_v38  ;;  %v6188_v6 = vld [vmem:[#allocation12 + $0x38] sm:$0xff] }
 0x2c2   : > { %v3741_v54 = vpop.f32.mrf.mxu3  ;;  %4790 = vmatpush.bf16.msra.mxu2 %v6188_v6  ;;  %v5579_v6 = vld [vmem:[#allocation3 + $0x228] sm:$0xf0] }
 0x2c3   : > { %v8049_v57 = vpop.f32.mrf.mxu2  ;;  %v3742_v36 = vadd.f32 %v3741_v54, %v3653_v50  ;;  %v6090_v54 = vld [vmem:[#allocation3 + $0x264] sm:$0xf0] }
 0x2c5   : > { %v3831_v39 = vadd.f32 %v7817_v55, %v3742_v36  ;;  %v5558_v55 = vor.u32 %v6073_v22, %v5555_v4  ;;  %v8071_v45 = vpop.f32.mrf.mxu1 }
 0x2c7   : > { %v3920_v10 = vadd.f32 %v7904_v25, %v3831_v39  ;;  %v6151_v25 = vld [vmem:[#allocation9 + $0x150] sm:$0xff] }
 0x2c8   : > { %4057 = vmatmul.bf16.gmra.mxu2 %v5594_v20  ;;  %4088 = vmatpush.bf16.msra.mxu3 %v6151_v25  ;;  %v8079_v20 = vpop.f32.mrf.mxu0 }
 0x2c9   : > { %v8068_v47 = vadd.f32 %v8016_v15, %v3920_v10  ;;  %8835 = vst [vmem:[#allocation87_spill] sm:$0xff] %v8079_v20  ;;  %v6079_v10 = vld [vmem:[#allocation3 + $0x214] sm:$0xf] }
 0x2ca   : > { %4332 = vmatmul.bf16.gmra.mxu0 %v7645_v46  ;;  %v3743_v11 = vpop.f32.mrf.mxu3 }
 0x2cb   : > { %v8062_v49 = vpop.f32.mrf.mxu2  ;;  %v3744_v5 = vadd.f32 %v3743_v11, %v3655_v33 }
 0x2cd   : > { %v3833_v50 = vadd.f32 %v7823_v13, %v3744_v5  ;;  %v5618_v13 = vor.u32 %v6090_v54, %v5617_v27  ;;  %v8090_v33 = vpop.f32.mrf.mxu1  ;;  %v5582_v5 = vor.u32 %v6079_v10, %v5579_v6  ;;  %v6102_v10 = vld [vmem:[#allocation3 + $0x2c4] sm:$0xf0] }
 0x2ce   : > { %8836 = vst [vmem:[#allocation88_spill] sm:$0xff] %v8090_v33 }
 0x2cf   : > { %3785 = vmatmul.bf16.gmra.mxu3 %v5558_v55  ;;  %v3922_v15 = vadd.f32 %v7910_v42, %v3833_v50  ;;  %v5641_v55 = vld [vmem:[#allocation3 + $0x280] sm:$0xf]  ;;  %v6096_v50 = vld [vmem:[#allocation3 + $0x294] sm:$0xf0] }
 0x2d0   : > { %v5642_v27 = vor.u32 %v6096_v50, %v5641_v55 }
 0x2d1   : > { %4535 = vmatmul.bf16.gmra.mxu1 %v7300_v34  ;;  %v8082_v39 = vadd.f32 %v8025_v31, %v3922_v15  ;;  %v6085_v15 = vld [vmem:[#allocation3 + $0x244] sm:$0xf] }
 0x2d2   : > { %v3746_v38 = vpop.f32.mrf.mxu3 }
 0x2d3   : > { %v8075_v2 = vpop.f32.mrf.mxu2  ;;  %v3747_v36 = vadd.f32 %v3746_v38, %v3658_v62 }
 0x2d5   : > { %v3836_v24 = vadd.f32 %v7834_v41, %v3747_v36  ;;  %v8096_v41 = vpop.f32.mrf.mxu0  ;;  %v8105_v54 = vpop.f32.mrf.mxu1  ;;  %v5603_v36 = vld [vmem:[#allocation3 + $0x258] sm:$0xf0] }
 0x2d7   : > { %v3925_v11 = vadd.f32 %v7919_v18, %v3836_v24 }
 0x2d8   : > { %4062 = vmatmul.bf16.gmra.mxu2 %v5618_v13 }
 0x2d9   : > { %v8094_v31 = vadd.f32 %v8036_v0, %v3925_v11 }
 0x2da   : > { %4337 = vmatmul.bf16.gmra.mxu0 %v7688_v8  ;;  %v3748_v42 = vpop.f32.mrf.mxu3 }
 0x2db   : > { %v8088_v34 = vpop.f32.mrf.mxu2  ;;  %v3749_v4 = vadd.f32 %v3748_v42, %v3660_v1 }
 0x2dd   : > { %v3838_v22 = vadd.f32 %v7840_v21, %v3749_v4  ;;  %v8111_v44 = vpop.f32.mrf.mxu0  ;;  %v8122_v1 = vpop.f32.mrf.mxu1  ;;  %v5665_v4 = vld [vmem:[#allocation3 + $0x2b0] sm:$0xf] }
 0x2de   : > { %8837 = vst [vmem:[#allocation89_spill] sm:$0xff] %v8111_v44  ;;  %v5666_v50 = vor.u32 %v6102_v10, %v5665_v4  ;;  %v5689_v10 = vld [vmem:[#allocation3 + $0x2e0] sm:$0xf] }
 0x2df   : > { %3790 = vmatmul.bf16.gmra.mxu3 %v5582_v5  ;;  %v3927_v62 = vadd.f32 %v7927_v60, %v3838_v22  ;;  %v6187_v60 = vld [vmem:[#allocation12 + $0x30] sm:$0xff]  ;;  %8838 = vst [vmem:[#allocation90_spill] sm:$0xff] %v8122_v1  ;;  %v6150_v5 = vld [vmem:[#allocation9 + $0x148] sm:$0xff]  ;;  %v8841_v22 = vld [vmem:[#allocation61_spill] sm:$0xff] }
 0x2e0   : > { %4791 = vmatpush.bf16.msra.mxu2 %v6187_v60  ;;  %4089 = vmatpush.bf16.msra.mxu3 %v6150_v5  ;;  %v6108_v5 = vld [vmem:[#allocation3 + $0x2f4] sm:$0xf0]  ;;  %v8862_v44 = vld [vmem:[#allocation54_spill] sm:$0xff] }
 0x2e1   : > { %4540 = vmatmul.bf16.gmra.mxu1 %v7422_v48  ;;  %v8108_v25 = vadd.f32 %v8049_v57, %v3927_v62  ;;  %v3665_v48 = vadd.f32 %v7868_v16, %v7747_v61  ;;  %v8839_v61 = vld [vmem:[#allocation21_spill] sm:$0xff] }
 0x2e2   : > { %v3751_v18 = vpop.f32.mrf.mxu3  ;;  %v8840_v16 = vld [vmem:[#allocation41_spill] sm:$0xff] }
 0x2e3   : > { %v8101_v40 = vpop.f32.mrf.mxu2  ;;  %v3752_v0 = vadd.f32 %v3751_v18, %v3663_v23  ;;  %v3668_v6 = vadd.f32 %v8840_v16, %v8839_v61  ;;  %v8842_v18 = vld [vmem:[#allocation35_spill] sm:$0xff]  ;;  %v8846_v61 = vld [vmem:[#allocation24_spill] sm:$0xff]  ;;  %v8847_v16 = vld [vmem:[#allocation46_spill] sm:$0xff] }
 0x2e5   : > { %v3841_v21 = vadd.f32 %v7846_v12, %v3752_v0  ;;  %v5606_v12 = vor.u32 %v6085_v15, %v5603_v36  ;;  %v8137_v0 = vpop.f32.mrf.mxu1  ;;  %v6091_v15 = vld [vmem:[#allocation3 + $0x274] sm:$0xf]  ;;  %v5627_v36 = vld [vmem:[#allocation3 + $0x288] sm:$0xf0] }
 0x2e7   : > { %v3930_v13 = vadd.f32 %v7936_v56, %v3841_v21  ;;  %v8129_v56 = vpop.f32.mrf.mxu0  ;;  %v8844_v21 = vld [vmem:[#allocation22_spill] sm:$0xff] }
 0x2e8   : > { %4067 = vmatmul.bf16.gmra.mxu2 %v5642_v27  ;;  %v8843_v27 = vld [vmem:[#allocation20_spill] sm:$0xff] }
 0x2e9   : > { %v8120_v24 = vadd.f32 %v8062_v49, %v3930_v13 }
 0x2ea   : > { %4342 = vmatmul.bf16.gmra.mxu0 %v7729_v29  ;;  %v3753_v38 = vpop.f32.mrf.mxu3 }
 0x2eb   : > { %v8116_v35 = vpop.f32.mrf.mxu2  ;;  %v3754_v57 = vadd.f32 %v3753_v38, %v3665_v48  ;;  %v8845_v48 = vld [vmem:[#allocation44_spill] sm:$0xff] }
 0x2ec   : > { %v3670_v60 = vadd.f32 %v8845_v48, %v8844_v21  ;;  %v8852_v21 = vld [vmem:[#allocation48_spill] sm:$0xff] }
 0x2ed   : > { %v3843_v42 = vadd.f32 %v7852_v52, %v3754_v57 }
 0x2ef   : > { %3795 = vmatmul.bf16.gmra.mxu3 %v5606_v12  ;;  %v3932_v23 = vadd.f32 %v8841_v22, %v3843_v42  ;;  %v5630_v42 = vor.u32 %v6091_v15, %v5627_v36  ;;  %v6097_v15 = vld [vmem:[#allocation3 + $0x2a4] sm:$0xf]  ;;  %v5651_v36 = vld [vmem:[#allocation3 + $0x2b8] sm:$0xf0] }
 0x2f1   : > { %4545 = vmatmul.bf16.gmra.mxu1 %v7495_v59  ;;  %v8134_v52 = vadd.f32 %v8075_v2, %v3932_v23  ;;  %v8145_v2 = vpop.f32.mrf.mxu0  ;;  %v5690_v23 = vor.u32 %v6108_v5, %v5689_v10  ;;  %v8853_v5 = vld [vmem:[#allocation27_spill] sm:$0xff] }
 0x2f2   : > { %v3756_v49 = vpop.f32.mrf.mxu3 }
 0x2f3   : > { %v8127_v11 = vpop.f32.mrf.mxu2  ;;  %v3757_v55 = vadd.f32 %v3756_v49, %v3668_v6  ;;  %v3673_v6 = vadd.f32 %v8847_v16, %v8846_v61  ;;  %v8154_v49 = vpop.f32.mrf.mxu1 }
 0x2f4   : > { %8848 = vst [vmem:[#allocation21_spill] sm:$0xff] %v8154_v49 }
 0x2f5   : > { %v3846_v62 = vadd.f32 %v8842_v18, %v3757_v55  ;;  %v8850_v18 = vld [vmem:[#allocation23_spill] sm:$0xff] }
 0x2f7   : > { %v3935_v13 = vadd.f32 %v7951_v19, %v3846_v62  ;;  %v8851_v62 = vld [vmem:[#allocation25_spill] sm:$0xff] }
 0x2f8   : > { %4072 = vmatmul.bf16.gmra.mxu2 %v5666_v50  ;;  %v3675_v48 = vadd.f32 %v8852_v21, %v8851_v62  ;;  %v8857_v21 = vld [vmem:[#allocation47_spill] sm:$0xff] }
 0x2f9   : > { %v8148_v12 = vadd.f32 %v8088_v34, %v3935_v13  ;;  %v8157_v55 = vpop.f32.mrf.mxu0  ;;  %v8849_v34 = vld [vmem:[#allocation39_spill] sm:$0xff] }
 0x2fa   : > { %4347 = vmatmul.bf16.gmra.mxu0 %v8843_v27  ;;  %v3758_v38 = vpop.f32.mrf.mxu3 }
 0x2fb   : > { %v4033_v59 = vpop.f32.mrf.mxu2  ;;  %v8143_v57 = vadd.f32 %v3758_v38, %v3670_v60  ;;  %v6186_v60 = vld [vmem:[#allocation12 + $0x28] sm:$0xff]  ;;  %v8166_v61 = vpop.f32.mrf.mxu1 }
 0x2fc   : > { %4792 = vmatpush.bf16.msra.mxu2 %v6186_v60  ;;  %v8859_v60 = vld [vmem:[#allocation28_spill] sm:$0xff] }
 0x2ff   : > { %3800 = vmatmul.bf16.gmra.mxu3 %v5630_v42 }
 0x301   : > { %4550 = vmatmul.bf16.gmra.mxu1 %v7549_v53  ;;  %v8171_v10 = vpop.f32.mrf.mxu0 }
 0x302   : > { %v3761_v19 = vpop.f32.mrf.mxu3 }
 0x303   : > { %v8152_v4 = vpop.f32.mrf.mxu2  ;;  %v3762_v22 = vadd.f32 %v3761_v19, %v3673_v6  ;;  %v5654_v6 = vor.u32 %v6097_v15, %v5651_v36  ;;  %v8854_v19 = vld [vmem:[#allocation50_spill] sm:$0xff]  ;;  %v8178_v62 = vpop.f32.mrf.mxu1 }
 0x304   : > { %8856 = vst [vmem:[#allocation61_spill] sm:$0xff] %v8178_v62  ;;  %v8863_v62 = vld [vmem:[#allocation51_spill] sm:$0xff] }
 0x305   : > { %v3851_v50 = vadd.f32 %v8849_v34, %v3762_v22  ;;  %v3678_v22 = vadd.f32 %v8854_v19, %v8853_v5  ;;  %v5675_v5 = vld [vmem:[#allocation3 + $0x2e8] sm:$0xf0] }
 0x307   : > { %v3940_v13 = vadd.f32 %v7970_v17, %v3851_v50 }
 0x308   : > { %4077 = vmatmul.bf16.gmra.mxu2 %v5690_v23  ;;  %v6149_v23 = vld [vmem:[#allocation9 + $0x140] sm:$0xff] }
 0x309   : > { %v8169_v16 = vadd.f32 %v8116_v35, %v3940_v13  ;;  %4090 = vmatpush.bf16.msra.mxu3 %v6149_v23  ;;  %v8184_v36 = vpop.f32.mrf.mxu0 }
 0x30a   : > { %4352 = vmatmul.bf16.gmra.mxu0 %v8850_v18  ;;  %v3763_v38 = vpop.f32.mrf.mxu3 }
 0x30b   : > { %v4038_v53 = vpop.f32.mrf.mxu2  ;;  %v8164_v42 = vadd.f32 %v3763_v38, %v3675_v48  ;;  %v8858_v48 = vld [vmem:[#allocation26_spill] sm:$0xff]  ;;  %v8860_v38 = vld [vmem:[#allocation52_spill] sm:$0xff] }
 0x30c   : > { %v3680_v15 = vadd.f32 %v8860_v38, %v8859_v60 }
 0x30f   : > { %3805 = vmatmul.bf16.gmra.mxu3 %v5654_v6  ;;  %v6103_v6 = vld [vmem:[#allocation3 + $0x2d4] sm:$0xf] }
 0x310   : > { %v5678_v23 = vor.u32 %v6103_v6, %v5675_v5  ;;  %v6185_v5 = vld [vmem:[#allocation12 + $0x20] sm:$0xff] }
 0x311   : > { %4555 = vmatmul.bf16.gmra.mxu1 %v7596_v9  ;;  %v8196_v14 = vpop.f32.mrf.mxu0  ;;  %4793 = vmatpush.bf16.msra.mxu2 %v6185_v5  ;;  %v8873_v5 = vld [vmem:[#allocation19_spill] sm:$0xff] }
 0x312   : > { %v3766_v17 = vpop.f32.mrf.mxu3 }
 0x313   : > { %v3767_v34 = vadd.f32 %v3766_v17, %v3678_v22  ;;  %v8176_v50 = vpop.f32.mrf.mxu2 }
 0x314   : > { %8855 = vst [vmem:[#allocation41_spill] sm:$0xff] %v8176_v50 }
 0x315   : > { %v3856_v35 = vadd.f32 %v8857_v21, %v3767_v34  ;;  %v8191_v34 = vpop.f32.mrf.mxu1  ;;  %v8861_v21 = vld [vmem:[#allocation30_spill] sm:$0xff] }
 0x316   : > { %v3683_v20 = vadd.f32 %v8862_v44, %v8861_v21  ;;  %v5331_v44 = vld [vmem:[#allocation3 + $0x28] sm:$0xf0]  ;;  %v6015_v21 = vld [vmem:[#allocation3 + $0x14] sm:$0xf] }
 0x317   : > { %v3945_v9 = vadd.f32 %v7994_v7, %v3856_v35  ;;  %v8864_v35 = vld [vmem:[#allocation29_spill] sm:$0xff] }
 0x319   : > { %v8189_v22 = vadd.f32 %v4033_v59, %v3945_v9  ;;  %v8865_v59 = vld [vmem:[#allocation31_spill] sm:$0xff] }
 0x31a   : > { %4357 = vmatmul.bf16.gmra.mxu0 %v8858_v48  ;;  %v3768_v13 = vpop.f32.mrf.mxu3 }
 0x31b   : > { %v8187_v19 = vadd.f32 %v3768_v13, %v3680_v15  ;;  %v4043_v17 = vpop.f32.mrf.mxu2  ;;  %v8866_v15 = vld [vmem:[#allocation55_spill] sm:$0xff] }
 0x31c   : > { %v3685_v13 = vadd.f32 %v8866_v15, %v8865_v59  ;;  %v8869_v59 = vld [vmem:[#allocation32_spill] sm:$0xff]  ;;  %v8870_v15 = vld [vmem:[#allocation57_spill] sm:$0xff] }
 0x31d   : > { %v8204_v9 = vpop.f32.mrf.mxu1  ;;  %v3688_v49 = vadd.f32 %v8870_v15, %v8869_v59 }
 0x31e   : > { %8868 = vst [vmem:[#allocation20_spill] sm:$0xff] %v8204_v9 }
 0x31f   : > { %3810 = vmatmul.bf16.gmra.mxu3 %v5678_v23 }
 0x321   : > { %4560 = vmatmul.bf16.gmra.mxu1 %v7645_v46 }
 0x322   : > { %v3771_v60 = vpop.f32.mrf.mxu3 }
 0x323   : > { %v3772_v38 = vadd.f32 %v3771_v60, %v3683_v20  ;;  %v8202_v6 = vpop.f32.mrf.mxu2 }
 0x324   : > { %8867 = vst [vmem:[#allocation35_spill] sm:$0xff] %v8202_v6 }
 0x325   : > { %v3861_v7 = vadd.f32 %v8863_v62, %v3772_v38  ;;  %v5334_v62 = vor.u32 %v6015_v21, %v5331_v44  ;;  %v8211_v38 = vpop.f32.mrf.mxu0  ;;  %v8216_v6 = vpop.f32.mrf.mxu1  ;;  %v8874_v44 = vld [vmem:[#allocation33_spill] sm:$0xff] }
 0x327   : > { %v3950_v46 = vadd.f32 %v8013_v26, %v3861_v7  ;;  %v8871_v26 = vld [vmem:[#allocation56_spill] sm:$0xff] }
 0x329   : > { %v8209_v60 = vadd.f32 %v4038_v53, %v3950_v46  ;;  %v8875_v46 = vld [vmem:[#allocation59_spill] sm:$0xff] }
 0x32a   : > { %4362 = vmatmul.bf16.gmra.mxu0 %v8864_v35  ;;  %v3773_v23 = vpop.f32.mrf.mxu3  ;;  %v3690_v21 = vadd.f32 %v8875_v46, %v8874_v44 }
 0x32b   : > { %v8207_v20 = vadd.f32 %v3773_v23, %v3685_v13  ;;  %v4048_v1 = vpop.f32.mrf.mxu2  ;;  %v8872_v13 = vld [vmem:[#allocation18_spill] sm:$0xff] }
 0x32c   : > { %v8221_v53 = vpack.c.bf16 %v8873_v5, %v8872_v13  ;;  %v8879_v5 = vld [vmem:[#allocation34_spill] sm:$0xff] }
 0x32d   : > { %v8223_v23 = vpop.f32.mrf.mxu0  ;;  %v8235_v13 = vpop.f32.mrf.mxu1  ;;  %v3693_v50 = vadd.f32 %v8880_v63, %v8879_v5  ;;  %v6027_v63 = vld [vmem:[#allocation3 + $0x74] sm:$0xf]  ;;  %v8885_v5 = vld [vmem:[#allocation67_spill] sm:$0xff] }
 0x32e   : > { %8878 = vst [vmem:[#allocation24_spill] sm:$0xff] %v8235_v13 }
 0x32f   : > { %4091 = vmatmul.bf16.vlgmr.msra.gmra.mxu3 %v5334_v62 }
 0x331   : > { %4565 = vmatmul.bf16.gmra.mxu1 %v7688_v8  ;;  %v5355_v8 = vld [vmem:[#allocation3 + $0x58] sm:$0xf0] }
 0x332   : > { %v3776_v9 = vpop.f32.mrf.mxu3 }
 0x333   : > { %v3777_v33 = vadd.f32 %v3776_v9, %v3688_v49  ;;  %v6021_v9 = vld [vmem:[#allocation3 + $0x44] sm:$0xf] }
 0x335   : > { %v3866_v7 = vadd.f32 %v8871_v26, %v3777_v33  ;;  %v8233_v33 = vpop.f32.mrf.mxu2  ;;  %v5358_v26 = vor.u32 %v6021_v9, %v5355_v8  ;;  %v5379_v9 = vld [vmem:[#allocation3 + $0x88] sm:$0xf0] }
 0x336   : > { %8877 = vst [vmem:[#allocation44_spill] sm:$0xff] %v8233_v33  ;;  %v6184_v33 = vld [vmem:[#allocation12 + $0x18] sm:$0xff] }
 0x337   : > { %v3955_v59 = vadd.f32 %v8039_v32, %v3866_v7  ;;  %4794 = vmatpush.bf16.msra.mxu2 %v6184_v33 }
 0x339   : > { %v8231_v15 = vadd.f32 %v4043_v17, %v3955_v59  ;;  %v8882_v17 = vld [vmem:[#allocation36_spill] sm:$0xff] }
 0x33a   : > { %4367 = vmatmul.bf16.gmra.mxu0 %v8221_v53  ;;  %v3778_v62 = vpop.f32.mrf.mxu3 }
 0x33b   : > { %v8229_v49 = vadd.f32 %v3778_v62, %v3690_v21  ;;  %8876 = vst [vmem:[#allocation22_spill] sm:$0xff] %v8231_v15  ;;  %v8241_v21 = vpop.f32.mrf.mxu1  ;;  %v8883_v62 = vld [vmem:[#allocation64_spill] sm:$0xff] }
 0x33c   : > { %v3695_v59 = vadd.f32 %v8883_v62, %v8882_v17 }
 0x33d   : > { %v4053_v7 = vpop.f32.mrf.mxu2 }
 0x33f   : > { %4096 = vmatmul.bf16.gmra.mxu3 %v5358_v26 }
 0x341   : > { %4570 = vmatmul.bf16.gmra.mxu1 %v7729_v29 }
 0x342   : > { %v3781_v44 = vpop.f32.mrf.mxu3 }
 0x343   : > { %v3782_v46 = vadd.f32 %v3781_v44, %v3693_v50  ;;  %v5382_v50 = vor.u32 %v6027_v63, %v5379_v9  ;;  %v8254_v15 = vpop.f32.mrf.mxu1 }
 0x344   : > { %8887 = vst [vmem:[#allocation39_spill] sm:$0xff] %v8254_v15  ;;  %v8895_v15 = vld [vmem:[#allocation76_spill] sm:$0xff] }
 0x345   : > { %v3871_v32 = vadd.f32 %v8881_v51, %v3782_v46  ;;  %v8884_v51 = vld [vmem:[#allocation38_spill] sm:$0xff]  ;;  %v8252_v46 = vpop.f32.mrf.mxu2 }
 0x346   : > { %v3698_v44 = vadd.f32 %v8885_v5, %v8884_v51  ;;  %8886 = vst [vmem:[#allocation46_spill] sm:$0xff] %v8252_v46  ;;  %v6033_v51 = vld [vmem:[#allocation3 + $0xa4] sm:$0xf] }
 0x347   : > { %v3960_v26 = vadd.f32 %v8071_v45, %v3871_v32  ;;  %v8888_v45 = vld [vmem:[#allocation68_spill] sm:$0xff] }
 0x348   : > { %v8889_v32 = vld [vmem:[#allocation40_spill] sm:$0xff] }
 0x349   : > { %v8248_v29 = vadd.f32 %v4048_v1, %v3960_v26 }
 0x34a   : > { %v3783_v8 = vpop.f32.mrf.mxu3 }
 0x34b   : > { %v8246_v13 = vadd.f32 %v3783_v8, %v3695_v59  ;;  %v3700_v59 = vadd.f32 %v7972_v3, %v8889_v32  ;;  %v5403_v8 = vld [vmem:[#allocation3 + $0xb8] sm:$0xf0] }
 0x34d   : > { %v4058_v26 = vpop.f32.mrf.mxu2 }
 0x34f   : > { %4101 = vmatmul.bf16.gmra.mxu3 %v5382_v50  ;;  %v8263_v50 = vpop.f32.mrf.mxu1 }
 0x351   : > { %4575 = vmatmul.bf16.gmra.mxu1 %v8843_v27  ;;  %v5406_v27 = vor.u32 %v6033_v51, %v5403_v8  ;;  %v5427_v8 = vld [vmem:[#allocation3 + $0xe8] sm:$0xf0] }
 0x352   : > { %v3786_v17 = vpop.f32.mrf.mxu3 }
 0x353   : > { %v3787_v62 = vadd.f32 %v3786_v17, %v3698_v44  ;;  %v8890_v44 = vld [vmem:[#allocation42_spill] sm:$0xff]  ;;  %v8891_v17 = vld [vmem:[#allocation72_spill] sm:$0xff] }
 0x355   : > { %v3876_v33 = vadd.f32 %v8888_v45, %v3787_v62  ;;  %v3703_v62 = vadd.f32 %v8891_v17, %v8890_v44  ;;  %v8270_v32 = vpop.f32.mrf.mxu2 }
 0x356   : > { %8892 = vst [vmem:[#allocation23_spill] sm:$0xff] %v8270_v32  ;;  %v6181_v32 = vld [vmem:[#allocation12] sm:$0xff] }
 0x357   : > { %v3965_v9 = vadd.f32 %v8105_v54, %v3876_v33  ;;  %v8272_v54 = vpop.f32.mrf.mxu1  ;;  %v8893_v33 = vld [vmem:[#allocation75_spill] sm:$0xff] }
 0x359   : > { %v8265_v5 = vadd.f32 %v4053_v7, %v3965_v9  ;;  %v6183_v7 = vld [vmem:[#allocation12 + $0x10] sm:$0xff] }
 0x35a   : > { %v3788_v1 = vpop.f32.mrf.mxu3  ;;  %4795 = vmatpush.bf16.msra.mxu2 %v6183_v7  ;;  %v5451_v7 = vld [vmem:[#allocation3 + $0x118] sm:$0xf0] }
 0x35b   : > { %v8261_v63 = vadd.f32 %v3788_v1, %v3700_v59  ;;  %v8894_v1 = vld [vmem:[#allocation45_spill] sm:$0xff] }
 0x35c   : > { %v3705_v46 = vadd.f32 %v8895_v15, %v8894_v1 }
 0x35f   : > { %4106 = vmatmul.bf16.gmra.mxu3 %v5406_v27 }
 0x361   : > { %4580 = vmatmul.bf16.gmra.mxu1 %v8850_v18  ;;  %v6039_v18 = vld [vmem:[#allocation3 + $0xd4] sm:$0xf] }
 0x362   : > { %v3791_v3 = vpop.f32.mrf.mxu3  ;;  %v5430_v17 = vor.u32 %v6039_v18, %v5427_v8  ;;  %v8898_v8 = vld [vmem:[#allocation69_spill] sm:$0xff]  ;;  %v6045_v18 = vld [vmem:[#allocation3 + $0x104] sm:$0xf] }
 0x363   : > { %v3792_v45 = vadd.f32 %v3791_v3, %v3703_v62  ;;  %v4063_v62 = vpop.f32.mrf.mxu2  ;;  %v8282_v3 = vpop.f32.mrf.mxu1 }
 0x365   : > { %v3881_v59 = vadd.f32 %v8893_v33, %v3792_v45  ;;  %v6182_v45 = vld [vmem:[#allocation12 + $0x8] sm:$0xff]  ;;  %v8896_v33 = vld [vmem:[#allocation65_spill] sm:$0xff] }
 0x366   : > { %4796 = vmatpush.bf16.msra.mxu2 %v6182_v45 }
 0x367   : > { %v3970_v51 = vadd.f32 %v8137_v0, %v3881_v59 }
 0x369   : > { %v8280_v44 = vadd.f32 %v4058_v26, %v3970_v51 }
 0x36a   : > { %v3793_v9 = vpop.f32.mrf.mxu3  ;;  %4797 = vmatpush.bf16.msra.mxu2 %v6181_v32  ;;  %v8903_v32 = vld [vmem:[#allocation77_spill] sm:$0xff] }
 0x36b   : > { %v8278_v27 = vadd.f32 %v3793_v9, %v3705_v46  ;;  %v8287_v59 = vpop.f32.mrf.mxu2  ;;  %v8289_v46 = vpop.f32.mrf.mxu1 }
 0x36c   : > { %8897 = vst [vmem:[#allocation25_spill] sm:$0xff] %v8287_v59 }
 0x36f   : > { %4111 = vmatmul.bf16.gmra.mxu3 %v5430_v17 }
 0x371   : > { %4585 = vmatmul.bf16.gmra.mxu1 %v8858_v48  ;;  %v5454_v48 = vor.u32 %v6045_v18, %v5451_v7  ;;  %v6051_v7 = vld [vmem:[#allocation3 + $0x134] sm:$0xf] }
 0x372   : > { %v3796_v15 = vpop.f32.mrf.mxu3 }
 0x373   : > { %v3797_v1 = vadd.f32 %v3796_v15, %v8896_v33  ;;  %v8899_v15 = vld [vmem:[#allocation70_spill] sm:$0xff] }
 0x375   : > { %v3886_v0 = vadd.f32 %v8008_v58, %v3797_v1  ;;  %v4068_v58 = vpop.f32.mrf.mxu2  ;;  %v8299_v1 = vpop.f32.mrf.mxu1 }
 0x377   : > { %v3975_v9 = vadd.f32 %v8166_v61, %v3886_v0  ;;  %v5475_v0 = vld [vmem:[#allocation3 + $0x148] sm:$0xf0] }
 0x378   : > { %v5478_v18 = vor.u32 %v6051_v7, %v5475_v0  ;;  %v6057_v0 = vld [vmem:[#allocation3 + $0x164] sm:$0xf] }
 0x379   : > { %v8295_v17 = vadd.f32 %v4063_v62, %v3975_v9  ;;  %v8900_v62 = vld [vmem:[#allocation74_spill] sm:$0xff] }
 0x37a   : > { %v3798_v26 = vpop.f32.mrf.mxu3 }
 0x37b   : > { %v8293_v51 = vadd.f32 %v3798_v26, %v8898_v8 }
 0x37f   : > { %4116 = vmatmul.bf16.gmra.mxu3 %v5454_v48  ;;  %v8310_v48 = vpop.f32.mrf.mxu1 }
 0x381   : > { %4590 = vmatmul.bf16.gmra.mxu1 %v8864_v35  ;;  %v8308_v35 = vpop.f32.mrf.mxu2 }
 0x382   : > { %v3801_v45 = vpop.f32.mrf.mxu3  ;;  %8902 = vst [vmem:[#allocation27_spill] sm:$0xff] %v8308_v35 }
 0x383   : > { %v3802_v33 = vadd.f32 %v3801_v45, %v8899_v15 }
 0x385   : > { %v3891_v59 = vadd.f32 %v8030_v30, %v3802_v33 }
 0x387   : > { %v3980_v26 = vadd.f32 %v8191_v34, %v3891_v59  ;;  %v8315_v59 = vpop.f32.mrf.mxu1 }
 0x389   : > { %v8306_v8 = vadd.f32 %v4068_v58, %v3980_v26  ;;  %v4073_v34 = vpop.f32.mrf.mxu2  ;;  %v8904_v26 = vld [vmem:[#allocation79_spill] sm:$0xff] }
 0x38a   : > { %v3803_v61 = vpop.f32.mrf.mxu3 }
 0x38b   : > { %v8304_v9 = vadd.f32 %v3803_v61, %v8900_v62  ;;  %8901 = vst [vmem:[#allocation48_spill] sm:$0xff] %v8306_v8  ;;  %v5499_v61 = vld [vmem:[#allocation3 + $0x178] sm:$0xf0] }
 0x38f   : > { %4121 = vmatmul.bf16.gmra.mxu3 %v5478_v18  ;;  %v5502_v18 = vor.u32 %v6057_v0, %v5499_v61  ;;  %v6063_v61 = vld [vmem:[#allocation3 + $0x194] sm:$0xf] }
 0x391   : > { %4595 = vmatmul.bf16.gmra.mxu1 %v8221_v53  ;;  %v8323_v53 = vpop.f32.mrf.mxu2 }
 0x392   : > { %v3806_v30 = vpop.f32.mrf.mxu3  ;;  %8905 = vst [vmem:[#allocation50_spill] sm:$0xff] %v8323_v53 }
 0x393   : > { %v3807_v45 = vadd.f32 %v3806_v30, %v8903_v32  ;;  %v8325_v30 = vpop.f32.mrf.mxu1  ;;  %v8906_v32 = vmov 0.0|0.0  }
 0x395   : > { %v3896_v15 = vadd.f32 %v8064_v37, %v3807_v45  ;;  %v8907_v45 = vld [vmem:[#allocation81_spill] sm:$0xff] }
 0x397   : > { %v3985_v58 = vadd.f32 %v8216_v6, %v3896_v15  ;;  %v5523_v15 = vld [vmem:[#allocation3 + $0x1a8] sm:$0xf0] }
 0x399   : > { %v8321_v7 = vadd.f32 %v4073_v34, %v3985_v58  ;;  %v8908_v34 = vld [vmem:[#allocation82_spill] sm:$0xff] }
 0x39a   : > { %v3808_v33 = vpop.f32.mrf.mxu3 }
 0x39b   : > { %v8319_v62 = vadd.f32 %v3808_v33, %v8904_v26  ;;  %v4078_v26 = vpop.f32.mrf.mxu2 }
 0x39f   : > { %4126 = vmatmul.bf16.gmra.mxu3 %v5502_v18  ;;  %v5526_v18 = vor.u32 %v6063_v61, %v5523_v15 }
 0x3a1   : > { %4600 = vmatmul.bf16.gmra.mxu1 %v8906_v32 }
 0x3a2   : > { %v3811_v37 = vpop.f32.mrf.mxu3 }
 0x3a3   : > { %v3812_v35 = vadd.f32 %v3811_v37, %v8907_v45 }
 0x3a5   : > { %v3901_v8 = vadd.f32 %v8096_v41, %v3812_v35  ;;  %v5547_v41 = vld [vmem:[#allocation3 + $0x1d8] sm:$0xf0] }
 0x3a7   : > { %v3990_v33 = vadd.f32 %v8241_v21, %v3901_v8  ;;  %v8342_v21 = vld [vmem:[%s8593_s6] ss:$0 sm:$0xff] }
 0x3a9   : > { %v8334_v0 = vadd.f32 %v4078_v26, %v3990_v33 }
 0x3aa   : > { %v3813_v6 = vpop.f32.mrf.mxu3 }
 0x3ab   : > { %v8332_v58 = vadd.f32 %v3813_v6, %v8908_v34  ;;  %v6069_v6 = vld [vmem:[#allocation3 + $0x1c4] sm:$0xf] }
 0x3ac   : > { %v5550_v33 = vor.u32 %v6069_v6, %v5547_v41  ;;  %v5571_v41 = vld [vmem:[#allocation3 + $0x208] sm:$0xf0] }
 0x3af   : > { %4131 = vmatmul.bf16.gmra.mxu3 %v5526_v18  ;;  %v8350_v18 = vpop.f32.mrf.mxu0 }
 0x3b2   : > { %v4092_v53 = vpop.f32.mrf.mxu3 }
 0x3b3   : > { %v4093_v32 = vadd.f32 %v4092_v53, %v8042_v43 }
 0x3b5   : > { %v4373_v37 = vadd.f32 %v8129_v56, %v4093_v32 }
 0x3b7   : > { %v4606_v35 = vadd.f32 %v8263_v50, %v4373_v37 }
 0x3b9   : > { %v4642_v26 = vadd.f32 %v8342_v21, %v4606_v35 }
 0x3ba   : > { %v4094_v45 = vpop.f32.mrf.mxu3 }
 0x3bb   : > { %v4095_v8 = vadd.f32 %v4094_v45, %v8054_v28  ;;  %v4674_v50 = vmax.f32 %v4642_v26, 0.0  ;;  %v6075_v45 = vld [vmem:[#allocation3 + $0x1f4] sm:$0xf] }
 0x3bc   : > { %v5574_v6 = vor.u32 %v6075_v45, %v5571_v41 }
 0x3bd   : > { %v4374_v15 = vadd.f32 %v8145_v2, %v4095_v8  ;;  %v8353_v2 = vpop.f32.mrf.mxu1 }
 0x3bf   : > { %v4607_v43 = vadd.f32 %v8272_v54, %v4374_v15  ;;  %4136 = vmatmul.bf16.gmra.mxu3 %v5550_v33  ;;  %v8358_v15 = vpop.f32.mrf.mxu0 }
 0x3c1   : > { %v4643_v56 = vadd.f32 %v8342_v21, %v4607_v43 }
 0x3c2   : > { %v4097_v53 = vpop.f32.mrf.mxu3 }
 0x3c3   : > { %v4675_v34 = vmax.f32 %v4643_v56, 0.0  ;;  %v4098_v61 = vadd.f32 %v4097_v53, %v8068_v47 }
 0x3c5   : > { %v4706_v32 = vpack.c.bf16 %v4675_v34, %v4674_v50  ;;  %v4375_v28 = vadd.f32 %v8157_v55, %v4098_v61  ;;  %v4548_v43 = vpop.f32.mrf.mxu1  ;;  %v6081_v61 = vld [vmem:[#allocation3 + $0x224] sm:$0xf] }
 0x3c7   : > { %4798 = vmatmul.bf16.vlgmr.msra.gmra.mxu2 %v4706_v32  ;;  %v4608_v54 = vadd.f32 %v8282_v3, %v4375_v28 }
 0x3c9   : > { %v4644_v55 = vadd.f32 %v8342_v21, %v4608_v54 }
 0x3ca   : > { %v4099_v37 = vpop.f32.mrf.mxu3 }
 0x3cb   : > { %v4100_v35 = vadd.f32 %v4099_v37, %v8082_v39  ;;  %v4676_v53 = vmax.f32 %v4644_v55, 0.0 }
 0x3cd   : > { %v4376_v8 = vadd.f32 %v8171_v10, %v4100_v35  ;;  %v8365_v10 = vpop.f32.mrf.mxu0  ;;  %v8369_v37 = vpop.f32.mrf.mxu1 }
 0x3cf   : > { %v4609_v47 = vadd.f32 %v8289_v46, %v4376_v8  ;;  %4141 = vmatmul.bf16.gmra.mxu3 %v5574_v6  ;;  %v5595_v46 = vld [vmem:[#allocation3 + $0x238] sm:$0xf0] }
 0x3d1   : > { %v4645_v33 = vadd.f32 %v8342_v21, %v4609_v47 }
 0x3d2   : > { %v4102_v26 = vpop.f32.mrf.mxu3 }
 0x3d3   : > { %v4103_v56 = vadd.f32 %v4102_v26, %v8094_v31  ;;  %v4677_v3 = vmax.f32 %v4645_v33, 0.0  ;;  %v5598_v31 = vor.u32 %v6081_v61, %v5595_v46  ;;  %v6087_v26 = vld [vmem:[#allocation3 + $0x254] sm:$0xf] }
 0x3d5   : > { %v4707_v50 = vpack.c.bf16 %v4677_v3, %v4676_v53  ;;  %v4377_v39 = vadd.f32 %v8184_v36, %v4103_v56  ;;  %v4320_v8 = vpop.f32.mrf.mxu0  ;;  %v5619_v56 = vld [vmem:[#allocation3 + $0x268] sm:$0xf0] }
 0x3d7   : > { %4803 = vmatmul.bf16.gmra.mxu2 %v4707_v50  ;;  %v4610_v32 = vadd.f32 %v8299_v1, %v4377_v39  ;;  %v5622_v39 = vor.u32 %v6087_v26, %v5619_v56  ;;  %v8911_v56 = vld [vmem:[#allocation43_spill] sm:$0xff] }
 0x3d9   : > { %v4646_v36 = vadd.f32 %v8342_v21, %v4610_v32 }
 0x3da   : > { %v4104_v34 = vpop.f32.mrf.mxu3 }
 0x3db   : > { %v4105_v28 = vadd.f32 %v4104_v34, %v8108_v25  ;;  %v4678_v47 = vmax.f32 %v4646_v36, 0.0  ;;  %v4553_v25 = vpop.f32.mrf.mxu1 }
 0x3dd   : > { %v4378_v45 = vadd.f32 %v8196_v14, %v4105_v28  ;;  %v8379_v3 = vpop.f32.mrf.mxu0 }
 0x3df   : > { %v4611_v41 = vadd.f32 %v8310_v48, %v4378_v45  ;;  %4146 = vmatmul.bf16.gmra.mxu3 %v5598_v31 }
 0x3e1   : > { %v4647_v54 = vadd.f32 %v8342_v21, %v4611_v41 }
 0x3e2   : > { %v4107_v35 = vpop.f32.mrf.mxu3 }
 0x3e3   : > { %v4108_v6 = vadd.f32 %v4107_v35, %v8120_v24  ;;  %v4679_v1 = vmax.f32 %v4647_v54, 0.0  ;;  %v8386_v46 = vpop.f32.mrf.mxu1 }
 0x3e5   : > { %v4708_v55 = vpack.c.bf16 %v4679_v1, %v4678_v47  ;;  %v4379_v33 = vadd.f32 %v8211_v38, %v4108_v6  ;;  %v8909_v38 = vld [vmem:[#allocation37_spill] sm:$0xff]  ;;  %v4325_v36 = vpop.f32.mrf.mxu0 }
 0x3e6   : > { %v3848_v61 = vadd.f32 %v8909_v38, %v8143_v57  ;;  %v6093_v57 = vld [vmem:[#allocation3 + $0x284] sm:$0xf]  ;;  %v5643_v6 = vld [vmem:[#allocation3 + $0x298] sm:$0xf0] }
 0x3e7   : > { %4808 = vmatmul.bf16.gmra.mxu2 %v4708_v55  ;;  %v4612_v48 = vadd.f32 %v8315_v59, %v4379_v33  ;;  %v5646_v33 = vor.u32 %v6093_v57, %v5643_v6  ;;  %v8912_v38 = vld [vmem:[#allocation73_spill] sm:$0xff] }
 0x3e9   : > { %v4648_v34 = vadd.f32 %v8342_v21, %v4612_v48 }
 0x3ea   : > { %v4109_v14 = vpop.f32.mrf.mxu3 }
 0x3eb   : > { %v4110_v53 = vadd.f32 %v4109_v14, %v8134_v52  ;;  %v4680_v28 = vmax.f32 %v4648_v34, 0.0  ;;  %v4558_v47 = vpop.f32.mrf.mxu1 }
 0x3ed   : > { %v4380_v50 = vadd.f32 %v8223_v23, %v4110_v53  ;;  %v8910_v23 = vld [vmem:[#allocation66_spill] sm:$0xff]  ;;  %v4328_v48 = vpop.f32.mrf.mxu0 }
 0x3ee   : > { %v3937_v41 = vadd.f32 %v8910_v23, %v3848_v61 }
 0x3ef   : > { %v4613_v24 = vadd.f32 %v8325_v30, %v4380_v50  ;;  %4151 = vmatmul.bf16.gmra.mxu3 %v5622_v39 }
 0x3f0   : > { %v4026_v54 = vadd.f32 %v8101_v40, %v3937_v41 }
 0x3f1   : > { %v4649_v32 = vadd.f32 %v8342_v21, %v4613_v24 }
 0x3f2   : > { %v4112_v59 = vpop.f32.mrf.mxu3 }
 0x3f3   : > { %v4113_v52 = vadd.f32 %v4112_v59, %v8148_v12  ;;  %v4681_v45 = vmax.f32 %v4649_v32, 0.0  ;;  %v6099_v59 = vld [vmem:[#allocation3 + $0x2b4] sm:$0xf] }
 0x3f5   : > { %v4709_v31 = vpack.c.bf16 %v4681_v45, %v4680_v28  ;;  %v4381_v30 = vadd.f32 %v8350_v18, %v4113_v52  ;;  %v3853_v18 = vadd.f32 %v8911_v56, %v8164_v42  ;;  %v5667_v42 = vld [vmem:[#allocation3 + $0x2c8] sm:$0xf0]  ;;  %v4330_v52 = vpop.f32.mrf.mxu0  ;;  %v6105_v56 = vld [vmem:[#allocation3 + $0x2e4] sm:$0xf] }
 0x3f7   : > { %4813 = vmatmul.bf16.gmra.mxu2 %v4709_v31  ;;  %v4614_v1 = vadd.f32 %v8353_v2, %v4381_v30  ;;  %v4561_v2 = vpop.f32.mrf.mxu1 }
 0x3f9   : > { %v4650_v26 = vadd.f32 %v8342_v21, %v4614_v1 }
 0x3fa   : > { %v4114_v35 = vpop.f32.mrf.mxu3 }
 0x3fb   : > { %v4115_v55 = vadd.f32 %v4114_v35, %v4026_v54  ;;  %v4682_v39 = vmax.f32 %v4650_v26, 0.0  ;;  %v8913_v54 = vld [vmem:[#allocation49_spill] sm:$0xff] }
 0x3fd   : > { %v4382_v12 = vadd.f32 %v8358_v15, %v4115_v55  ;;  %v3942_v15 = vadd.f32 %v8912_v38, %v3853_v18  ;;  %v4333_v55 = vpop.f32.mrf.mxu0 }
 0x3ff   : > { %v4615_v14 = vadd.f32 %v4548_v43, %v4382_v12  ;;  %4156 = vmatmul.bf16.gmra.mxu3 %v5646_v33  ;;  %v4031_v61 = vadd.f32 %v8127_v11, %v3942_v15  ;;  %v4563_v23 = vpop.f32.mrf.mxu1  ;;  %v8914_v12 = vld [vmem:[#allocation80_spill] sm:$0xff] }
 0x401   : > { %v4651_v40 = vadd.f32 %v8342_v21, %v4615_v14 }
 0x402   : > { %v4117_v53 = vpop.f32.mrf.mxu3 }
 0x403   : > { %v4118_v50 = vadd.f32 %v4117_v53, %v8169_v16  ;;  %v4683_v24 = vmax.f32 %v4651_v40, 0.0  ;;  %v5670_v16 = vor.u32 %v6099_v59, %v5667_v42  ;;  %v8916_v59 = vld [vmem:[#allocation84_spill] sm:$0xff] }
 0x405   : > { %v4710_v34 = vpack.c.bf16 %v4683_v24, %v4682_v39  ;;  %v4383_v43 = vadd.f32 %v8365_v10, %v4118_v50  ;;  %v3858_v10 = vadd.f32 %v8913_v54, %v8187_v19  ;;  %v5691_v19 = vld [vmem:[#allocation3 + $0x2f8] sm:$0xf0]  ;;  %v4335_v50 = vpop.f32.mrf.mxu0 }
 0x407   : > { %4818 = vmatmul.bf16.gmra.mxu2 %v4710_v34  ;;  %v4616_v28 = vadd.f32 %v8369_v37, %v4383_v43  ;;  %v8915_v34 = vld [vmem:[#allocation53_spill] sm:$0xff] }
 0x409   : > { %v4652_v30 = vadd.f32 %v8342_v21, %v4616_v28  ;;  %v8917_v28 = vld [vmem:[#allocation41_spill] sm:$0xff] }
 0x40a   : > { %v4119_v32 = vpop.f32.mrf.mxu3 }
 0x40b   : > { %v4120_v45 = vadd.f32 %v4119_v32, %v4031_v61  ;;  %v4684_v6 = vmax.f32 %v4652_v30, 0.0 }
 0x40d   : > { %v4384_v31 = vadd.f32 %v4320_v8, %v4120_v45  ;;  %v3947_v8 = vadd.f32 %v8914_v12, %v3858_v10 }
 0x40f   : > { %v4617_v41 = vadd.f32 %v4553_v25, %v4384_v31  ;;  %4161 = vmatmul.bf16.gmra.mxu3 %v5670_v16  ;;  %v4566_v25 = vpop.f32.mrf.mxu1  ;;  %v4036_v14 = vadd.f32 %v8152_v4, %v3947_v8 }
 0x411   : > { %v4653_v35 = vadd.f32 %v8342_v21, %v4617_v41 }
 0x412   : > { %v4122_v11 = vpop.f32.mrf.mxu3 }
 0x413   : > { %v4123_v57 = vadd.f32 %v4122_v11, %v8189_v22  ;;  %v4685_v1 = vmax.f32 %v4653_v35, 0.0  ;;  %v5694_v22 = vor.u32 %v6105_v56, %v5691_v19 }
 0x415   : > { %v4711_v37 = vpack.c.bf16 %v4685_v1, %v4684_v6  ;;  %v4385_v33 = vadd.f32 %v8379_v3, %v4123_v57  ;;  %v3863_v3 = vadd.f32 %v8915_v34, %v8207_v20 }
 0x417   : > { %4823 = vmatmul.bf16.gmra.mxu2 %v4711_v37  ;;  %v4618_v18 = vadd.f32 %v8386_v46, %v4385_v33  ;;  %v4568_v4 = vpop.f32.mrf.mxu1  ;;  %v8920_v33 = vld [vmem:[#allocation86_spill] sm:$0xff] }
 0x419   : > { %v4654_v24 = vadd.f32 %v8342_v21, %v4618_v18 }
 0x41a   : > { %v4124_v26 = vpop.f32.mrf.mxu3 }
 0x41b   : > { %v4125_v40 = vadd.f32 %v4124_v26, %v4036_v14  ;;  %v4686_v61 = vmax.f32 %v4654_v24, 0.0 }
 0x41d   : > { %v4386_v53 = vadd.f32 %v4325_v36, %v4125_v40  ;;  %v3952_v36 = vadd.f32 %v8916_v59, %v3863_v3  ;;  %v8924_v59 = vld [vmem:[#allocation44_spill] sm:$0xff] }
 0x41f   : > { %v4619_v39 = vadd.f32 %v4558_v47, %v4386_v53  ;;  %4166 = vmatmul.bf16.gmra.mxu3 %v5694_v22  ;;  %v4338_v47 = vpop.f32.mrf.mxu0  ;;  %v4041_v45 = vadd.f32 %v8917_v28, %v3952_v36  ;;  %v4571_v20 = vpop.f32.mrf.mxu1 }
 0x421   : > { %v4655_v38 = vadd.f32 %v8342_v21, %v4619_v39  ;;  %v8922_v39 = vld [vmem:[#allocation63_spill] sm:$0xff] }
 0x422   : > { %v4127_v15 = vpop.f32.mrf.mxu3  ;;  %v3873_v24 = vadd.f32 %v8922_v39, %v8246_v13 }
 0x423   : > { %v4128_v43 = vadd.f32 %v4127_v15, %v8209_v60  ;;  %v4687_v32 = vmax.f32 %v4655_v38, 0.0  ;;  %v8918_v60 = vld [vmem:[#allocation58_spill] sm:$0xff]  ;;  %v8431_v38 = vpop.f32.mrf.mxu2 }
 0x424   : > { %v3868_v35 = vadd.f32 %v8918_v60, %v8229_v49  ;;  %v8925_v60 = vld [vmem:[#allocation71_spill] sm:$0xff] }
 0x425   : > { %v4712_v46 = vpack.c.bf16 %v4687_v32, %v4686_v61  ;;  %v4387_v42 = vadd.f32 %v4328_v48, %v4128_v43  ;;  %v8919_v48 = vld [vmem:[#allocation22_spill] sm:$0xff]  ;;  %v8923_v32 = vld [vmem:[#allocation88_spill] sm:$0xff] }
 0x427   : > { %4828 = vmatmul.bf16.gmra.mxu2 %v4712_v46  ;;  %v4620_v16 = vadd.f32 %v4561_v2, %v4387_v42  ;;  %v4340_v6 = vpop.f32.mrf.mxu0  ;;  %v3957_v2 = vadd.f32 %v8920_v33, %v3868_v35  ;;  %v4573_v14 = vpop.f32.mrf.mxu1 }
 0x429   : > { %v4656_v10 = vadd.f32 %v8342_v21, %v4620_v16  ;;  %v8439_v16 = vld [vmem:[%s8594_s7] ss:$0 sm:$0xff] }
 0x42a   : > { %v4129_v31 = vpop.f32.mrf.mxu3 }
 0x42b   : > { %v4130_v41 = vadd.f32 %v4129_v31, %v4041_v45  ;;  %v4688_v37 = vmax.f32 %v4656_v10, 0.0 }
 0x42d   : > { %v4388_v30 = vadd.f32 %v4330_v52, %v4130_v41  ;;  %v8921_v52 = vld [vmem:[#allocation35_spill] sm:$0xff] }
 0x42f   : > { %v4621_v54 = vadd.f32 %v4563_v23, %v4388_v30  ;;  %v4046_v23 = vadd.f32 %v8921_v52, %v3957_v2  ;;  %v4343_v49 = vpop.f32.mrf.mxu0  ;;  %v4576_v34 = vpop.f32.mrf.mxu1  ;;  %v8926_v52 = vld [vmem:[#allocation90_spill] sm:$0xff] }
 0x431   : > { %v4657_v11 = vadd.f32 %v8342_v21, %v4621_v54 }
 0x432   : > { %v4132_v57 = vpop.f32.mrf.mxu3 }
 0x433   : > { %v4133_v1 = vadd.f32 %v4132_v57, %v8919_v48  ;;  %v4689_v12 = vmax.f32 %v4657_v11, 0.0 }
 0x435   : > { %v4713_v8 = vpack.c.bf16 %v4689_v12, %v4688_v37  ;;  %v4389_v26 = vadd.f32 %v4333_v55, %v4133_v1 }
 0x437   : > { %4833 = vmatmul.bf16.gmra.mxu2 %v4713_v8  ;;  %v4622_v19 = vadd.f32 %v4566_v25, %v4389_v26  ;;  %v4345_v46 = vpop.f32.mrf.mxu0  ;;  %v4578_v45 = vpop.f32.mrf.mxu1 }
 0x439   : > { %v4658_v22 = vadd.f32 %v8342_v21, %v4622_v19 }
 0x43a   : > { %v4134_v56 = vpop.f32.mrf.mxu3 }
 0x43b   : > { %v4135_v18 = vadd.f32 %v4134_v56, %v4046_v23  ;;  %v4690_v43 = vmax.f32 %v4658_v22, 0.0 }
 0x43d   : > { %v4390_v40 = vadd.f32 %v4335_v50, %v4135_v18  ;;  %v3962_v50 = vadd.f32 %v8923_v32, %v3873_v24 }
 0x43f   : > { %v4623_v53 = vadd.f32 %v4568_v4, %v4390_v40  ;;  %v4051_v36 = vadd.f32 %v8924_v59, %v3962_v50  ;;  %v4348_v35 = vpop.f32.mrf.mxu0  ;;  %v4581_v2 = vpop.f32.mrf.mxu1  ;;  %v8927_v40 = vld [vmem:[#allocation46_spill] sm:$0xff] }
 0x441   : > { %v4659_v3 = vadd.f32 %v8342_v21, %v4623_v53 }
 0x442   : > { %v4137_v55 = vpop.f32.mrf.mxu3 }
 0x443   : > { %v4138_v15 = vadd.f32 %v4137_v55, %v8248_v29  ;;  %v4691_v25 = vmax.f32 %v4659_v3, 0.0  ;;  %v397_v29 = vld [vmem:[%s6824_s17] sm:$0xff]   ;;  %v399_v55 = vld [vmem:[%s6824_s17 + $0x8] sm:$0xff]  }
 0x444   : > { %v4879_v10 = vunpack.c.l.bf16 %v397_v29  ;;  %v4880_v11 = vunpack.c.h.bf16 %v397_v29  ;;  %v4881_v32 = vunpack.c.l.bf16 %v399_v55 }
 0x445   : > { %v4714_v61 = vpack.c.bf16 %v4691_v25, %v4690_v43  ;;  %v4391_v4 = vadd.f32 %v4338_v47, %v4138_v15 }
 0x447   : > { %4838 = vmatmul.bf16.gmra.mxu2 %v4714_v61  ;;  %v4624_v13 = vadd.f32 %v4571_v20, %v4391_v4  ;;  %v3878_v20 = vadd.f32 %v8925_v60, %v8261_v63  ;;  %v4350_v24 = vpop.f32.mrf.mxu0  ;;  %v4583_v43 = vpop.f32.mrf.mxu1  ;;  %v4882_v4 = vunpack.c.h.bf16 %v399_v55 }
 0x449   : > { %v4660_v30 = vadd.f32 %v8342_v21, %v4624_v13  ;;  %v3967_v63 = vadd.f32 %v8926_v52, %v3878_v20 }
 0x44a   : > { %v4139_v42 = vpop.f32.mrf.mxu3  ;;  %v4799_v28 = vpop.f32.mrf.mxu2 }
 0x44b   : > { %v4140_v31 = vadd.f32 %v4139_v42, %v4051_v36  ;;  %v4800_v47 = vadd.f32 %v8439_v16, %v4799_v28  ;;  %v4692_v37 = vmax.f32 %v4660_v30, 0.0  ;;  %v4056_v53 = vadd.f32 %v8927_v40, %v3967_v63  ;;  %v8931_v63 = vld [vmem:[#allocation83_spill] sm:$0xff] }
 0x44d   : > { %v4392_v41 = vadd.f32 %v4340_v6, %v4140_v31  ;;  %v4911_v12 = vadd.f32 %v4879_v10, %v4800_v47 }
 0x44f   : > { %v4625_v54 = vadd.f32 %v4573_v14, %v4392_v41  ;;  %v4943_v56 = vmax.f32 %v4911_v12, 0.0  ;;  %v4586_v20 = vpop.f32.mrf.mxu1 }
 0x451   : > { %v4661_v57 = vadd.f32 %v8342_v21, %v4625_v54  ;;  %v8929_v54 = vld [vmem:[#allocation21_spill] sm:$0xff] }
 0x452   : > { %v4142_v48 = vpop.f32.mrf.mxu3  ;;  %v4801_v1 = vpop.f32.mrf.mxu2 }
 0x453   : > { %v4143_v8 = vadd.f32 %v4142_v48, %v8265_v5  ;;  %v4802_v6 = vadd.f32 %v8439_v16, %v4801_v1  ;;  %v4693_v33 = vmax.f32 %v4661_v57, 0.0  ;;  %v8930_v57 = vld [vmem:[#allocation23_spill] sm:$0xff] }
 0x455   : > { %v4912_v14 = vadd.f32 %v4880_v11, %v4802_v6  ;;  %v4715_v26 = vpack.c.bf16 %v4693_v33, %v4692_v37  ;;  %v4393_v23 = vadd.f32 %v4343_v49, %v4143_v8  ;;  %v401_v8 = vld [vmem:[%s6824_s17 + $0x10] sm:$0xff]  }
 0x456   : > { %v4883_v52 = vunpack.c.l.bf16 %v401_v8 }
 0x457   : > { %v4944_v19 = vmax.f32 %v4912_v14, 0.0  ;;  %4843 = vmatmul.bf16.gmra.mxu2 %v4715_v26  ;;  %v4626_v22 = vadd.f32 %v4576_v34, %v4393_v23  ;;  %v8928_v34 = vld [vmem:[#allocation78_spill] sm:$0xff]  ;;  %v3888_v23 = vadd.f32 %v8931_v63, %v8293_v51 }
 0x458   : > { %v3883_v50 = vadd.f32 %v8928_v34, %v8278_v27  ;;  %v8933_v34 = vld [vmem:[#allocation25_spill] sm:$0xff] }
 0x459   : > { %v6193_v18 = vpack.c.bf16 %v4944_v19, %v4943_v56  ;;  %v4662_v49 = vadd.f32 %v8342_v21, %v4626_v22  ;;  %v4884_v56 = vunpack.c.h.bf16 %v401_v8  ;;  %v8936_v8 = vld [vmem:[#allocation20_spill] sm:$0xff] }
 0x45a   : > { %v4144_v39 = vpop.f32.mrf.mxu3  ;;  %v4804_v5 = vpop.f32.mrf.mxu2  ;;  %v3972_v47 = vadd.f32 %v8929_v54, %v3883_v50 }
 0x45b   : > { %6194 = vst [vmem:[%s8453_s25] sm:$0xff] %v6193_v18   ;;  %v4145_v3 = vadd.f32 %v4144_v39, %v4056_v53  ;;  %v4805_v61 = vadd.f32 %v8439_v16, %v4804_v5  ;;  %v4694_v42 = vmax.f32 %v4662_v49, 0.0  ;;  %v4588_v53 = vpop.f32.mrf.mxu1 }
 0x45c   : > { %v4061_v48 = vadd.f32 %v8930_v57, %v3972_v47  ;;  %v8935_v57 = vld [vmem:[#allocation48_spill] sm:$0xff] }
 0x45d   : > { %v4394_v15 = vadd.f32 %v4345_v46, %v4145_v3  ;;  %v4913_v28 = vadd.f32 %v4881_v32, %v4805_v61 }
 0x45f   : > { %v4627_v25 = vadd.f32 %v4578_v45, %v4394_v15  ;;  %v4353_v45 = vpop.f32.mrf.mxu0  ;;  %v4945_v10 = vmax.f32 %v4913_v28, 0.0  ;;  %v8932_v15 = vld [vmem:[#allocation61_spill] sm:$0xff] }
 0x460   : > { %v3977_v49 = vadd.f32 %v8932_v15, %v3888_v23 }
 0x461   : > { %v4663_v59 = vadd.f32 %v8342_v21, %v4627_v25 }
 0x462   : > { %v4147_v36 = vpop.f32.mrf.mxu3  ;;  %v4806_v13 = vpop.f32.mrf.mxu2  ;;  %v4066_v50 = vadd.f32 %v8933_v34, %v3977_v49 }
 0x463   : > { %v4148_v31 = vadd.f32 %v4147_v36, %v8280_v44  ;;  %v4807_v46 = vadd.f32 %v8439_v16, %v4806_v13  ;;  %v4695_v29 = vmax.f32 %v4663_v59, 0.0  ;;  %v403_v13 = vld [vmem:[%s6824_s17 + $0x18] sm:$0xff]  }
 0x464   : > { %v4886_v54 = vunpack.c.h.bf16 %v403_v13 }
 0x465   : > { %v4914_v41 = vadd.f32 %v4882_v4, %v4807_v46  ;;  %v4716_v30 = vpack.c.bf16 %v4695_v29, %v4694_v42  ;;  %v4395_v27 = vadd.f32 %v4348_v35, %v4148_v31  ;;  %v4591_v42 = vpop.f32.mrf.mxu1 }
 0x467   : > { %v4946_v60 = vmax.f32 %v4914_v41, 0.0  ;;  %4848 = vmatmul.bf16.gmra.mxu2 %v4716_v30  ;;  %v4628_v1 = vadd.f32 %v4581_v2, %v4395_v27  ;;  %v4355_v14 = vpop.f32.mrf.mxu0  ;;  %v8934_v41 = vld [vmem:[#allocation85_spill] sm:$0xff] }
 0x468   : > { %v3893_v30 = vadd.f32 %v8934_v41, %v8304_v9 }
 0x469   : > { %v6198_v11 = vpack.c.bf16 %v4946_v60, %v4945_v10  ;;  %v4664_v33 = vadd.f32 %v8342_v21, %v4628_v1 }
 0x46a   : > { %v4149_v44 = vpop.f32.mrf.mxu3  ;;  %v4809_v37 = vpop.f32.mrf.mxu2 }
 0x46b   : > { %6270 = vst [vmem:[%s8453_s25 + $0x8] sm:$0xff] %v6198_v11   ;;  %v4150_v12 = vadd.f32 %v4149_v44, %v4061_v48  ;;  %v4810_v35 = vadd.f32 %v8439_v16, %v4809_v37  ;;  %v4696_v40 = vmax.f32 %v4664_v33, 0.0 }
 0x46d   : > { %v4396_v6 = vadd.f32 %v4350_v24, %v4150_v12  ;;  %v4915_v22 = vadd.f32 %v4883_v52, %v4810_v35  ;;  %v4593_v33 = vpop.f32.mrf.mxu1  ;;  %v8937_v52 = vld [vmem:[#allocation27_spill] sm:$0xff] }
 0x46f   : > { %v4629_v26 = vadd.f32 %v4583_v43, %v4396_v6  ;;  %v4947_v43 = vmax.f32 %v4915_v22, 0.0  ;;  %v4358_v61 = vpop.f32.mrf.mxu0  ;;  %v3982_v6 = vadd.f32 %v8936_v8, %v3893_v30 }
 0x471   : > { %v4665_v19 = vadd.f32 %v8342_v21, %v4629_v26  ;;  %v4071_v63 = vadd.f32 %v8937_v52, %v3982_v6 }
 0x472   : > { %v4152_v2 = vpop.f32.mrf.mxu3  ;;  %v4811_v18 = vpop.f32.mrf.mxu2 }
 0x473   : > { %v4153_v39 = vadd.f32 %v4152_v2, %v8295_v17  ;;  %v4812_v5 = vadd.f32 %v8439_v16, %v4811_v18  ;;  %v4697_v24 = vmax.f32 %v4665_v19, 0.0  ;;  %v405_v18 = vld [vmem:[%s6824_s17 + $0x20] sm:$0xff]  }
 0x474   : > { %v4888_v49 = vunpack.c.h.bf16 %v405_v18 }
 0x475   : > { %v4916_v3 = vadd.f32 %v4884_v56, %v4812_v5  ;;  %v4717_v55 = vpack.c.bf16 %v4697_v24, %v4696_v40  ;;  %v4397_v51 = vadd.f32 %v4353_v45, %v4153_v39  ;;  %v4885_v45 = vunpack.c.l.bf16 %v403_v13  ;;  %v4596_v15 = vpop.f32.mrf.mxu1 }
 0x476   : > { %v4887_v24 = vunpack.c.l.bf16 %v405_v18 }
 0x477   : > { %v4948_v25 = vmax.f32 %v4916_v3, 0.0  ;;  %4853 = vmatmul.bf16.gmra.mxu2 %v4717_v55  ;;  %v4630_v4 = vadd.f32 %v4586_v20, %v4397_v51  ;;  %v4360_v20 = vpop.f32.mrf.mxu0  ;;  %v8938_v3 = vld [vmem:[#allocation87_spill] sm:$0xff] }
 0x478   : > { %v3898_v55 = vadd.f32 %v8938_v3, %v8319_v62  ;;  %v409_v3 = vld [vmem:[%s6824_s17 + $0x30] sm:$0xff]  }
 0x479   : > { %v6203_v32 = vpack.c.bf16 %v4948_v25, %v4947_v43  ;;  %v4666_v31 = vadd.f32 %v8342_v21, %v4630_v4 }
 0x47a   : > { %v4154_v59 = vpop.f32.mrf.mxu3  ;;  %v4814_v17 = vpop.f32.mrf.mxu2 }
 0x47b   : > { %6271 = vst [vmem:[%s8453_s25 + $0x10] sm:$0xff] %v6203_v32   ;;  %v4155_v36 = vadd.f32 %v4154_v59, %v4066_v50  ;;  %v4815_v29 = vadd.f32 %v8439_v16, %v4814_v17  ;;  %v4698_v60 = vmax.f32 %v4666_v31, 0.0 }
 0x47d   : > { %v4398_v28 = vadd.f32 %v4355_v14, %v4155_v36  ;;  %v4917_v11 = vadd.f32 %v4885_v45, %v4815_v29  ;;  %v8939_v36 = vld [vmem:[#allocation24_spill] sm:$0xff]  ;;  %v8940_v29 = vld [vmem:[#allocation50_spill] sm:$0xff] }
 0x47e   : > { %v3987_v13 = vadd.f32 %v8939_v36, %v3898_v55 }
 0x47f   : > { %v4631_v46 = vadd.f32 %v4588_v53, %v4398_v28  ;;  %v4949_v14 = vmax.f32 %v4917_v11, 0.0  ;;  %v4363_v40 = vpop.f32.mrf.mxu0 }
 0x480   : > { %v4076_v45 = vadd.f32 %v8940_v29, %v3987_v13 }
 0x481   : > { %v4667_v47 = vadd.f32 %v8342_v21, %v4631_v46 }
 0x482   : > { %v4157_v27 = vpop.f32.mrf.mxu3  ;;  %v4816_v10 = vpop.f32.mrf.mxu2 }
 0x483   : > { %v4158_v48 = vadd.f32 %v4157_v27, %v8935_v57  ;;  %v4817_v1 = vadd.f32 %v8439_v16, %v4816_v10  ;;  %v4699_v44 = vmax.f32 %v4667_v47, 0.0  ;;  %v4598_v47 = vpop.f32.mrf.mxu1  ;;  %v407_v27 = vld [vmem:[%s6824_s17 + $0x28] sm:$0xff]  }
 0x484   : > { %v4889_v57 = vunpack.c.l.bf16 %v407_v27 }
 0x485   : > { %v4918_v37 = vadd.f32 %v4886_v54, %v4817_v1  ;;  %v4718_v12 = vpack.c.bf16 %v4699_v44, %v4698_v60  ;;  %v4399_v9 = vadd.f32 %v4358_v61, %v4158_v48  ;;  %v8941_v48 = vld [vmem:[#allocation89_spill] sm:$0xff] }
 0x486   : > { %v3903_v1 = vadd.f32 %v8941_v48, %v8332_v58 }
 0x487   : > { %v4950_v26 = vmax.f32 %v4918_v37, 0.0  ;;  %4858 = vmatmul.bf16.gmra.mxu2 %v4718_v12  ;;  %v4632_v23 = vadd.f32 %v4591_v42, %v4399_v9  ;;  %v4365_v42 = vpop.f32.mrf.mxu0  ;;  %v4890_v37 = vunpack.c.h.bf16 %v407_v27 }
 0x489   : > { %v6208_v35 = vpack.c.bf16 %v4950_v26, %v4949_v14  ;;  %v4668_v22 = vadd.f32 %v8342_v21, %v4632_v23 }
 0x48a   : > { %v4159_v56 = vpop.f32.mrf.mxu3  ;;  %v4819_v19 = vpop.f32.mrf.mxu2 }
 0x48b   : > { %6272 = vst [vmem:[%s8453_s25 + $0x18] sm:$0xff] %v6208_v35   ;;  %v4160_v2 = vadd.f32 %v4159_v56, %v4071_v63  ;;  %v4820_v5 = vadd.f32 %v8439_v16, %v4819_v19  ;;  %v4700_v61 = vmax.f32 %v4668_v22, 0.0  ;;  %v4601_v52 = vpop.f32.mrf.mxu1  ;;  %v8942_v56 = vld [vmem:[#allocation39_spill] sm:$0xff] }
 0x48c   : > { %v3992_v58 = vadd.f32 %v8942_v56, %v3903_v1 }
 0x48d   : > { %v4400_v53 = vadd.f32 %v4360_v20, %v4160_v2  ;;  %v4919_v32 = vadd.f32 %v4887_v24, %v4820_v5 }
 0x48f   : > { %v4633_v39 = vadd.f32 %v4593_v33, %v4400_v53  ;;  %v4951_v28 = vmax.f32 %v4919_v32, 0.0  ;;  %v4368_v44 = vpop.f32.mrf.mxu0  ;;  %v4081_v53 = vadd.f32 %v8431_v38, %v3992_v58 }
 0x491   : > { %v4669_v51 = vadd.f32 %v8342_v21, %v4633_v39 }
 0x492   : > { %v4162_v43 = vpop.f32.mrf.mxu3  ;;  %v4821_v25 = vpop.f32.mrf.mxu2 }
 0x493   : > { %v4163_v34 = vadd.f32 %v4162_v43, %v8321_v7  ;;  %v4822_v50 = vadd.f32 %v8439_v16, %v4821_v25  ;;  %v4701_v4 = vmax.f32 %v4669_v51, 0.0  ;;  %v4891_v43 = vunpack.c.l.bf16 %v409_v3 }
 0x495   : > { %v4920_v59 = vadd.f32 %v4888_v49, %v4822_v50  ;;  %v4719_v17 = vpack.c.bf16 %v4701_v4, %v4700_v61  ;;  %v4401_v62 = vadd.f32 %v4363_v40, %v4163_v34  ;;  %v4892_v61 = vunpack.c.h.bf16 %v409_v3 }
 0x497   : > { %v4952_v31 = vmax.f32 %v4920_v59, 0.0  ;;  %4863 = vmatmul.bf16.gmra.mxu2 %v4719_v17  ;;  %v4634_v41 = vadd.f32 %v4596_v15, %v4401_v62  ;;  %v4370_v24 = vpop.f32.mrf.mxu0  ;;  %v4603_v15 = vpop.f32.mrf.mxu1 }
 0x499   : > { %v6213_v46 = vpack.c.bf16 %v4952_v31, %v4951_v28  ;;  %v4670_v60 = vadd.f32 %v8342_v21, %v4634_v41  ;;  %v411_v31 = vld [vmem:[%s6824_s17 + $0x38] sm:$0xff]  }
 0x49a   : > { %v4164_v30 = vpop.f32.mrf.mxu3  ;;  %v4824_v7 = vpop.f32.mrf.mxu2  ;;  %v4894_v29 = vunpack.c.h.bf16 %v411_v31 }
 0x49b   : > { %6273 = vst [vmem:[%s8453_s25 + $0x20] sm:$0xff] %v6213_v46   ;;  %v4165_v54 = vadd.f32 %v4164_v30, %v4076_v45  ;;  %v4825_v11 = vadd.f32 %v8439_v16, %v4824_v7  ;;  %v4702_v9 = vmax.f32 %v4670_v60, 0.0  ;;  %v413_v60 = vld [vmem:[%s6824_s17 + $0x40] sm:$0xff]  }
 0x49d   : > { %v4402_v10 = vadd.f32 %v4365_v42, %v4165_v54  ;;  %v4921_v33 = vadd.f32 %v4889_v57, %v4825_v11  ;;  %v4895_v11 = vunpack.c.l.bf16 %v413_v60  ;;  %v4896_v57 = vunpack.c.h.bf16 %v413_v60 }
 0x49f   : > { %v4635_v20 = vadd.f32 %v4598_v47, %v4402_v10  ;;  %v4953_v19 = vmax.f32 %v4921_v33, 0.0  ;;  %v415_v33 = vld [vmem:[%s6824_s17 + $0x48] sm:$0xff]  }
 0x4a1   : > { %v4671_v12 = vadd.f32 %v8342_v21, %v4635_v20 }
 0x4a2   : > { %v4167_v8 = vpop.f32.mrf.mxu3  ;;  %v4826_v6 = vpop.f32.mrf.mxu2 }
 0x4a3   : > { %v4168_v14 = vadd.f32 %v4167_v8, %v8334_v0  ;;  %v4827_v26 = vadd.f32 %v8439_v16, %v4826_v6  ;;  %v4703_v35 = vmax.f32 %v4671_v12, 0.0 }
 0x4a5   : > { %v4922_v63 = vadd.f32 %v4890_v37, %v4827_v26  ;;  %v4720_v23 = vpack.c.bf16 %v4703_v35, %v4702_v9  ;;  %v4403_v2 = vadd.f32 %v4368_v44, %v4168_v14  ;;  %v4897_v26 = vunpack.c.l.bf16 %v415_v33 }
 0x4a6   : > { %v4898_v35 = vunpack.c.h.bf16 %v415_v33 }
 0x4a7   : > { %v4954_v18 = vmax.f32 %v4922_v63, 0.0  ;;  %4868 = vmatmul.bf16.gmra.mxu2 %v4720_v23  ;;  %v4636_v0 = vadd.f32 %v4601_v52, %v4403_v2 }
 0x4a9   : > { %v6218_v40 = vpack.c.bf16 %v4954_v18, %v4953_v19  ;;  %v4672_v25 = vadd.f32 %v8342_v21, %v4636_v0 }
 0x4aa   : > { %v4169_v22 = vpop.f32.mrf.mxu3  ;;  %v4829_v39 = vpop.f32.mrf.mxu2 }
 0x4ab   : > { %6274 = vst [vmem:[%s8453_s25 + $0x28] sm:$0xff] %v6218_v40   ;;  %v4170_v5 = vadd.f32 %v4169_v22, %v4081_v53  ;;  %v4830_v51 = vadd.f32 %v8439_v16, %v4829_v39  ;;  %v4704_v4 = vmax.f32 %v4672_v25, 0.0  ;;  %v417_v40 = vld [vmem:[%s6824_s17 + $0x50] sm:$0xff]  }
 0x4ac   : > { %v4899_v22 = vunpack.c.l.bf16 %v417_v40  ;;  %v4900_v39 = vunpack.c.h.bf16 %v417_v40 }
 0x4ad   : > { %v4404_v55 = vadd.f32 %v4370_v24, %v4170_v5  ;;  %v4923_v34 = vadd.f32 %v4891_v43, %v4830_v51  ;;  %v419_v43 = vld [vmem:[%s6824_s17 + $0x58] sm:$0xff]  }
 0x4af   : > { %v4637_v49 = vadd.f32 %v4603_v15, %v4404_v55  ;;  %v4955_v13 = vmax.f32 %v4923_v34, 0.0 }
 0x4b1   : > { %v4673_v38 = vadd.f32 %v8342_v21, %v4637_v49  ;;  %v4893_v21 = vunpack.c.l.bf16 %v411_v31 }
 0x4b2   : > { %v4831_v32 = vpop.f32.mrf.mxu2 }
 0x4b3   : > { %v4832_v50 = vadd.f32 %v8439_v16, %v4831_v32  ;;  %v4705_v59 = vmax.f32 %v4673_v38, 0.0  ;;  %v4902_v38 = vunpack.c.h.bf16 %v419_v43 }
 0x4b5   : > { %v4924_v17 = vadd.f32 %v4892_v61, %v4832_v50  ;;  %v4721_v36 = vpack.c.bf16 %v4705_v59, %v4704_v4  ;;  %v4901_v61 = vunpack.c.l.bf16 %v419_v43 }
 0x4b7   : > { %v4956_v62 = vmax.f32 %v4924_v17, 0.0  ;;  %4873 = vmatmul.bf16.gmra.mxu2 %v4721_v36 }
 0x4b9   : > { %v6223_v42 = vpack.c.bf16 %v4956_v62, %v4955_v13  ;;  %v421_v62 = vld [vmem:[%s6824_s17 + $0x60] sm:$0xff]  }
 0x4ba   : > { %v4834_v28 = vpop.f32.mrf.mxu2  ;;  %v4904_v31 = vunpack.c.h.bf16 %v421_v62 }
 0x4bb   : > { %6275 = vst [vmem:[%s8453_s25 + $0x30] sm:$0xff] %v6223_v42   ;;  %v4835_v46 = vadd.f32 %v8439_v16, %v4834_v28  ;;  %v4903_v28 = vunpack.c.l.bf16 %v421_v62 }
 0x4bd   : > { %v4925_v41 = vadd.f32 %v4893_v21, %v4835_v46 }
 0x4bf   : > { %v4957_v54 = vmax.f32 %v4925_v41, 0.0 }
 0x4c2   : > { %v4836_v45 = vpop.f32.mrf.mxu2 }
 0x4c3   : > { %v4837_v30 = vadd.f32 %v8439_v16, %v4836_v45 }
 0x4c5   : > { %v4926_v7 = vadd.f32 %v4894_v29, %v4837_v30 }
 0x4c7   : > { %v4958_v47 = vmax.f32 %v4926_v7, 0.0 }
 0x4c9   : > { %v6228_v27 = vpack.c.bf16 %v4958_v47, %v4957_v54  ;;  %v423_v47 = vld [vmem:[%s6824_s17 + $0x68] sm:$0xff]  }
 0x4ca   : > { %v4839_v10 = vpop.f32.mrf.mxu2  ;;  %v4906_v60 = vunpack.c.h.bf16 %v423_v47 }
 0x4cb   : > { %6276 = vst [vmem:[%s8453_s25 + $0x38] sm:$0xff] %v6228_v27   ;;  %v4840_v20 = vadd.f32 %v8439_v16, %v4839_v10  ;;  %v4905_v10 = vunpack.c.l.bf16 %v423_v47 }
 0x4cd   : > { %v4927_v1 = vadd.f32 %v4895_v11, %v4840_v20 }
 0x4cf   : > { %v4959_v12 = vmax.f32 %v4927_v1, 0.0 }
 0x4d2   : > { %v4841_v48 = vpop.f32.mrf.mxu2 }
 0x4d3   : > { %v4842_v44 = vadd.f32 %v8439_v16, %v4841_v48 }
 0x4d5   : > { %v4928_v37 = vadd.f32 %v4896_v57, %v4842_v44 }
 0x4d7   : > { %v4960_v8 = vmax.f32 %v4928_v37, 0.0 }
 0x4d9   : > { %v6233_v6 = vpack.c.bf16 %v4960_v8, %v4959_v12  ;;  %v425_v8 = vld [vmem:[%s6824_s17 + $0x70] sm:$0xff]  }
 0x4da   : > { %v4844_v9 = vpop.f32.mrf.mxu2  ;;  %v4908_v33 = vunpack.c.h.bf16 %v425_v8 }
 0x4db   : > { %6277 = vst [vmem:[%s8453_s25 + $0x40] sm:$0xff] %v6233_v6   ;;  %v4845_v14 = vadd.f32 %v8439_v16, %v4844_v9  ;;  %v4907_v9 = vunpack.c.l.bf16 %v425_v8 }
 0x4dd   : > { %v4929_v63 = vadd.f32 %v4897_v26, %v4845_v14 }
 0x4df   : > { %v4961_v58 = vmax.f32 %v4929_v63, 0.0 }
 0x4e2   : > { %v4846_v52 = vpop.f32.mrf.mxu2 }
 0x4e3   : > { %v4847_v23 = vadd.f32 %v8439_v16, %v4846_v52 }
 0x4e5   : > { %v4930_v56 = vadd.f32 %v4898_v35, %v4847_v23 }
 0x4e7   : > { %v4962_v19 = vmax.f32 %v4930_v56, 0.0 }
 0x4e9   : > { %v6238_v2 = vpack.c.bf16 %v4962_v19, %v4961_v58  ;;  %v427_v19 = vld [vmem:[%s6824_s17 + $0x78] sm:$0xff]   ;;  %s6571_s17 = sshra.s32 %s5055_s16, 4  ;;  %s6572_s17 = int_to_ptr.hbm [resolvable:$true] %s6571_s17 }
 0x4ea   : > { %v4849_v18 = vpop.f32.mrf.mxu2  ;;  %v4910_v40 = vunpack.c.h.bf16 %v427_v19  ;;  %s6573_s23 = scalar_lea.hbm %s6572_s17, 128  ;;  %p6578_p11 = scmp.lt.s32.totalorder %s6572_s17, %s8595_s8 }
 0x4eb   : > { %6278 = vst [vmem:[%s8453_s25 + $0x48] sm:$0xff] %v6238_v2   ;;  %v4850_v53 = vadd.f32 %v8439_v16, %v4849_v18  ;;  %v4909_v18 = vunpack.c.l.bf16 %v427_v19  ;;  %p6574_p1 = scmp.ne.s32.totalorder %s6572_s17, %s6573_s23  ;;  %p6579_p2 = scmp.lt.s32.totalorder %s6577_s10, %s6573_s23 }
 0x4ed   : > { %v4931_v5 = vadd.f32 %v4899_v22, %v4850_v53  ;;  %p6575_p4 = pnand %p6574_p1, %p6785_p3  ;;  %p6580_p9 = por %p6579_p2, %p6578_p11 }
 0x4ef   : > { %v4963_v55 = vmax.f32 %v4931_v5, 0.0  ;;  %p6576_p8 = pneg %p6575_p4 }
 0x4f1   : > { %p6581_p10 = pnand %p6580_p9, %p6576_p8 }
 0x4f2   : > { %v4851_v0 = vpop.f32.mrf.mxu2 }
 0x4f3   : > { %v4852_v24 = vadd.f32 %v8439_v16, %v4851_v0 }
 0x4f5   : > { %v4932_v3 = vadd.f32 %v4900_v39, %v4852_v24 }
 0x4f7   : > { %v4964_v15 = vmax.f32 %v4932_v3, 0.0 }
 0x4f9   : > { %v6243_v49 = vpack.c.bf16 %v4964_v15, %v4963_v55 }
 0x4fa   : > { %v4854_v51 = vpop.f32.mrf.mxu2 }
 0x4fb   : > { %6279 = vst [vmem:[%s8453_s25 + $0x50] sm:$0xff] %v6243_v49   ;;  %v4855_v25 = vadd.f32 %v8439_v16, %v4854_v51 }
 0x4fd   : > { %v4933_v34 = vadd.f32 %v4901_v61, %v4855_v25 }
 0x4ff   : > { %v4965_v59 = vmax.f32 %v4933_v34, 0.0 }
 0x502   : > { %v4856_v32 = vpop.f32.mrf.mxu2 }
 0x503   : > { %v4857_v50 = vadd.f32 %v8439_v16, %v4856_v32 }
 0x505   : > { %v4934_v4 = vadd.f32 %v4902_v38, %v4857_v50 }
 0x507   : > { %v4966_v17 = vmax.f32 %v4934_v4, 0.0 }
 0x509   : > { %v6248_v36 = vpack.c.bf16 %v4966_v17, %v4965_v59 }
 0x50a   : > { %v4859_v13 = vpop.f32.mrf.mxu2 }
 0x50b   : > { %6280 = vst [vmem:[%s8453_s25 + $0x58] sm:$0xff] %v6248_v36   ;;  %v4860_v42 = vadd.f32 %v8439_v16, %v4859_v13 }
 0x50d   : > { %v4935_v21 = vadd.f32 %v4903_v28, %v4860_v42 }
 0x50f   : > { %v4967_v41 = vmax.f32 %v4935_v21, 0.0 }
 0x512   : > { %v4861_v46 = vpop.f32.mrf.mxu2 }
 0x513   : > { %v4862_v29 = vadd.f32 %v8439_v16, %v4861_v46 }
 0x515   : > { %v4936_v45 = vadd.f32 %v4904_v31, %v4862_v29 }
 0x517   : > { %v4968_v30 = vmax.f32 %v4936_v45, 0.0 }
 0x519   : > { %v6253_v7 = vpack.c.bf16 %v4968_v30, %v4967_v41 }
 0x51a   : > { %v4864_v54 = vpop.f32.mrf.mxu2 }
 0x51b   : > { %6281 = vst [vmem:[%s8453_s25 + $0x60] sm:$0xff] %v6253_v7   ;;  %v4865_v27 = vadd.f32 %v8439_v16, %v4864_v54 }
 0x51d   : > { %v4937_v11 = vadd.f32 %v4905_v10, %v4865_v27 }
 0x51f   : > { %v4969_v1 = vmax.f32 %v4937_v11, 0.0 }
 0x522   : > { %v4866_v20 = vpop.f32.mrf.mxu2 }
 0x523   : > { %v4867_v57 = vadd.f32 %v8439_v16, %v4866_v20 }
 0x525   : > { %v4938_v48 = vadd.f32 %v4906_v60, %v4867_v57 }
 0x527   : > { %v4970_v44 = vmax.f32 %v4938_v48, 0.0 }
 0x529   : > { %v6258_v37 = vpack.c.bf16 %v4970_v44, %v4969_v1 }
 0x52a   : > { %v4869_v12 = vpop.f32.mrf.mxu2 }
 0x52b   : > { %6282 = vst [vmem:[%s8453_s25 + $0x68] sm:$0xff] %v6258_v37   ;;  %v4870_v6 = vadd.f32 %v8439_v16, %v4869_v12 }
 0x52d   : > { %v4939_v26 = vadd.f32 %v4907_v9, %v4870_v6 }
 0x52f   : > { %v4971_v63 = vmax.f32 %v4939_v26, 0.0 }
 0x532   : > { %v4871_v14 = vpop.f32.mrf.mxu2 }
 0x533   : > { %v4872_v35 = vadd.f32 %v8439_v16, %v4871_v14 }
 0x535   : > { %v4940_v52 = vadd.f32 %v4908_v33, %v4872_v35 }
 0x537   : > { %v4972_v23 = vmax.f32 %v4940_v52, 0.0 }
 0x539   : > { %v6263_v56 = vpack.c.bf16 %v4972_v23, %v4971_v63 }
 0x53a   : > { %v4874_v58 = vpop.f32.mrf.mxu2 }
 0x53b   : > { %6283 = vst [vmem:[%s8453_s25 + $0x70] sm:$0xff] %v6263_v56   ;;  %v4875_v2 = vadd.f32 %v8439_v16, %v4874_v58 }
 0x53d   : > { %v4941_v22 = vadd.f32 %v4909_v18, %v4875_v2 }
 0x53f   : > { %v4973_v5 = vmax.f32 %v4941_v22, 0.0 }
 0x542   : > { %v4876_v53 = vpop.f32.mrf.mxu2 }
 0x543   : > { %v4877_v39 = vadd.f32 %v8439_v16, %v4876_v53 }
 0x545   : > { %v4942_v0 = vadd.f32 %v4910_v40, %v4877_v39 }
 0x547   : > { %v4974_v24 = vmax.f32 %v4942_v0, 0.0 }
 0x549   : > { %v6268_v3 = vpack.c.bf16 %v4974_v24, %v4973_v5 }
 0x54b   : > { %6284 = vst [vmem:[%s8453_s25 + $0x78] sm:$0xff] %v6268_v3  }
 0x54c   : > { %6584 = shalt.err (!%p6581_p10)
}
 0x54d   : > { %s6642_s18 = smov 64   ;;  %s6643_s25 = smov 4  }
 0x54e   : > { %6327 = dma.vmem_to_hbm [thread:$0]  (%p6785_p3), %s5053_s11, 2048, %s5055_s16, %s5040_s9, %s6642_s18, %s6642_s18, %s6643_s25  }
 0x54f PF: > { %s5069_s19 = sand.u32 1, %s6619_s27   ;;  %p8943_p12 = scmp.ge.s32.totalorder %s6631_s30, 2 }
 0x550   : > { %s5070_s22 = scalar_lea.sflag [#allocation6], %s5069_s19 }
 0x551   : > { %p6347_p13 = pnand %p8943_p12, %p6724_p6 }
 0x553   : > { %p6348_p0 = pneg %p6347_p13 }
 0x555   : > { %6614 = dma.done.wait (%p6348_p0), %s5070_s22, 2048  }
 0x556   : > { %6616 = vsyncadd (%p6348_p0), %s5070_s22, 4294965248  ;;  %p23_p5 = scmp.ge.s32.totalorder %s6775_s26, 4   ;;  %s8944_s27 = smov %s6623_s28 }
 0x557   : > { %s8945_s28 = smov %s6627_s29  ;;  %s8946_s29 = smov %s6791_s15 }
 0x558   : > { %s8947_s30 = smov %s6775_s26  ;;  %25 = sbr.rel (!%p23_p5) target bundleno = 10 (0xa), region = 113 }
 0x55d   :  { %5076 = vsyncpa [#allocation5], 1 }
 0x55e   :  { %5078 = vsyncpa [#allocation5 + $0x1], 1 }
 0x55f   :  { %5079 = vsyncpa [#allocation8], 1 }
 0x560   :  { %5080 = vsyncpa [#allocation11], 1 }
 0x561   :  { %5081 = vsyncpa [#allocation6], 1 }
 0x562   :  { %5083 = vsyncpa [#allocation6 + $0x1], 1 }

</bundles_post_ra>
